<compile_context>
chip_gen: v7x
topology: tpu7x:2x2x1
jax: 0.10.0
libtpu: 0.0.40
codegen_flags: <defaults>
</compile_context>

<pallas_src>
import jax
import jax.numpy as jnp
import numpy as np
from jax import lax
from jax.experimental import pallas as pl
from jax.experimental.pallas import tpu as pltpu


# ----------------------------------------------------------------------------
# Pallas kernel: one grid step == one chunk of Tc timesteps of the recurrence.
# ----------------------------------------------------------------------------
def _lmm_kernel(gates_ref, k_ref, v_ref, q_ref,
                w1_hbm, b1_hbm, w2_hbm, b2_hbm,
                out_ref, mw1, mb1, mw2, mb2, sw1, sb1, sw2, sb2,
                init_sem):
    c = pl.program_id(0)
    tc = k_ref.shape[0]          # static chunk length

    # One-time init: DMA M0 (HBM) -> resident memory state, zero the momentum.
    @pl.when(c == 0)
    def _():
        copies = (
            pltpu.make_async_copy(w1_hbm, mw1, init_sem.at[0]),
            pltpu.make_async_copy(b1_hbm, mb1, init_sem.at[1]),
            pltpu.make_async_copy(w2_hbm, mw2, init_sem.at[2]),
            pltpu.make_async_copy(b2_hbm, mb2, init_sem.at[3]),
        )
        for cp in copies:
            cp.start()
        for cp in copies:
            cp.wait()
        sw1[...] = jnp.zeros_like(sw1)
        sb1[...] = jnp.zeros_like(sb1)
        sw2[...] = jnp.zeros_like(sw2)
        sb2[...] = jnp.zeros_like(sb2)

    def mm_nt(a, b):   # a[m,k] . b[n,k]^T -> [m,n]
        return lax.dot_general(a, b, (((1,), (1,)), ((), ())),
                               preferred_element_type=jnp.float32)

    def mm_tn(a, b):   # a[k,m]^T . b[k,n] -> [m,n]
        return lax.dot_general(a, b, (((0,), (0,)), ((), ())),
                               preferred_element_type=jnp.float32)

    def step(i, carry):
        W1, b1, W2, b2, S1, Sb1, S2, Sb2 = carry
        t = c * tc + i
        alpha = gates_ref[0, t]
        eta = gates_ref[1, t]
        theta = gates_ref[2, t]

        kt = k_ref[i]        # [B, K]  (already L2-normalized in the wrapper)
        vt = v_ref[i]        # [B, V]
        qt = q_ref[i]        # [B, K]  (already L2-normalized in the wrapper)

        # -------- memory-net forward on k_t (inner association loss) -------
        h = mm_nt(kt, W1) + b1                      # [B, H]
        sig_h = jax.nn.sigmoid(h)
        a_act = h * sig_h                           # SiLU
        pred = mm_nt(a_act, W2) + b2                # [B, V]

        # -------- analytic grads of mean-MSE wrt (W1, b1, W2, b2) ----------
        bsz, vdim = pred.shape
        dpred = (2.0 / (bsz * vdim)) * (pred - vt)                    # [B, V]
        gW2 = mm_tn(dpred, a_act)                                     # [V, H]
        gb2 = jnp.sum(dpred, axis=0, keepdims=True)                   # [1, V]
        da = jnp.dot(dpred, W2, preferred_element_type=jnp.float32)   # [B, H]
        dh = da * (sig_h * (1.0 + h * (1.0 - sig_h)))                 # SiLU'
        gW1 = mm_tn(dh, kt)                                           # [H, K]
        gb1 = jnp.sum(dh, axis=0, keepdims=True)                      # [1, H]

        # -------- momentum (surprise): S_t = eta*S_{t-1} - theta*grad ------
        nS1 = eta * S1 - theta * gW1
        nSb1 = eta * Sb1 - theta * gb1
        nS2 = eta * S2 - theta * gW2
        nSb2 = eta * Sb2 - theta * gb2

        # -------- memory: M_t = (1-alpha)*M_{t-1} + S_t ---------------------
        decay = 1.0 - alpha
        nW1 = decay * W1 + nS1
        nb1 = decay * b1 + nSb1
        nW2 = decay * W2 + nS2
        nb2 = decay * b2 + nSb2

        # -------- retrieval with updated memory M_t -------------------------
        # NOTE: V < 128 at these sizes makes this a masked (lane-sparse) VMEM
        # store; at production V consider packing the output lane-dense.
        hq = mm_nt(qt, nW1) + nb1
        aq = hq * jax.nn.sigmoid(hq)
        out_ref[i] = mm_nt(aq, nW2) + nb2

        return (nW1, nb1, nW2, nb2, nS1, nSb1, nS2, nSb2)

    # Load state once per chunk, run the per-token recurrence with the state
    # carried as values, write the state refs back once per chunk.
    carry = (mw1[...], mb1[...], mw2[...], mb2[...],
             sw1[...], sb1[...], sw2[...], sb2[...])
    if tc <= 32:
        # Tc is a trace-time constant; fully unrolled static loop for small Tc.
        for i in range(tc):
            carry = step(i, carry)
    else:
        carry = lax.fori_loop(0, tc, step, carry, unroll=False)

    W1, b1, W2, b2, S1, Sb1, S2, Sb2 = carry
    mw1[...] = W1
    mb1[...] = b1
    mw2[...] = W2
    mb2[...] = b2
    sw1[...] = S1
    sb1[...] = Sb1
    sw2[...] = S2
    sb2[...] = Sb2


def _pick_chunk(seq_len, max_chunk=32):
    best = 1
    for cand in range(1, min(seq_len, max_chunk) + 1):
        if seq_len % cand == 0:
            best = cand
    return best


def lmm_pallas(keys, values, queries, gates, W1_0, b1_0, W2_0, b2_0, *, chunk=None):
    S, B, K = keys.shape
    V = values.shape[-1]
    H = W1_0.shape[0]
    f32 = jnp.float32

    if chunk is None:
        chunk = _pick_chunk(S)
    assert S % chunk == 0, "sequence length must be divisible by chunk size"
    n_chunks = S // chunk

    def state_spec(shp):
        return pl.BlockSpec(shp, lambda c: (0,) * len(shp))

    hbm = pl.BlockSpec(memory_space=pl.ANY)   # M0 stays in HBM; DMA'd once

    out_shapes = (
        jax.ShapeDtypeStruct((S, B, V), f32),   # retrieved sequence
        jax.ShapeDtypeStruct((H, K), f32),      # final M: W1
        jax.ShapeDtypeStruct((1, H), f32),      # final M: b1
        jax.ShapeDtypeStruct((V, H), f32),      # final M: W2
        jax.ShapeDtypeStruct((1, V), f32),      # final M: b2
        jax.ShapeDtypeStruct((H, K), f32),      # final S: W1
        jax.ShapeDtypeStruct((1, H), f32),
        jax.ShapeDtypeStruct((V, H), f32),
        jax.ShapeDtypeStruct((1, V), f32),
    )

    grid_spec = pltpu.PrefetchScalarGridSpec(
        num_scalar_prefetch=0,
        grid=(n_chunks,),
        in_specs=[
            pl.BlockSpec(memory_space=pltpu.MemorySpace.SMEM),   # gates [3, S]
            pl.BlockSpec((chunk, B, K), lambda c: (c, 0, 0)),    # keys
            pl.BlockSpec((chunk, B, V), lambda c: (c, 0, 0)),    # values
            pl.BlockSpec((chunk, B, K), lambda c: (c, 0, 0)),    # queries
            hbm, hbm, hbm, hbm,                                  # M0 (HBM)
        ],
        out_specs=(
            pl.BlockSpec((chunk, B, V), lambda c: (c, 0, 0)),
            state_spec((H, K)), state_spec((1, H)),
            state_spec((V, H)), state_spec((1, V)),
            state_spec((H, K)), state_spec((1, H)),
            state_spec((V, H)), state_spec((1, V)),
        ),
        scratch_shapes=[pltpu.SemaphoreType.DMA((4,))],
    )

    return pl.pallas_call(
        _lmm_kernel,
        out_shape=out_shapes,
        grid_spec=grid_spec,
        compiler_params=pltpu.CompilerParams(
            dimension_semantics=("arbitrary",),         # sequential recurrence
            vmem_limit_bytes=32 * 1024 * 1024,          # > v5e's 16 MiB default
        ),
    )(gates, keys, values, queries, W1_0, b1_0, W2_0, b2_0)


# ----------------------------------------------------------------------------
# Plain-JAX glue: parameter init, QKV projections, depthwise conv, gates.
# ----------------------------------------------------------------------------
def init_params(key, input_dim, key_dim, value_dim, query_dim, hidden, conv_ks):
    ks = jax.random.split(key, 16)

    def lin(k, out_d, in_d):
        return (jax.random.normal(k, (out_d, in_d), jnp.float32)
                / np.sqrt(in_d)).astype(jnp.float32)

    p = {}
    p["Wk"] = lin(ks[0], key_dim, input_dim)
    p["bk"] = 0.01 * jax.random.normal(ks[1], (key_dim,), jnp.float32)
    p["Wv"] = lin(ks[2], value_dim, input_dim)
    p["bv"] = 0.01 * jax.random.normal(ks[3], (value_dim,), jnp.float32)
    p["Wq"] = lin(ks[4], query_dim, input_dim)
    p["bq"] = 0.01 * jax.random.normal(ks[5], (query_dim,), jnp.float32)
    p["conv_k_w"] = jax.random.normal(ks[6], (key_dim, 1, conv_ks), jnp.float32) / np.sqrt(conv_ks)
    p["conv_k_b"] = jnp.zeros((key_dim,), jnp.float32)
    p["conv_v_w"] = jax.random.normal(ks[7], (value_dim, 1, conv_ks), jnp.float32) / np.sqrt(conv_ks)
    p["conv_v_b"] = jnp.zeros((value_dim,), jnp.float32)
    p["conv_q_w"] = jax.random.normal(ks[8], (query_dim, 1, conv_ks), jnp.float32) / np.sqrt(conv_ks)
    p["conv_q_b"] = jnp.zeros((query_dim,), jnp.float32)
    p["mem_W1"] = lin(ks[9], hidden, key_dim)
    p["mem_b1"] = 0.01 * jax.random.normal(ks[10], (hidden,), jnp.float32)
    p["mem_W2"] = lin(ks[11], value_dim, hidden)
    p["mem_b2"] = 0.01 * jax.random.normal(ks[12], (value_dim,), jnp.float32)
    p["Wa"] = lin(ks[13], 1, input_dim); p["ba"] = jnp.zeros((1,), jnp.float32)
    p["We"] = lin(ks[14], 1, input_dim); p["be"] = jnp.zeros((1,), jnp.float32)
    p["Wt"] = lin(ks[15], 1, input_dim); p["bt"] = jnp.zeros((1,), jnp.float32)
    return p


def _depthwise_conv1d(x_bcs, w, b, pad):
    # x_bcs: [B, C, S] (NCW), w: [C, 1, ks] (depthwise), b: [C]
    y = jax.lax.conv_general_dilated(
        x_bcs, w, window_strides=(1,), padding=[(pad, pad)],
        dimension_numbers=("NCH", "OIH", "NCH"),
        feature_group_count=x_bcs.shape[1])
    return y + b[None, :, None]


def _preprocess(params, x):
    # x: [S, B, Din]
    k = x @ params["Wk"].T + params["bk"]
    v = x @ params["Wv"].T + params["bv"]
    q = x @ params["Wq"].T + params["bq"]

    ks = params["conv_k_w"].shape[-1]
    pad = (ks - 1) // 2

    def conv_seq(seq, w, b):
        y = _depthwise_conv1d(jnp.transpose(seq, (1, 2, 0)), w, b, pad)  # [B,C,S]
        return jnp.transpose(y, (2, 0, 1))                               # [S,B,C]

    k = conv_seq(k, params["conv_k_w"], params["conv_k_b"])
    v = conv_seq(v, params["conv_v_w"], params["conv_v_b"])
    q = conv_seq(q, params["conv_q_w"], params["conv_q_b"])

    # per-timestep scalar gates (mean over batch of a 1-dim projection)
    alpha = jnp.mean(jax.nn.sigmoid(x @ params["Wa"].T + params["ba"]), axis=(1, 2))
    eta = jnp.mean(jax.nn.sigmoid(x @ params["We"].T + params["be"]), axis=(1, 2))
    theta = jnp.mean(jax.nn.softplus(x @ params["Wt"].T + params["bt"]), axis=(1, 2))
    # [3, S] layout: long axis last -> sane SMEM padding for long sequences.
    gates = jnp.stack([alpha, eta, theta], axis=0).astype(jnp.float32)
    return k, v, q, gates


def _l2_normalize(x, eps=1e-12):
    return x / jnp.maximum(jnp.sqrt(jnp.sum(x * x, axis=-1, keepdims=True)), eps)


def lmm_forward(params, x, *, chunk=None):
    """Pallas implementation of LongTermMemoryModule.forward (learn_gates=True)."""
    k, v, q, gates = _preprocess(params, x)
    # L2 normalization hoisted off the serial recurrence (F.normalize equiv).
    k = _l2_normalize(k)
    q = _l2_normalize(q)

    W1_0 = params["mem_W1"]
    b1_0 = params["mem_b1"][None, :]
    W2_0 = params["mem_W2"]
    b2_0 = params["mem_b2"][None, :]

    outs = lmm_pallas(k, v, q, gates, W1_0, b1_0, W2_0, b2_0, chunk=chunk)
    output_seq = outs[0]
    final_M = (outs[1], outs[2][0], outs[3], outs[4][0])
    final_S = (outs[5], outs[6][0], outs[7], outs[8][0])
    return output_seq, (final_M, final_S)


# ----------------------------------------------------------------------------
# Pure-JAX reference (mirrors the PyTorch per-token loop, uses jax.grad)
# ----------------------------------------------------------------------------
def lmm_reference(params, x):
    k, v, q, gates = _preprocess(params, x)
    W1, b1 = params["mem_W1"], params["mem_b1"]
    W2, b2 = params["mem_W2"], params["mem_b2"]
    sW1 = jnp.zeros_like(W1); sb1 = jnp.zeros_like(b1)
    sW2 = jnp.zeros_like(W2); sb2 = jnp.zeros_like(b2)
    outs = []
    for t in range(x.shape[0]):
        kt, vt, qt = k[t], v[t], q[t]
        kt = kt / jnp.maximum(jnp.linalg.norm(kt, axis=-1, keepdims=True), 1e-12)
        qt = qt / jnp.maximum(jnp.linalg.norm(qt, axis=-1, keepdims=True), 1e-12)
        alpha, eta, theta = gates[0, t], gates[1, t], gates[2, t]

        def loss_fn(p):
            W1_, b1_, W2_, b2_ = p
            h = kt @ W1_.T + b1_
            a = h * jax.nn.sigmoid(h)
            pred = a @ W2_.T + b2_
            return jnp.mean((pred - vt) ** 2)

        g = jax.grad(loss_fn)((W1, b1, W2, b2))
        sW1 = eta * sW1 - theta * g[0]
        sb1 = eta * sb1 - theta * g[1]
        sW2 = eta * sW2 - theta * g[2]
        sb2 = eta * sb2 - theta * g[3]
        W1 = (1.0 - alpha) * W1 + sW1
        b1 = (1.0 - alpha) * b1 + sb1
        W2 = (1.0 - alpha) * W2 + sW2
        b2 = (1.0 - alpha) * b2 + sb2
        h = qt @ W1.T + b1
        a = h * jax.nn.sigmoid(h)
        outs.append(a @ W2.T + b2)
    return jnp.stack(outs, axis=0)


if __name__ == "__main__":
    SEQ, BATCH, DIN = 8, 2, 16
    KDIM = QDIM = 16
    VDIM = 16
    HIDDEN = 32
    CONV_KS = 3

    key = jax.random.PRNGKey(0)
    pkey, xkey = jax.random.split(key)
    params = init_params(pkey, DIN, KDIM, VDIM, QDIM, HIDDEN, CONV_KS)
    x = jax.random.normal(xkey, (SEQ, BATCH, DIN), jnp.float32)

    out, (M_final, S_final) = lmm_forward(params, x)
    out = jax.block_until_ready(out)

    ref = lmm_reference(params, x)
    np.testing.assert_allclose(np.asarray(out), np.asarray(ref),
                               rtol=2e-3, atol=2e-3)
    print("KERNEL_OK")
</pallas_src>

<mosaic_0001>
module attributes {stable_mosaic.version = 11 : i64} {
  func.func @_lmm_kernel(%arg0: i32, %arg1: memref<3x8xf32, #tpu.memory_space<smem>>, %arg2: memref<8x2x16xf32, #tpu.memory_space<vmem>>, %arg3: memref<8x2x16xf32, #tpu.memory_space<vmem>>, %arg4: memref<8x2x16xf32, #tpu.memory_space<vmem>>, %arg5: memref<32x16xf32, #tpu.memory_space<any>>, %arg6: memref<1x32xf32, #tpu.memory_space<any>>, %arg7: memref<16x32xf32, #tpu.memory_space<any>>, %arg8: memref<1x16xf32, #tpu.memory_space<any>>, %arg9: memref<8x2x16xf32, #tpu.memory_space<vmem>>, %arg10: memref<32x16xf32, #tpu.memory_space<vmem>>, %arg11: memref<1x32xf32, #tpu.memory_space<vmem>>, %arg12: memref<16x32xf32, #tpu.memory_space<vmem>>, %arg13: memref<1x16xf32, #tpu.memory_space<vmem>>, %arg14: memref<32x16xf32, #tpu.memory_space<vmem>>, %arg15: memref<1x32xf32, #tpu.memory_space<vmem>>, %arg16: memref<16x32xf32, #tpu.memory_space<vmem>>, %arg17: memref<1x16xf32, #tpu.memory_space<vmem>>, %arg18: memref<4x!tpu.dma_semaphore, #tpu.memory_space<semaphore_mem>>) attributes {dimension_semantics = [#tpu.dimension_semantics<arbitrary>], iteration_bounds = array<i64: 1>, scalar_prefetch = 0 : i64, scratch_operands = 1 : i64, tpu.core_type = #tpu.core_type<tc>, window_params = [{transform_indices = @transform_0, window_bounds = array<i64: 3, 8>}, {transform_indices = @transform_1, window_bounds = array<i64: 8, 2, 16>}, {transform_indices = @transform_2, window_bounds = array<i64: 8, 2, 16>}, {transform_indices = @transform_3, window_bounds = array<i64: 8, 2, 16>}, {}, {}, {}, {}, {transform_indices = @transform_8, window_bounds = array<i64: 8, 2, 16>}, {pipeline_mode = #tpu.pipeline_mode<synchronous>, transform_indices = @transform_9, window_bounds = array<i64: 32, 16>}, {pipeline_mode = #tpu.pipeline_mode<synchronous>, transform_indices = @transform_10, window_bounds = array<i64: 1, 32>}, {pipeline_mode = #tpu.pipeline_mode<synchronous>, transform_indices = @transform_11, window_bounds = array<i64: 16, 32>}, {pipeline_mode = #tpu.pipeline_mode<synchronous>, transform_indices = @transform_12, window_bounds = array<i64: 1, 16>}, {pipeline_mode = #tpu.pipeline_mode<synchronous>, transform_indices = @transform_13, window_bounds = array<i64: 32, 16>}, {pipeline_mode = #tpu.pipeline_mode<synchronous>, transform_indices = @transform_14, window_bounds = array<i64: 1, 32>}, {pipeline_mode = #tpu.pipeline_mode<synchronous>, transform_indices = @transform_15, window_bounds = array<i64: 16, 32>}, {pipeline_mode = #tpu.pipeline_mode<synchronous>, transform_indices = @transform_16, window_bounds = array<i64: 1, 16>}]} {
    %c0_i32 = arith.constant 0 : i32
    %0 = arith.cmpi eq, %arg0, %c0_i32 : i32
    %1 = arith.extui %0 : i1 to i32
    %c0_i32_0 = arith.constant 0 : i32
    %2 = arith.cmpi ne, %1, %c0_i32_0 : i32
    scf.if %2 {
      %c0_i32_272 = arith.constant 0 : i32
      %747 = tpu.memref_slice %arg18[%c0_i32_272] : memref<4x!tpu.dma_semaphore, #tpu.memory_space<semaphore_mem>> -> memref<1x!tpu.dma_semaphore, #tpu.memory_space<semaphore_mem>>
      %748 = tpu.memref_squeeze %747 : memref<1x!tpu.dma_semaphore, #tpu.memory_space<semaphore_mem>> -> memref<!tpu.dma_semaphore, #tpu.memory_space<semaphore_mem>>
      tpu.enqueue_dma source(%arg5 : memref<32x16xf32, #tpu.memory_space<any>>) target(%arg10 : memref<32x16xf32, #tpu.memory_space<vmem>>) target_semaphore(%748 : memref<!tpu.dma_semaphore, #tpu.memory_space<semaphore_mem>>)
      %c1_i32_273 = arith.constant 1 : i32
      %749 = tpu.memref_slice %arg18[%c1_i32_273] : memref<4x!tpu.dma_semaphore, #tpu.memory_space<semaphore_mem>> -> memref<1x!tpu.dma_semaphore, #tpu.memory_space<semaphore_mem>>
      %750 = tpu.memref_squeeze %749 : memref<1x!tpu.dma_semaphore, #tpu.memory_space<semaphore_mem>> -> memref<!tpu.dma_semaphore, #tpu.memory_space<semaphore_mem>>
      tpu.enqueue_dma source(%arg6 : memref<1x32xf32, #tpu.memory_space<any>>) target(%arg11 : memref<1x32xf32, #tpu.memory_space<vmem>>) target_semaphore(%750 : memref<!tpu.dma_semaphore, #tpu.memory_space<semaphore_mem>>)
      %c2_i32_274 = arith.constant 2 : i32
      %751 = tpu.memref_slice %arg18[%c2_i32_274] : memref<4x!tpu.dma_semaphore, #tpu.memory_space<semaphore_mem>> -> memref<1x!tpu.dma_semaphore, #tpu.memory_space<semaphore_mem>>
      %752 = tpu.memref_squeeze %751 : memref<1x!tpu.dma_semaphore, #tpu.memory_space<semaphore_mem>> -> memref<!tpu.dma_semaphore, #tpu.memory_space<semaphore_mem>>
      tpu.enqueue_dma source(%arg7 : memref<16x32xf32, #tpu.memory_space<any>>) target(%arg12 : memref<16x32xf32, #tpu.memory_space<vmem>>) target_semaphore(%752 : memref<!tpu.dma_semaphore, #tpu.memory_space<semaphore_mem>>)
      %c3_i32_275 = arith.constant 3 : i32
      %753 = tpu.memref_slice %arg18[%c3_i32_275] : memref<4x!tpu.dma_semaphore, #tpu.memory_space<semaphore_mem>> -> memref<1x!tpu.dma_semaphore, #tpu.memory_space<semaphore_mem>>
      %754 = tpu.memref_squeeze %753 : memref<1x!tpu.dma_semaphore, #tpu.memory_space<semaphore_mem>> -> memref<!tpu.dma_semaphore, #tpu.memory_space<semaphore_mem>>
      tpu.enqueue_dma source(%arg8 : memref<1x16xf32, #tpu.memory_space<any>>) target(%arg13 : memref<1x16xf32, #tpu.memory_space<vmem>>) target_semaphore(%754 : memref<!tpu.dma_semaphore, #tpu.memory_space<semaphore_mem>>)
      %c0_i32_276 = arith.constant 0 : i32
      %755 = tpu.memref_slice %arg18[%c0_i32_276] : memref<4x!tpu.dma_semaphore, #tpu.memory_space<semaphore_mem>> -> memref<1x!tpu.dma_semaphore, #tpu.memory_space<semaphore_mem>>
      %756 = tpu.memref_squeeze %755 : memref<1x!tpu.dma_semaphore, #tpu.memory_space<semaphore_mem>> -> memref<!tpu.dma_semaphore, #tpu.memory_space<semaphore_mem>>
      tpu.wait_dma2 semaphore(%756 : memref<!tpu.dma_semaphore, #tpu.memory_space<semaphore_mem>>) src(%arg5 : memref<32x16xf32, #tpu.memory_space<any>>) dst(%arg10 : memref<32x16xf32, #tpu.memory_space<vmem>>)
      %c1_i32_277 = arith.constant 1 : i32
      %757 = tpu.memref_slice %arg18[%c1_i32_277] : memref<4x!tpu.dma_semaphore, #tpu.memory_space<semaphore_mem>> -> memref<1x!tpu.dma_semaphore, #tpu.memory_space<semaphore_mem>>
      %758 = tpu.memref_squeeze %757 : memref<1x!tpu.dma_semaphore, #tpu.memory_space<semaphore_mem>> -> memref<!tpu.dma_semaphore, #tpu.memory_space<semaphore_mem>>
      tpu.wait_dma2 semaphore(%758 : memref<!tpu.dma_semaphore, #tpu.memory_space<semaphore_mem>>) src(%arg6 : memref<1x32xf32, #tpu.memory_space<any>>) dst(%arg11 : memref<1x32xf32, #tpu.memory_space<vmem>>)
      %c2_i32_278 = arith.constant 2 : i32
      %759 = tpu.memref_slice %arg18[%c2_i32_278] : memref<4x!tpu.dma_semaphore, #tpu.memory_space<semaphore_mem>> -> memref<1x!tpu.dma_semaphore, #tpu.memory_space<semaphore_mem>>
      %760 = tpu.memref_squeeze %759 : memref<1x!tpu.dma_semaphore, #tpu.memory_space<semaphore_mem>> -> memref<!tpu.dma_semaphore, #tpu.memory_space<semaphore_mem>>
      tpu.wait_dma2 semaphore(%760 : memref<!tpu.dma_semaphore, #tpu.memory_space<semaphore_mem>>) src(%arg7 : memref<16x32xf32, #tpu.memory_space<any>>) dst(%arg12 : memref<16x32xf32, #tpu.memory_space<vmem>>)
      %c3_i32_279 = arith.constant 3 : i32
      %761 = tpu.memref_slice %arg18[%c3_i32_279] : memref<4x!tpu.dma_semaphore, #tpu.memory_space<semaphore_mem>> -> memref<1x!tpu.dma_semaphore, #tpu.memory_space<semaphore_mem>>
      %762 = tpu.memref_squeeze %761 : memref<1x!tpu.dma_semaphore, #tpu.memory_space<semaphore_mem>> -> memref<!tpu.dma_semaphore, #tpu.memory_space<semaphore_mem>>
      tpu.wait_dma2 semaphore(%762 : memref<!tpu.dma_semaphore, #tpu.memory_space<semaphore_mem>>) src(%arg8 : memref<1x16xf32, #tpu.memory_space<any>>) dst(%arg13 : memref<1x16xf32, #tpu.memory_space<vmem>>)
      %cst_280 = arith.constant 0.000000e+00 : f32
      %763 = vector.broadcast %cst_280 : f32 to vector<32x16xf32>
      %c0_281 = arith.constant 0 : index
      %c0_282 = arith.constant 0 : index
      %764 = vector.load %arg14[%c0_281, %c0_282] : memref<32x16xf32, #tpu.memory_space<vmem>>, vector<32x16xf32>
      tpu.vector_store %arg14[%c0_281, %c0_282], %763 {strides = array<i32>} : memref<32x16xf32, #tpu.memory_space<vmem>>, vector<32x16xf32>,
      %cst_283 = arith.constant 0.000000e+00 : f32
      %765 = vector.broadcast %cst_283 : f32 to vector<1x32xf32>
      %c0_284 = arith.constant 0 : index
      %c0_285 = arith.constant 0 : index
      %766 = vector.load %arg15[%c0_284, %c0_285] : memref<1x32xf32, #tpu.memory_space<vmem>>, vector<1x32xf32>
      tpu.vector_store %arg15[%c0_284, %c0_285], %765 {strides = array<i32>} : memref<1x32xf32, #tpu.memory_space<vmem>>, vector<1x32xf32>,
      %cst_286 = arith.constant 0.000000e+00 : f32
      %767 = vector.broadcast %cst_286 : f32 to vector<16x32xf32>
      %c0_287 = arith.constant 0 : index
      %c0_288 = arith.constant 0 : index
      %768 = vector.load %arg16[%c0_287, %c0_288] : memref<16x32xf32, #tpu.memory_space<vmem>>, vector<16x32xf32>
      tpu.vector_store %arg16[%c0_287, %c0_288], %767 {strides = array<i32>} : memref<16x32xf32, #tpu.memory_space<vmem>>, vector<16x32xf32>,
      %cst_289 = arith.constant 0.000000e+00 : f32
      %769 = vector.broadcast %cst_289 : f32 to vector<1x16xf32>
      %c0_290 = arith.constant 0 : index
      %c0_291 = arith.constant 0 : index
      %770 = vector.load %arg17[%c0_290, %c0_291] : memref<1x16xf32, #tpu.memory_space<vmem>>, vector<1x16xf32>
      tpu.vector_store %arg17[%c0_290, %c0_291], %769 {strides = array<i32>} : memref<1x16xf32, #tpu.memory_space<vmem>>, vector<1x16xf32>,
    } else {
    }
    %c0 = arith.constant 0 : index
    %c0_1 = arith.constant 0 : index
    %3 = vector.load %arg10[%c0, %c0_1] : memref<32x16xf32, #tpu.memory_space<vmem>>, vector<32x16xf32>
    %c0_2 = arith.constant 0 : index
    %c0_3 = arith.constant 0 : index
    %4 = vector.load %arg11[%c0_2, %c0_3] : memref<1x32xf32, #tpu.memory_space<vmem>>, vector<1x32xf32>
    %c0_4 = arith.constant 0 : index
    %c0_5 = arith.constant 0 : index
    %5 = vector.load %arg12[%c0_4, %c0_5] : memref<16x32xf32, #tpu.memory_space<vmem>>, vector<16x32xf32>
    %c0_6 = arith.constant 0 : index
    %c0_7 = arith.constant 0 : index
    %6 = vector.load %arg13[%c0_6, %c0_7] : memref<1x16xf32, #tpu.memory_space<vmem>>, vector<1x16xf32>
    %c0_8 = arith.constant 0 : index
    %c0_9 = arith.constant 0 : index
    %7 = vector.load %arg14[%c0_8, %c0_9] : memref<32x16xf32, #tpu.memory_space<vmem>>, vector<32x16xf32>
    %c0_10 = arith.constant 0 : index
    %c0_11 = arith.constant 0 : index
    %8 = vector.load %arg15[%c0_10, %c0_11] : memref<1x32xf32, #tpu.memory_space<vmem>>, vector<1x32xf32>
    %c0_12 = arith.constant 0 : index
    %c0_13 = arith.constant 0 : index
    %9 = vector.load %arg16[%c0_12, %c0_13] : memref<16x32xf32, #tpu.memory_space<vmem>>, vector<16x32xf32>
    %c0_14 = arith.constant 0 : index
    %c0_15 = arith.constant 0 : index
    %10 = vector.load %arg17[%c0_14, %c0_15] : memref<1x16xf32, #tpu.memory_space<vmem>>, vector<1x16xf32>
    %c8_i32 = arith.constant 8 : i32
    %11 = arith.muli %arg0, %c8_i32 : i32
    %c0_i32_16 = arith.constant 0 : i32
    %12 = arith.addi %11, %c0_i32_16 : i32
    %c0_17 = arith.constant 0 : index
    %13 = arith.index_cast %12 : i32 to index
    %14 = memref.load %arg1[%c0_17, %13] : memref<3x8xf32, #tpu.memory_space<smem>>
    %c1 = arith.constant 1 : index
    %15 = arith.index_cast %12 : i32 to index
    %16 = memref.load %arg1[%c1, %15] : memref<3x8xf32, #tpu.memory_space<smem>>
    %c2 = arith.constant 2 : index
    %17 = arith.index_cast %12 : i32 to index
    %18 = memref.load %arg1[%c2, %17] : memref<3x8xf32, #tpu.memory_space<smem>>
    %c0_18 = arith.constant 0 : index
    %c0_19 = arith.constant 0 : index
    %c0_20 = arith.constant 0 : index
    %19 = vector.load %arg2[%c0_18, %c0_19, %c0_20] : memref<8x2x16xf32, #tpu.memory_space<vmem>>, vector<1x2x16xf32>
    %20 = vector.shape_cast %19 : vector<1x2x16xf32> to vector<2x16xf32>
    %c0_21 = arith.constant 0 : index
    %c0_22 = arith.constant 0 : index
    %c0_23 = arith.constant 0 : index
    %21 = vector.load %arg3[%c0_21, %c0_22, %c0_23] : memref<8x2x16xf32, #tpu.memory_space<vmem>>, vector<1x2x16xf32>
    %22 = vector.shape_cast %21 : vector<1x2x16xf32> to vector<2x16xf32>
    %c0_24 = arith.constant 0 : index
    %c0_25 = arith.constant 0 : index
    %c0_26 = arith.constant 0 : index
    %23 = vector.load %arg4[%c0_24, %c0_25, %c0_26] : memref<8x2x16xf32, #tpu.memory_space<vmem>>, vector<1x2x16xf32>
    %24 = vector.shape_cast %23 : vector<1x2x16xf32> to vector<2x16xf32>
    %cst = arith.constant dense<0.000000e+00> : vector<2x32xf32>
    %25 = tpu.matmul %20, %3, %cst {dimension_numbers = #tpu.dot_dimension_numbers<[1], [1], [0], [0], [0, 0, 1, 0], [], []>} : vector<2x16xf32>, vector<32x16xf32>, vector<2x32xf32> -> vector<2x32xf32>
    %26 = vector.broadcast %4 : vector<1x32xf32> to vector<2x32xf32>
    %27 = arith.addf %25, %26 : vector<2x32xf32>
    %28 = arith.negf %27 : vector<2x32xf32>
    %29 = math.exp %28 : vector<2x32xf32>
    %cst_27 = arith.constant 1.000000e+00 : f32
    %30 = vector.broadcast %cst_27 : f32 to vector<2x32xf32>
    %31 = arith.addf %30, %29 : vector<2x32xf32>
    %32 = arith.divf %30, %31 : vector<2x32xf32>
    %33 = arith.mulf %27, %32 : vector<2x32xf32>
    %cst_28 = arith.constant dense<0.000000e+00> : vector<2x16xf32>
    %34 = tpu.matmul %33, %5, %cst_28 {dimension_numbers = #tpu.dot_dimension_numbers<[1], [1], [0], [0], [0, 0, 1, 0], [], []>} : vector<2x32xf32>, vector<16x32xf32>, vector<2x16xf32> -> vector<2x16xf32>
    %35 = vector.broadcast %6 : vector<1x16xf32> to vector<2x16xf32>
    %36 = arith.addf %34, %35 : vector<2x16xf32>
    %37 = arith.subf %36, %22 : vector<2x16xf32>
    %cst_29 = arith.constant 6.250000e-02 : f32
    %38 = vector.broadcast %cst_29 : f32 to vector<2x16xf32>
    %39 = arith.mulf %38, %37 : vector<2x16xf32>
    %cst_30 = arith.constant dense<0.000000e+00> : vector<16x32xf32>
    %40 = tpu.matmul %39, %33, %cst_30 {dimension_numbers = #tpu.dot_dimension_numbers<[0], [0], [1], [1], [0, 1, 1, 1], [], []>} : vector<2x16xf32>, vector<2x32xf32>, vector<16x32xf32> -> vector<16x32xf32>
    %cst_31 = arith.constant dense<0.000000e+00> : vector<16xf32>
    %41 = vector.multi_reduction <add>, %39, %cst_31 [0] : vector<2x16xf32> to vector<16xf32>
    %42 = vector.shape_cast %41 : vector<16xf32> to vector<1x16xf32>
    %cst_32 = arith.constant dense<0.000000e+00> : vector<2x32xf32>
    %43 = tpu.matmul %39, %5, %cst_32 {dimension_numbers = #tpu.dot_dimension_numbers<[1], [0], [0], [1], [0, 0, 1, 1], [], []>} : vector<2x16xf32>, vector<16x32xf32>, vector<2x32xf32> -> vector<2x32xf32>
    %cst_33 = arith.constant 1.000000e+00 : f32
    %44 = vector.broadcast %cst_33 : f32 to vector<2x32xf32>
    %45 = arith.subf %44, %32 : vector<2x32xf32>
    %46 = arith.mulf %27, %45 : vector<2x32xf32>
    %cst_34 = arith.constant 1.000000e+00 : f32
    %47 = vector.broadcast %cst_34 : f32 to vector<2x32xf32>
    %48 = arith.addf %47, %46 : vector<2x32xf32>
    %49 = arith.mulf %32, %48 : vector<2x32xf32>
    %50 = arith.mulf %43, %49 : vector<2x32xf32>
    %cst_35 = arith.constant dense<0.000000e+00> : vector<32x16xf32>
    %51 = tpu.matmul %50, %20, %cst_35 {dimension_numbers = #tpu.dot_dimension_numbers<[0], [0], [1], [1], [0, 1, 1, 1], [], []>} : vector<2x32xf32>, vector<2x16xf32>, vector<32x16xf32> -> vector<32x16xf32>
    %cst_36 = arith.constant dense<0.000000e+00> : vector<32xf32>
    %52 = vector.multi_reduction <add>, %50, %cst_36 [0] : vector<2x32xf32> to vector<32xf32>
    %53 = vector.shape_cast %52 : vector<32xf32> to vector<1x32xf32>
    %54 = vector.broadcast %16 : f32 to vector<32x16xf32>
    %55 = arith.mulf %54, %7 : vector<32x16xf32>
    %56 = vector.broadcast %18 : f32 to vector<32x16xf32>
    %57 = arith.mulf %56, %51 : vector<32x16xf32>
    %58 = arith.subf %55, %57 : vector<32x16xf32>
    %59 = vector.broadcast %16 : f32 to vector<1x32xf32>
    %60 = arith.mulf %59, %8 : vector<1x32xf32>
    %61 = vector.broadcast %18 : f32 to vector<1x32xf32>
    %62 = arith.mulf %61, %53 : vector<1x32xf32>
    %63 = arith.subf %60, %62 : vector<1x32xf32>
    %64 = vector.broadcast %16 : f32 to vector<16x32xf32>
    %65 = arith.mulf %64, %9 : vector<16x32xf32>
    %66 = vector.broadcast %18 : f32 to vector<16x32xf32>
    %67 = arith.mulf %66, %40 : vector<16x32xf32>
    %68 = arith.subf %65, %67 : vector<16x32xf32>
    %69 = vector.broadcast %16 : f32 to vector<1x16xf32>
    %70 = arith.mulf %69, %10 : vector<1x16xf32>
    %71 = vector.broadcast %18 : f32 to vector<1x16xf32>
    %72 = arith.mulf %71, %42 : vector<1x16xf32>
    %73 = arith.subf %70, %72 : vector<1x16xf32>
    %cst_37 = arith.constant 1.000000e+00 : f32
    %74 = arith.subf %cst_37, %14 : f32
    %75 = vector.broadcast %74 : f32 to vector<32x16xf32>
    %76 = arith.mulf %75, %3 : vector<32x16xf32>
    %77 = arith.addf %76, %58 : vector<32x16xf32>
    %78 = vector.broadcast %74 : f32 to vector<1x32xf32>
    %79 = arith.mulf %78, %4 : vector<1x32xf32>
    %80 = arith.addf %79, %63 : vector<1x32xf32>
    %81 = vector.broadcast %74 : f32 to vector<16x32xf32>
    %82 = arith.mulf %81, %5 : vector<16x32xf32>
    %83 = arith.addf %82, %68 : vector<16x32xf32>
    %84 = vector.broadcast %74 : f32 to vector<1x16xf32>
    %85 = arith.mulf %84, %6 : vector<1x16xf32>
    %86 = arith.addf %85, %73 : vector<1x16xf32>
    %cst_38 = arith.constant dense<0.000000e+00> : vector<2x32xf32>
    %87 = tpu.matmul %24, %77, %cst_38 {dimension_numbers = #tpu.dot_dimension_numbers<[1], [1], [0], [0], [0, 0, 1, 0], [], []>} : vector<2x16xf32>, vector<32x16xf32>, vector<2x32xf32> -> vector<2x32xf32>
    %88 = vector.broadcast %80 : vector<1x32xf32> to vector<2x32xf32>
    %89 = arith.addf %87, %88 : vector<2x32xf32>
    %90 = arith.negf %89 : vector<2x32xf32>
    %91 = math.exp %90 : vector<2x32xf32>
    %cst_39 = arith.constant 1.000000e+00 : f32
    %92 = vector.broadcast %cst_39 : f32 to vector<2x32xf32>
    %93 = arith.addf %92, %91 : vector<2x32xf32>
    %94 = arith.divf %92, %93 : vector<2x32xf32>
    %95 = arith.mulf %89, %94 : vector<2x32xf32>
    %cst_40 = arith.constant dense<0.000000e+00> : vector<2x16xf32>
    %96 = tpu.matmul %95, %83, %cst_40 {dimension_numbers = #tpu.dot_dimension_numbers<[1], [1], [0], [0], [0, 0, 1, 0], [], []>} : vector<2x32xf32>, vector<16x32xf32>, vector<2x16xf32> -> vector<2x16xf32>
    %97 = vector.broadcast %86 : vector<1x16xf32> to vector<2x16xf32>
    %98 = arith.addf %96, %97 : vector<2x16xf32>
    %c0_41 = arith.constant 0 : index
    %c0_42 = arith.constant 0 : index
    %c0_43 = arith.constant 0 : index
    %99 = vector.load %arg9[%c0_41, %c0_42, %c0_43] : memref<8x2x16xf32, #tpu.memory_space<vmem>>, vector<1x2x16xf32>
    %100 = vector.shape_cast %99 : vector<1x2x16xf32> to vector<2x16xf32>
    %101 = vector.shape_cast %98 : vector<2x16xf32> to vector<1x2x16xf32>
    tpu.vector_store %arg9[%c0_41, %c0_42, %c0_43], %101 {strides = array<i32>} : memref<8x2x16xf32, #tpu.memory_space<vmem>>, vector<1x2x16xf32>,
    %c8_i32_44 = arith.constant 8 : i32
    %102 = arith.muli %arg0, %c8_i32_44 : i32
    %c1_i32 = arith.constant 1 : i32
    %103 = arith.addi %102, %c1_i32 : i32
    %c0_45 = arith.constant 0 : index
    %104 = arith.index_cast %103 : i32 to index
    %105 = memref.load %arg1[%c0_45, %104] : memref<3x8xf32, #tpu.memory_space<smem>>
    %c1_46 = arith.constant 1 : index
    %106 = arith.index_cast %103 : i32 to index
    %107 = memref.load %arg1[%c1_46, %106] : memref<3x8xf32, #tpu.memory_space<smem>>
    %c2_47 = arith.constant 2 : index
    %108 = arith.index_cast %103 : i32 to index
    %109 = memref.load %arg1[%c2_47, %108] : memref<3x8xf32, #tpu.memory_space<smem>>
    %c1_48 = arith.constant 1 : index
    %c0_49 = arith.constant 0 : index
    %c0_50 = arith.constant 0 : index
    %110 = vector.load %arg2[%c1_48, %c0_49, %c0_50] : memref<8x2x16xf32, #tpu.memory_space<vmem>>, vector<1x2x16xf32>
    %111 = vector.shape_cast %110 : vector<1x2x16xf32> to vector<2x16xf32>
    %c1_51 = arith.constant 1 : index
    %c0_52 = arith.constant 0 : index
    %c0_53 = arith.constant 0 : index
    %112 = vector.load %arg3[%c1_51, %c0_52, %c0_53] : memref<8x2x16xf32, #tpu.memory_space<vmem>>, vector<1x2x16xf32>
    %113 = vector.shape_cast %112 : vector<1x2x16xf32> to vector<2x16xf32>
    %c1_54 = arith.constant 1 : index
    %c0_55 = arith.constant 0 : index
    %c0_56 = arith.constant 0 : index
    %114 = vector.load %arg4[%c1_54, %c0_55, %c0_56] : memref<8x2x16xf32, #tpu.memory_space<vmem>>, vector<1x2x16xf32>
    %115 = vector.shape_cast %114 : vector<1x2x16xf32> to vector<2x16xf32>
    %cst_57 = arith.constant dense<0.000000e+00> : vector<2x32xf32>
    %116 = tpu.matmul %111, %77, %cst_57 {dimension_numbers = #tpu.dot_dimension_numbers<[1], [1], [0], [0], [0, 0, 1, 0], [], []>} : vector<2x16xf32>, vector<32x16xf32>, vector<2x32xf32> -> vector<2x32xf32>
    %117 = vector.broadcast %80 : vector<1x32xf32> to vector<2x32xf32>
    %118 = arith.addf %116, %117 : vector<2x32xf32>
    %119 = arith.negf %118 : vector<2x32xf32>
    %120 = math.exp %119 : vector<2x32xf32>
    %cst_58 = arith.constant 1.000000e+00 : f32
    %121 = vector.broadcast %cst_58 : f32 to vector<2x32xf32>
    %122 = arith.addf %121, %120 : vector<2x32xf32>
    %123 = arith.divf %121, %122 : vector<2x32xf32>
    %124 = arith.mulf %118, %123 : vector<2x32xf32>
    %cst_59 = arith.constant dense<0.000000e+00> : vector<2x16xf32>
    %125 = tpu.matmul %124, %83, %cst_59 {dimension_numbers = #tpu.dot_dimension_numbers<[1], [1], [0], [0], [0, 0, 1, 0], [], []>} : vector<2x32xf32>, vector<16x32xf32>, vector<2x16xf32> -> vector<2x16xf32>
    %126 = vector.broadcast %86 : vector<1x16xf32> to vector<2x16xf32>
    %127 = arith.addf %125, %126 : vector<2x16xf32>
    %128 = arith.subf %127, %113 : vector<2x16xf32>
    %cst_60 = arith.constant 6.250000e-02 : f32
    %129 = vector.broadcast %cst_60 : f32 to vector<2x16xf32>
    %130 = arith.mulf %129, %128 : vector<2x16xf32>
    %cst_61 = arith.constant dense<0.000000e+00> : vector<16x32xf32>
    %131 = tpu.matmul %130, %124, %cst_61 {dimension_numbers = #tpu.dot_dimension_numbers<[0], [0], [1], [1], [0, 1, 1, 1], [], []>} : vector<2x16xf32>, vector<2x32xf32>, vector<16x32xf32> -> vector<16x32xf32>
    %cst_62 = arith.constant dense<0.000000e+00> : vector<16xf32>
    %132 = vector.multi_reduction <add>, %130, %cst_62 [0] : vector<2x16xf32> to vector<16xf32>
    %133 = vector.shape_cast %132 : vector<16xf32> to vector<1x16xf32>
    %cst_63 = arith.constant dense<0.000000e+00> : vector<2x32xf32>
    %134 = tpu.matmul %130, %83, %cst_63 {dimension_numbers = #tpu.dot_dimension_numbers<[1], [0], [0], [1], [0, 0, 1, 1], [], []>} : vector<2x16xf32>, vector<16x32xf32>, vector<2x32xf32> -> vector<2x32xf32>
    %cst_64 = arith.constant 1.000000e+00 : f32
    %135 = vector.broadcast %cst_64 : f32 to vector<2x32xf32>
    %136 = arith.subf %135, %123 : vector<2x32xf32>
    %137 = arith.mulf %118, %136 : vector<2x32xf32>
    %cst_65 = arith.constant 1.000000e+00 : f32
    %138 = vector.broadcast %cst_65 : f32 to vector<2x32xf32>
    %139 = arith.addf %138, %137 : vector<2x32xf32>
    %140 = arith.mulf %123, %139 : vector<2x32xf32>
    %141 = arith.mulf %134, %140 : vector<2x32xf32>
    %cst_66 = arith.constant dense<0.000000e+00> : vector<32x16xf32>
    %142 = tpu.matmul %141, %111, %cst_66 {dimension_numbers = #tpu.dot_dimension_numbers<[0], [0], [1], [1], [0, 1, 1, 1], [], []>} : vector<2x32xf32>, vector<2x16xf32>, vector<32x16xf32> -> vector<32x16xf32>
    %cst_67 = arith.constant dense<0.000000e+00> : vector<32xf32>
    %143 = vector.multi_reduction <add>, %141, %cst_67 [0] : vector<2x32xf32> to vector<32xf32>
    %144 = vector.shape_cast %143 : vector<32xf32> to vector<1x32xf32>
    %145 = vector.broadcast %107 : f32 to vector<32x16xf32>
    %146 = arith.mulf %145, %58 : vector<32x16xf32>
    %147 = vector.broadcast %109 : f32 to vector<32x16xf32>
    %148 = arith.mulf %147, %142 : vector<32x16xf32>
    %149 = arith.subf %146, %148 : vector<32x16xf32>
    %150 = vector.broadcast %107 : f32 to vector<1x32xf32>
    %151 = arith.mulf %150, %63 : vector<1x32xf32>
    %152 = vector.broadcast %109 : f32 to vector<1x32xf32>
    %153 = arith.mulf %152, %144 : vector<1x32xf32>
    %154 = arith.subf %151, %153 : vector<1x32xf32>
    %155 = vector.broadcast %107 : f32 to vector<16x32xf32>
    %156 = arith.mulf %155, %68 : vector<16x32xf32>
    %157 = vector.broadcast %109 : f32 to vector<16x32xf32>
    %158 = arith.mulf %157, %131 : vector<16x32xf32>
    %159 = arith.subf %156, %158 : vector<16x32xf32>
    %160 = vector.broadcast %107 : f32 to vector<1x16xf32>
    %161 = arith.mulf %160, %73 : vector<1x16xf32>
    %162 = vector.broadcast %109 : f32 to vector<1x16xf32>
    %163 = arith.mulf %162, %133 : vector<1x16xf32>
    %164 = arith.subf %161, %163 : vector<1x16xf32>
    %cst_68 = arith.constant 1.000000e+00 : f32
    %165 = arith.subf %cst_68, %105 : f32
    %166 = vector.broadcast %165 : f32 to vector<32x16xf32>
    %167 = arith.mulf %166, %77 : vector<32x16xf32>
    %168 = arith.addf %167, %149 : vector<32x16xf32>
    %169 = vector.broadcast %165 : f32 to vector<1x32xf32>
    %170 = arith.mulf %169, %80 : vector<1x32xf32>
    %171 = arith.addf %170, %154 : vector<1x32xf32>
    %172 = vector.broadcast %165 : f32 to vector<16x32xf32>
    %173 = arith.mulf %172, %83 : vector<16x32xf32>
    %174 = arith.addf %173, %159 : vector<16x32xf32>
    %175 = vector.broadcast %165 : f32 to vector<1x16xf32>
    %176 = arith.mulf %175, %86 : vector<1x16xf32>
    %177 = arith.addf %176, %164 : vector<1x16xf32>
    %cst_69 = arith.constant dense<0.000000e+00> : vector<2x32xf32>
    %178 = tpu.matmul %115, %168, %cst_69 {dimension_numbers = #tpu.dot_dimension_numbers<[1], [1], [0], [0], [0, 0, 1, 0], [], []>} : vector<2x16xf32>, vector<32x16xf32>, vector<2x32xf32> -> vector<2x32xf32>
    %179 = vector.broadcast %171 : vector<1x32xf32> to vector<2x32xf32>
    %180 = arith.addf %178, %179 : vector<2x32xf32>
    %181 = arith.negf %180 : vector<2x32xf32>
    %182 = math.exp %181 : vector<2x32xf32>
    %cst_70 = arith.constant 1.000000e+00 : f32
    %183 = vector.broadcast %cst_70 : f32 to vector<2x32xf32>
    %184 = arith.addf %183, %182 : vector<2x32xf32>
    %185 = arith.divf %183, %184 : vector<2x32xf32>
    %186 = arith.mulf %180, %185 : vector<2x32xf32>
    %cst_71 = arith.constant dense<0.000000e+00> : vector<2x16xf32>
    %187 = tpu.matmul %186, %174, %cst_71 {dimension_numbers = #tpu.dot_dimension_numbers<[1], [1], [0], [0], [0, 0, 1, 0], [], []>} : vector<2x32xf32>, vector<16x32xf32>, vector<2x16xf32> -> vector<2x16xf32>
    %188 = vector.broadcast %177 : vector<1x16xf32> to vector<2x16xf32>
    %189 = arith.addf %187, %188 : vector<2x16xf32>
    %c1_72 = arith.constant 1 : index
    %c0_73 = arith.constant 0 : index
    %c0_74 = arith.constant 0 : index
    %190 = vector.load %arg9[%c1_72, %c0_73, %c0_74] : memref<8x2x16xf32, #tpu.memory_space<vmem>>, vector<1x2x16xf32>
    %191 = vector.shape_cast %190 : vector<1x2x16xf32> to vector<2x16xf32>
    %192 = vector.shape_cast %189 : vector<2x16xf32> to vector<1x2x16xf32>
    tpu.vector_store %arg9[%c1_72, %c0_73, %c0_74], %192 {strides = array<i32>} : memref<8x2x16xf32, #tpu.memory_space<vmem>>, vector<1x2x16xf32>,
    %c8_i32_75 = arith.constant 8 : i32
    %193 = arith.muli %arg0, %c8_i32_75 : i32
    %c2_i32 = arith.constant 2 : i32
    %194 = arith.addi %193, %c2_i32 : i32
    %c0_76 = arith.constant 0 : index
    %195 = arith.index_cast %194 : i32 to index
    %196 = memref.load %arg1[%c0_76, %195] : memref<3x8xf32, #tpu.memory_space<smem>>
    %c1_77 = arith.constant 1 : index
    %197 = arith.index_cast %194 : i32 to index
    %198 = memref.load %arg1[%c1_77, %197] : memref<3x8xf32, #tpu.memory_space<smem>>
    %c2_78 = arith.constant 2 : index
    %199 = arith.index_cast %194 : i32 to index
    %200 = memref.load %arg1[%c2_78, %199] : memref<3x8xf32, #tpu.memory_space<smem>>
    %c2_79 = arith.constant 2 : index
    %c0_80 = arith.constant 0 : index
    %c0_81 = arith.constant 0 : index
    %201 = vector.load %arg2[%c2_79, %c0_80, %c0_81] : memref<8x2x16xf32, #tpu.memory_space<vmem>>, vector<1x2x16xf32>
    %202 = vector.shape_cast %201 : vector<1x2x16xf32> to vector<2x16xf32>
    %c2_82 = arith.constant 2 : index
    %c0_83 = arith.constant 0 : index
    %c0_84 = arith.constant 0 : index
    %203 = vector.load %arg3[%c2_82, %c0_83, %c0_84] : memref<8x2x16xf32, #tpu.memory_space<vmem>>, vector<1x2x16xf32>
    %204 = vector.shape_cast %203 : vector<1x2x16xf32> to vector<2x16xf32>
    %c2_85 = arith.constant 2 : index
    %c0_86 = arith.constant 0 : index
    %c0_87 = arith.constant 0 : index
    %205 = vector.load %arg4[%c2_85, %c0_86, %c0_87] : memref<8x2x16xf32, #tpu.memory_space<vmem>>, vector<1x2x16xf32>
    %206 = vector.shape_cast %205 : vector<1x2x16xf32> to vector<2x16xf32>
    %cst_88 = arith.constant dense<0.000000e+00> : vector<2x32xf32>
    %207 = tpu.matmul %202, %168, %cst_88 {dimension_numbers = #tpu.dot_dimension_numbers<[1], [1], [0], [0], [0, 0, 1, 0], [], []>} : vector<2x16xf32>, vector<32x16xf32>, vector<2x32xf32> -> vector<2x32xf32>
    %208 = vector.broadcast %171 : vector<1x32xf32> to vector<2x32xf32>
    %209 = arith.addf %207, %208 : vector<2x32xf32>
    %210 = arith.negf %209 : vector<2x32xf32>
    %211 = math.exp %210 : vector<2x32xf32>
    %cst_89 = arith.constant 1.000000e+00 : f32
    %212 = vector.broadcast %cst_89 : f32 to vector<2x32xf32>
    %213 = arith.addf %212, %211 : vector<2x32xf32>
    %214 = arith.divf %212, %213 : vector<2x32xf32>
    %215 = arith.mulf %209, %214 : vector<2x32xf32>
    %cst_90 = arith.constant dense<0.000000e+00> : vector<2x16xf32>
    %216 = tpu.matmul %215, %174, %cst_90 {dimension_numbers = #tpu.dot_dimension_numbers<[1], [1], [0], [0], [0, 0, 1, 0], [], []>} : vector<2x32xf32>, vector<16x32xf32>, vector<2x16xf32> -> vector<2x16xf32>
    %217 = vector.broadcast %177 : vector<1x16xf32> to vector<2x16xf32>
    %218 = arith.addf %216, %217 : vector<2x16xf32>
    %219 = arith.subf %218, %204 : vector<2x16xf32>
    %cst_91 = arith.constant 6.250000e-02 : f32
    %220 = vector.broadcast %cst_91 : f32 to vector<2x16xf32>
    %221 = arith.mulf %220, %219 : vector<2x16xf32>
    %cst_92 = arith.constant dense<0.000000e+00> : vector<16x32xf32>
    %222 = tpu.matmul %221, %215, %cst_92 {dimension_numbers = #tpu.dot_dimension_numbers<[0], [0], [1], [1], [0, 1, 1, 1], [], []>} : vector<2x16xf32>, vector<2x32xf32>, vector<16x32xf32> -> vector<16x32xf32>
    %cst_93 = arith.constant dense<0.000000e+00> : vector<16xf32>
    %223 = vector.multi_reduction <add>, %221, %cst_93 [0] : vector<2x16xf32> to vector<16xf32>
    %224 = vector.shape_cast %223 : vector<16xf32> to vector<1x16xf32>
    %cst_94 = arith.constant dense<0.000000e+00> : vector<2x32xf32>
    %225 = tpu.matmul %221, %174, %cst_94 {dimension_numbers = #tpu.dot_dimension_numbers<[1], [0], [0], [1], [0, 0, 1, 1], [], []>} : vector<2x16xf32>, vector<16x32xf32>, vector<2x32xf32> -> vector<2x32xf32>
    %cst_95 = arith.constant 1.000000e+00 : f32
    %226 = vector.broadcast %cst_95 : f32 to vector<2x32xf32>
    %227 = arith.subf %226, %214 : vector<2x32xf32>
    %228 = arith.mulf %209, %227 : vector<2x32xf32>
    %cst_96 = arith.constant 1.000000e+00 : f32
    %229 = vector.broadcast %cst_96 : f32 to vector<2x32xf32>
    %230 = arith.addf %229, %228 : vector<2x32xf32>
    %231 = arith.mulf %214, %230 : vector<2x32xf32>
    %232 = arith.mulf %225, %231 : vector<2x32xf32>
    %cst_97 = arith.constant dense<0.000000e+00> : vector<32x16xf32>
    %233 = tpu.matmul %232, %202, %cst_97 {dimension_numbers = #tpu.dot_dimension_numbers<[0], [0], [1], [1], [0, 1, 1, 1], [], []>} : vector<2x32xf32>, vector<2x16xf32>, vector<32x16xf32> -> vector<32x16xf32>
    %cst_98 = arith.constant dense<0.000000e+00> : vector<32xf32>
    %234 = vector.multi_reduction <add>, %232, %cst_98 [0] : vector<2x32xf32> to vector<32xf32>
    %235 = vector.shape_cast %234 : vector<32xf32> to vector<1x32xf32>
    %236 = vector.broadcast %198 : f32 to vector<32x16xf32>
    %237 = arith.mulf %236, %149 : vector<32x16xf32>
    %238 = vector.broadcast %200 : f32 to vector<32x16xf32>
    %239 = arith.mulf %238, %233 : vector<32x16xf32>
    %240 = arith.subf %237, %239 : vector<32x16xf32>
    %241 = vector.broadcast %198 : f32 to vector<1x32xf32>
    %242 = arith.mulf %241, %154 : vector<1x32xf32>
    %243 = vector.broadcast %200 : f32 to vector<1x32xf32>
    %244 = arith.mulf %243, %235 : vector<1x32xf32>
    %245 = arith.subf %242, %244 : vector<1x32xf32>
    %246 = vector.broadcast %198 : f32 to vector<16x32xf32>
    %247 = arith.mulf %246, %159 : vector<16x32xf32>
    %248 = vector.broadcast %200 : f32 to vector<16x32xf32>
    %249 = arith.mulf %248, %222 : vector<16x32xf32>
    %250 = arith.subf %247, %249 : vector<16x32xf32>
    %251 = vector.broadcast %198 : f32 to vector<1x16xf32>
    %252 = arith.mulf %251, %164 : vector<1x16xf32>
    %253 = vector.broadcast %200 : f32 to vector<1x16xf32>
    %254 = arith.mulf %253, %224 : vector<1x16xf32>
    %255 = arith.subf %252, %254 : vector<1x16xf32>
    %cst_99 = arith.constant 1.000000e+00 : f32
    %256 = arith.subf %cst_99, %196 : f32
    %257 = vector.broadcast %256 : f32 to vector<32x16xf32>
    %258 = arith.mulf %257, %168 : vector<32x16xf32>
    %259 = arith.addf %258, %240 : vector<32x16xf32>
    %260 = vector.broadcast %256 : f32 to vector<1x32xf32>
    %261 = arith.mulf %260, %171 : vector<1x32xf32>
    %262 = arith.addf %261, %245 : vector<1x32xf32>
    %263 = vector.broadcast %256 : f32 to vector<16x32xf32>
    %264 = arith.mulf %263, %174 : vector<16x32xf32>
    %265 = arith.addf %264, %250 : vector<16x32xf32>
    %266 = vector.broadcast %256 : f32 to vector<1x16xf32>
    %267 = arith.mulf %266, %177 : vector<1x16xf32>
    %268 = arith.addf %267, %255 : vector<1x16xf32>
    %cst_100 = arith.constant dense<0.000000e+00> : vector<2x32xf32>
    %269 = tpu.matmul %206, %259, %cst_100 {dimension_numbers = #tpu.dot_dimension_numbers<[1], [1], [0], [0], [0, 0, 1, 0], [], []>} : vector<2x16xf32>, vector<32x16xf32>, vector<2x32xf32> -> vector<2x32xf32>
    %270 = vector.broadcast %262 : vector<1x32xf32> to vector<2x32xf32>
    %271 = arith.addf %269, %270 : vector<2x32xf32>
    %272 = arith.negf %271 : vector<2x32xf32>
    %273 = math.exp %272 : vector<2x32xf32>
    %cst_101 = arith.constant 1.000000e+00 : f32
    %274 = vector.broadcast %cst_101 : f32 to vector<2x32xf32>
    %275 = arith.addf %274, %273 : vector<2x32xf32>
    %276 = arith.divf %274, %275 : vector<2x32xf32>
    %277 = arith.mulf %271, %276 : vector<2x32xf32>
    %cst_102 = arith.constant dense<0.000000e+00> : vector<2x16xf32>
    %278 = tpu.matmul %277, %265, %cst_102 {dimension_numbers = #tpu.dot_dimension_numbers<[1], [1], [0], [0], [0, 0, 1, 0], [], []>} : vector<2x32xf32>, vector<16x32xf32>, vector<2x16xf32> -> vector<2x16xf32>
    %279 = vector.broadcast %268 : vector<1x16xf32> to vector<2x16xf32>
    %280 = arith.addf %278, %279 : vector<2x16xf32>
    %c2_103 = arith.constant 2 : index
    %c0_104 = arith.constant 0 : index
    %c0_105 = arith.constant 0 : index
    %281 = vector.load %arg9[%c2_103, %c0_104, %c0_105] : memref<8x2x16xf32, #tpu.memory_space<vmem>>, vector<1x2x16xf32>
    %282 = vector.shape_cast %281 : vector<1x2x16xf32> to vector<2x16xf32>
    %283 = vector.shape_cast %280 : vector<2x16xf32> to vector<1x2x16xf32>
    tpu.vector_store %arg9[%c2_103, %c0_104, %c0_105], %283 {strides = array<i32>} : memref<8x2x16xf32, #tpu.memory_space<vmem>>, vector<1x2x16xf32>,
    %c8_i32_106 = arith.constant 8 : i32
    %284 = arith.muli %arg0, %c8_i32_106 : i32
    %c3_i32 = arith.constant 3 : i32
    %285 = arith.addi %284, %c3_i32 : i32
    %c0_107 = arith.constant 0 : index
    %286 = arith.index_cast %285 : i32 to index
    %287 = memref.load %arg1[%c0_107, %286] : memref<3x8xf32, #tpu.memory_space<smem>>
    %c1_108 = arith.constant 1 : index
    %288 = arith.index_cast %285 : i32 to index
    %289 = memref.load %arg1[%c1_108, %288] : memref<3x8xf32, #tpu.memory_space<smem>>
    %c2_109 = arith.constant 2 : index
    %290 = arith.index_cast %285 : i32 to index
    %291 = memref.load %arg1[%c2_109, %290] : memref<3x8xf32, #tpu.memory_space<smem>>
    %c3 = arith.constant 3 : index
    %c0_110 = arith.constant 0 : index
    %c0_111 = arith.constant 0 : index
    %292 = vector.load %arg2[%c3, %c0_110, %c0_111] : memref<8x2x16xf32, #tpu.memory_space<vmem>>, vector<1x2x16xf32>
    %293 = vector.shape_cast %292 : vector<1x2x16xf32> to vector<2x16xf32>
    %c3_112 = arith.constant 3 : index
    %c0_113 = arith.constant 0 : index
    %c0_114 = arith.constant 0 : index
    %294 = vector.load %arg3[%c3_112, %c0_113, %c0_114] : memref<8x2x16xf32, #tpu.memory_space<vmem>>, vector<1x2x16xf32>
    %295 = vector.shape_cast %294 : vector<1x2x16xf32> to vector<2x16xf32>
    %c3_115 = arith.constant 3 : index
    %c0_116 = arith.constant 0 : index
    %c0_117 = arith.constant 0 : index
    %296 = vector.load %arg4[%c3_115, %c0_116, %c0_117] : memref<8x2x16xf32, #tpu.memory_space<vmem>>, vector<1x2x16xf32>
    %297 = vector.shape_cast %296 : vector<1x2x16xf32> to vector<2x16xf32>
    %cst_118 = arith.constant dense<0.000000e+00> : vector<2x32xf32>
    %298 = tpu.matmul %293, %259, %cst_118 {dimension_numbers = #tpu.dot_dimension_numbers<[1], [1], [0], [0], [0, 0, 1, 0], [], []>} : vector<2x16xf32>, vector<32x16xf32>, vector<2x32xf32> -> vector<2x32xf32>
    %299 = vector.broadcast %262 : vector<1x32xf32> to vector<2x32xf32>
    %300 = arith.addf %298, %299 : vector<2x32xf32>
    %301 = arith.negf %300 : vector<2x32xf32>
    %302 = math.exp %301 : vector<2x32xf32>
    %cst_119 = arith.constant 1.000000e+00 : f32
    %303 = vector.broadcast %cst_119 : f32 to vector<2x32xf32>
    %304 = arith.addf %303, %302 : vector<2x32xf32>
    %305 = arith.divf %303, %304 : vector<2x32xf32>
    %306 = arith.mulf %300, %305 : vector<2x32xf32>
    %cst_120 = arith.constant dense<0.000000e+00> : vector<2x16xf32>
    %307 = tpu.matmul %306, %265, %cst_120 {dimension_numbers = #tpu.dot_dimension_numbers<[1], [1], [0], [0], [0, 0, 1, 0], [], []>} : vector<2x32xf32>, vector<16x32xf32>, vector<2x16xf32> -> vector<2x16xf32>
    %308 = vector.broadcast %268 : vector<1x16xf32> to vector<2x16xf32>
    %309 = arith.addf %307, %308 : vector<2x16xf32>
    %310 = arith.subf %309, %295 : vector<2x16xf32>
    %cst_121 = arith.constant 6.250000e-02 : f32
    %311 = vector.broadcast %cst_121 : f32 to vector<2x16xf32>
    %312 = arith.mulf %311, %310 : vector<2x16xf32>
    %cst_122 = arith.constant dense<0.000000e+00> : vector<16x32xf32>
    %313 = tpu.matmul %312, %306, %cst_122 {dimension_numbers = #tpu.dot_dimension_numbers<[0], [0], [1], [1], [0, 1, 1, 1], [], []>} : vector<2x16xf32>, vector<2x32xf32>, vector<16x32xf32> -> vector<16x32xf32>
    %cst_123 = arith.constant dense<0.000000e+00> : vector<16xf32>
    %314 = vector.multi_reduction <add>, %312, %cst_123 [0] : vector<2x16xf32> to vector<16xf32>
    %315 = vector.shape_cast %314 : vector<16xf32> to vector<1x16xf32>
    %cst_124 = arith.constant dense<0.000000e+00> : vector<2x32xf32>
    %316 = tpu.matmul %312, %265, %cst_124 {dimension_numbers = #tpu.dot_dimension_numbers<[1], [0], [0], [1], [0, 0, 1, 1], [], []>} : vector<2x16xf32>, vector<16x32xf32>, vector<2x32xf32> -> vector<2x32xf32>
    %cst_125 = arith.constant 1.000000e+00 : f32
    %317 = vector.broadcast %cst_125 : f32 to vector<2x32xf32>
    %318 = arith.subf %317, %305 : vector<2x32xf32>
    %319 = arith.mulf %300, %318 : vector<2x32xf32>
    %cst_126 = arith.constant 1.000000e+00 : f32
    %320 = vector.broadcast %cst_126 : f32 to vector<2x32xf32>
    %321 = arith.addf %320, %319 : vector<2x32xf32>
    %322 = arith.mulf %305, %321 : vector<2x32xf32>
    %323 = arith.mulf %316, %322 : vector<2x32xf32>
    %cst_127 = arith.constant dense<0.000000e+00> : vector<32x16xf32>
    %324 = tpu.matmul %323, %293, %cst_127 {dimension_numbers = #tpu.dot_dimension_numbers<[0], [0], [1], [1], [0, 1, 1, 1], [], []>} : vector<2x32xf32>, vector<2x16xf32>, vector<32x16xf32> -> vector<32x16xf32>
    %cst_128 = arith.constant dense<0.000000e+00> : vector<32xf32>
    %325 = vector.multi_reduction <add>, %323, %cst_128 [0] : vector<2x32xf32> to vector<32xf32>
    %326 = vector.shape_cast %325 : vector<32xf32> to vector<1x32xf32>
    %327 = vector.broadcast %289 : f32 to vector<32x16xf32>
    %328 = arith.mulf %327, %240 : vector<32x16xf32>
    %329 = vector.broadcast %291 : f32 to vector<32x16xf32>
    %330 = arith.mulf %329, %324 : vector<32x16xf32>
    %331 = arith.subf %328, %330 : vector<32x16xf32>
    %332 = vector.broadcast %289 : f32 to vector<1x32xf32>
    %333 = arith.mulf %332, %245 : vector<1x32xf32>
    %334 = vector.broadcast %291 : f32 to vector<1x32xf32>
    %335 = arith.mulf %334, %326 : vector<1x32xf32>
    %336 = arith.subf %333, %335 : vector<1x32xf32>
    %337 = vector.broadcast %289 : f32 to vector<16x32xf32>
    %338 = arith.mulf %337, %250 : vector<16x32xf32>
    %339 = vector.broadcast %291 : f32 to vector<16x32xf32>
    %340 = arith.mulf %339, %313 : vector<16x32xf32>
    %341 = arith.subf %338, %340 : vector<16x32xf32>
    %342 = vector.broadcast %289 : f32 to vector<1x16xf32>
    %343 = arith.mulf %342, %255 : vector<1x16xf32>
    %344 = vector.broadcast %291 : f32 to vector<1x16xf32>
    %345 = arith.mulf %344, %315 : vector<1x16xf32>
    %346 = arith.subf %343, %345 : vector<1x16xf32>
    %cst_129 = arith.constant 1.000000e+00 : f32
    %347 = arith.subf %cst_129, %287 : f32
    %348 = vector.broadcast %347 : f32 to vector<32x16xf32>
    %349 = arith.mulf %348, %259 : vector<32x16xf32>
    %350 = arith.addf %349, %331 : vector<32x16xf32>
    %351 = vector.broadcast %347 : f32 to vector<1x32xf32>
    %352 = arith.mulf %351, %262 : vector<1x32xf32>
    %353 = arith.addf %352, %336 : vector<1x32xf32>
    %354 = vector.broadcast %347 : f32 to vector<16x32xf32>
    %355 = arith.mulf %354, %265 : vector<16x32xf32>
    %356 = arith.addf %355, %341 : vector<16x32xf32>
    %357 = vector.broadcast %347 : f32 to vector<1x16xf32>
    %358 = arith.mulf %357, %268 : vector<1x16xf32>
    %359 = arith.addf %358, %346 : vector<1x16xf32>
    %cst_130 = arith.constant dense<0.000000e+00> : vector<2x32xf32>
    %360 = tpu.matmul %297, %350, %cst_130 {dimension_numbers = #tpu.dot_dimension_numbers<[1], [1], [0], [0], [0, 0, 1, 0], [], []>} : vector<2x16xf32>, vector<32x16xf32>, vector<2x32xf32> -> vector<2x32xf32>
    %361 = vector.broadcast %353 : vector<1x32xf32> to vector<2x32xf32>
    %362 = arith.addf %360, %361 : vector<2x32xf32>
    %363 = arith.negf %362 : vector<2x32xf32>
    %364 = math.exp %363 : vector<2x32xf32>
    %cst_131 = arith.constant 1.000000e+00 : f32
    %365 = vector.broadcast %cst_131 : f32 to vector<2x32xf32>
    %366 = arith.addf %365, %364 : vector<2x32xf32>
    %367 = arith.divf %365, %366 : vector<2x32xf32>
    %368 = arith.mulf %362, %367 : vector<2x32xf32>
    %cst_132 = arith.constant dense<0.000000e+00> : vector<2x16xf32>
    %369 = tpu.matmul %368, %356, %cst_132 {dimension_numbers = #tpu.dot_dimension_numbers<[1], [1], [0], [0], [0, 0, 1, 0], [], []>} : vector<2x32xf32>, vector<16x32xf32>, vector<2x16xf32> -> vector<2x16xf32>
    %370 = vector.broadcast %359 : vector<1x16xf32> to vector<2x16xf32>
    %371 = arith.addf %369, %370 : vector<2x16xf32>
    %c3_133 = arith.constant 3 : index
    %c0_134 = arith.constant 0 : index
    %c0_135 = arith.constant 0 : index
    %372 = vector.load %arg9[%c3_133, %c0_134, %c0_135] : memref<8x2x16xf32, #tpu.memory_space<vmem>>, vector<1x2x16xf32>
    %373 = vector.shape_cast %372 : vector<1x2x16xf32> to vector<2x16xf32>
    %374 = vector.shape_cast %371 : vector<2x16xf32> to vector<1x2x16xf32>
    tpu.vector_store %arg9[%c3_133, %c0_134, %c0_135], %374 {strides = array<i32>} : memref<8x2x16xf32, #tpu.memory_space<vmem>>, vector<1x2x16xf32>,
    %c8_i32_136 = arith.constant 8 : i32
    %375 = arith.muli %arg0, %c8_i32_136 : i32
    %c4_i32 = arith.constant 4 : i32
    %376 = arith.addi %375, %c4_i32 : i32
    %c0_137 = arith.constant 0 : index
    %377 = arith.index_cast %376 : i32 to index
    %378 = memref.load %arg1[%c0_137, %377] : memref<3x8xf32, #tpu.memory_space<smem>>
    %c1_138 = arith.constant 1 : index
    %379 = arith.index_cast %376 : i32 to index
    %380 = memref.load %arg1[%c1_138, %379] : memref<3x8xf32, #tpu.memory_space<smem>>
    %c2_139 = arith.constant 2 : index
    %381 = arith.index_cast %376 : i32 to index
    %382 = memref.load %arg1[%c2_139, %381] : memref<3x8xf32, #tpu.memory_space<smem>>
    %c4 = arith.constant 4 : index
    %c0_140 = arith.constant 0 : index
    %c0_141 = arith.constant 0 : index
    %383 = vector.load %arg2[%c4, %c0_140, %c0_141] : memref<8x2x16xf32, #tpu.memory_space<vmem>>, vector<1x2x16xf32>
    %384 = vector.shape_cast %383 : vector<1x2x16xf32> to vector<2x16xf32>
    %c4_142 = arith.constant 4 : index
    %c0_143 = arith.constant 0 : index
    %c0_144 = arith.constant 0 : index
    %385 = vector.load %arg3[%c4_142, %c0_143, %c0_144] : memref<8x2x16xf32, #tpu.memory_space<vmem>>, vector<1x2x16xf32>
    %386 = vector.shape_cast %385 : vector<1x2x16xf32> to vector<2x16xf32>
    %c4_145 = arith.constant 4 : index
    %c0_146 = arith.constant 0 : index
    %c0_147 = arith.constant 0 : index
    %387 = vector.load %arg4[%c4_145, %c0_146, %c0_147] : memref<8x2x16xf32, #tpu.memory_space<vmem>>, vector<1x2x16xf32>
    %388 = vector.shape_cast %387 : vector<1x2x16xf32> to vector<2x16xf32>
    %cst_148 = arith.constant dense<0.000000e+00> : vector<2x32xf32>
    %389 = tpu.matmul %384, %350, %cst_148 {dimension_numbers = #tpu.dot_dimension_numbers<[1], [1], [0], [0], [0, 0, 1, 0], [], []>} : vector<2x16xf32>, vector<32x16xf32>, vector<2x32xf32> -> vector<2x32xf32>
    %390 = vector.broadcast %353 : vector<1x32xf32> to vector<2x32xf32>
    %391 = arith.addf %389, %390 : vector<2x32xf32>
    %392 = arith.negf %391 : vector<2x32xf32>
    %393 = math.exp %392 : vector<2x32xf32>
    %cst_149 = arith.constant 1.000000e+00 : f32
    %394 = vector.broadcast %cst_149 : f32 to vector<2x32xf32>
    %395 = arith.addf %394, %393 : vector<2x32xf32>
    %396 = arith.divf %394, %395 : vector<2x32xf32>
    %397 = arith.mulf %391, %396 : vector<2x32xf32>
    %cst_150 = arith.constant dense<0.000000e+00> : vector<2x16xf32>
    %398 = tpu.matmul %397, %356, %cst_150 {dimension_numbers = #tpu.dot_dimension_numbers<[1], [1], [0], [0], [0, 0, 1, 0], [], []>} : vector<2x32xf32>, vector<16x32xf32>, vector<2x16xf32> -> vector<2x16xf32>
    %399 = vector.broadcast %359 : vector<1x16xf32> to vector<2x16xf32>
    %400 = arith.addf %398, %399 : vector<2x16xf32>
    %401 = arith.subf %400, %386 : vector<2x16xf32>
    %cst_151 = arith.constant 6.250000e-02 : f32
    %402 = vector.broadcast %cst_151 : f32 to vector<2x16xf32>
    %403 = arith.mulf %402, %401 : vector<2x16xf32>
    %cst_152 = arith.constant dense<0.000000e+00> : vector<16x32xf32>
    %404 = tpu.matmul %403, %397, %cst_152 {dimension_numbers = #tpu.dot_dimension_numbers<[0], [0], [1], [1], [0, 1, 1, 1], [], []>} : vector<2x16xf32>, vector<2x32xf32>, vector<16x32xf32> -> vector<16x32xf32>
    %cst_153 = arith.constant dense<0.000000e+00> : vector<16xf32>
    %405 = vector.multi_reduction <add>, %403, %cst_153 [0] : vector<2x16xf32> to vector<16xf32>
    %406 = vector.shape_cast %405 : vector<16xf32> to vector<1x16xf32>
    %cst_154 = arith.constant dense<0.000000e+00> : vector<2x32xf32>
    %407 = tpu.matmul %403, %356, %cst_154 {dimension_numbers = #tpu.dot_dimension_numbers<[1], [0], [0], [1], [0, 0, 1, 1], [], []>} : vector<2x16xf32>, vector<16x32xf32>, vector<2x32xf32> -> vector<2x32xf32>
    %cst_155 = arith.constant 1.000000e+00 : f32
    %408 = vector.broadcast %cst_155 : f32 to vector<2x32xf32>
    %409 = arith.subf %408, %396 : vector<2x32xf32>
    %410 = arith.mulf %391, %409 : vector<2x32xf32>
    %cst_156 = arith.constant 1.000000e+00 : f32
    %411 = vector.broadcast %cst_156 : f32 to vector<2x32xf32>
    %412 = arith.addf %411, %410 : vector<2x32xf32>
    %413 = arith.mulf %396, %412 : vector<2x32xf32>
    %414 = arith.mulf %407, %413 : vector<2x32xf32>
    %cst_157 = arith.constant dense<0.000000e+00> : vector<32x16xf32>
    %415 = tpu.matmul %414, %384, %cst_157 {dimension_numbers = #tpu.dot_dimension_numbers<[0], [0], [1], [1], [0, 1, 1, 1], [], []>} : vector<2x32xf32>, vector<2x16xf32>, vector<32x16xf32> -> vector<32x16xf32>
    %cst_158 = arith.constant dense<0.000000e+00> : vector<32xf32>
    %416 = vector.multi_reduction <add>, %414, %cst_158 [0] : vector<2x32xf32> to vector<32xf32>
    %417 = vector.shape_cast %416 : vector<32xf32> to vector<1x32xf32>
    %418 = vector.broadcast %380 : f32 to vector<32x16xf32>
    %419 = arith.mulf %418, %331 : vector<32x16xf32>
    %420 = vector.broadcast %382 : f32 to vector<32x16xf32>
    %421 = arith.mulf %420, %415 : vector<32x16xf32>
    %422 = arith.subf %419, %421 : vector<32x16xf32>
    %423 = vector.broadcast %380 : f32 to vector<1x32xf32>
    %424 = arith.mulf %423, %336 : vector<1x32xf32>
    %425 = vector.broadcast %382 : f32 to vector<1x32xf32>
    %426 = arith.mulf %425, %417 : vector<1x32xf32>
    %427 = arith.subf %424, %426 : vector<1x32xf32>
    %428 = vector.broadcast %380 : f32 to vector<16x32xf32>
    %429 = arith.mulf %428, %341 : vector<16x32xf32>
    %430 = vector.broadcast %382 : f32 to vector<16x32xf32>
    %431 = arith.mulf %430, %404 : vector<16x32xf32>
    %432 = arith.subf %429, %431 : vector<16x32xf32>
    %433 = vector.broadcast %380 : f32 to vector<1x16xf32>
    %434 = arith.mulf %433, %346 : vector<1x16xf32>
    %435 = vector.broadcast %382 : f32 to vector<1x16xf32>
    %436 = arith.mulf %435, %406 : vector<1x16xf32>
    %437 = arith.subf %434, %436 : vector<1x16xf32>
    %cst_159 = arith.constant 1.000000e+00 : f32
    %438 = arith.subf %cst_159, %378 : f32
    %439 = vector.broadcast %438 : f32 to vector<32x16xf32>
    %440 = arith.mulf %439, %350 : vector<32x16xf32>
    %441 = arith.addf %440, %422 : vector<32x16xf32>
    %442 = vector.broadcast %438 : f32 to vector<1x32xf32>
    %443 = arith.mulf %442, %353 : vector<1x32xf32>
    %444 = arith.addf %443, %427 : vector<1x32xf32>
    %445 = vector.broadcast %438 : f32 to vector<16x32xf32>
    %446 = arith.mulf %445, %356 : vector<16x32xf32>
    %447 = arith.addf %446, %432 : vector<16x32xf32>
    %448 = vector.broadcast %438 : f32 to vector<1x16xf32>
    %449 = arith.mulf %448, %359 : vector<1x16xf32>
    %450 = arith.addf %449, %437 : vector<1x16xf32>
    %cst_160 = arith.constant dense<0.000000e+00> : vector<2x32xf32>
    %451 = tpu.matmul %388, %441, %cst_160 {dimension_numbers = #tpu.dot_dimension_numbers<[1], [1], [0], [0], [0, 0, 1, 0], [], []>} : vector<2x16xf32>, vector<32x16xf32>, vector<2x32xf32> -> vector<2x32xf32>
    %452 = vector.broadcast %444 : vector<1x32xf32> to vector<2x32xf32>
    %453 = arith.addf %451, %452 : vector<2x32xf32>
    %454 = arith.negf %453 : vector<2x32xf32>
    %455 = math.exp %454 : vector<2x32xf32>
    %cst_161 = arith.constant 1.000000e+00 : f32
    %456 = vector.broadcast %cst_161 : f32 to vector<2x32xf32>
    %457 = arith.addf %456, %455 : vector<2x32xf32>
    %458 = arith.divf %456, %457 : vector<2x32xf32>
    %459 = arith.mulf %453, %458 : vector<2x32xf32>
    %cst_162 = arith.constant dense<0.000000e+00> : vector<2x16xf32>
    %460 = tpu.matmul %459, %447, %cst_162 {dimension_numbers = #tpu.dot_dimension_numbers<[1], [1], [0], [0], [0, 0, 1, 0], [], []>} : vector<2x32xf32>, vector<16x32xf32>, vector<2x16xf32> -> vector<2x16xf32>
    %461 = vector.broadcast %450 : vector<1x16xf32> to vector<2x16xf32>
    %462 = arith.addf %460, %461 : vector<2x16xf32>
    %c4_163 = arith.constant 4 : index
    %c0_164 = arith.constant 0 : index
    %c0_165 = arith.constant 0 : index
    %463 = vector.load %arg9[%c4_163, %c0_164, %c0_165] : memref<8x2x16xf32, #tpu.memory_space<vmem>>, vector<1x2x16xf32>
    %464 = vector.shape_cast %463 : vector<1x2x16xf32> to vector<2x16xf32>
    %465 = vector.shape_cast %462 : vector<2x16xf32> to vector<1x2x16xf32>
    tpu.vector_store %arg9[%c4_163, %c0_164, %c0_165], %465 {strides = array<i32>} : memref<8x2x16xf32, #tpu.memory_space<vmem>>, vector<1x2x16xf32>,
    %c8_i32_166 = arith.constant 8 : i32
    %466 = arith.muli %arg0, %c8_i32_166 : i32
    %c5_i32 = arith.constant 5 : i32
    %467 = arith.addi %466, %c5_i32 : i32
    %c0_167 = arith.constant 0 : index
    %468 = arith.index_cast %467 : i32 to index
    %469 = memref.load %arg1[%c0_167, %468] : memref<3x8xf32, #tpu.memory_space<smem>>
    %c1_168 = arith.constant 1 : index
    %470 = arith.index_cast %467 : i32 to index
    %471 = memref.load %arg1[%c1_168, %470] : memref<3x8xf32, #tpu.memory_space<smem>>
    %c2_169 = arith.constant 2 : index
    %472 = arith.index_cast %467 : i32 to index
    %473 = memref.load %arg1[%c2_169, %472] : memref<3x8xf32, #tpu.memory_space<smem>>
    %c5 = arith.constant 5 : index
    %c0_170 = arith.constant 0 : index
    %c0_171 = arith.constant 0 : index
    %474 = vector.load %arg2[%c5, %c0_170, %c0_171] : memref<8x2x16xf32, #tpu.memory_space<vmem>>, vector<1x2x16xf32>
    %475 = vector.shape_cast %474 : vector<1x2x16xf32> to vector<2x16xf32>
    %c5_172 = arith.constant 5 : index
    %c0_173 = arith.constant 0 : index
    %c0_174 = arith.constant 0 : index
    %476 = vector.load %arg3[%c5_172, %c0_173, %c0_174] : memref<8x2x16xf32, #tpu.memory_space<vmem>>, vector<1x2x16xf32>
    %477 = vector.shape_cast %476 : vector<1x2x16xf32> to vector<2x16xf32>
    %c5_175 = arith.constant 5 : index
    %c0_176 = arith.constant 0 : index
    %c0_177 = arith.constant 0 : index
    %478 = vector.load %arg4[%c5_175, %c0_176, %c0_177] : memref<8x2x16xf32, #tpu.memory_space<vmem>>, vector<1x2x16xf32>
    %479 = vector.shape_cast %478 : vector<1x2x16xf32> to vector<2x16xf32>
    %cst_178 = arith.constant dense<0.000000e+00> : vector<2x32xf32>
    %480 = tpu.matmul %475, %441, %cst_178 {dimension_numbers = #tpu.dot_dimension_numbers<[1], [1], [0], [0], [0, 0, 1, 0], [], []>} : vector<2x16xf32>, vector<32x16xf32>, vector<2x32xf32> -> vector<2x32xf32>
    %481 = vector.broadcast %444 : vector<1x32xf32> to vector<2x32xf32>
    %482 = arith.addf %480, %481 : vector<2x32xf32>
    %483 = arith.negf %482 : vector<2x32xf32>
    %484 = math.exp %483 : vector<2x32xf32>
    %cst_179 = arith.constant 1.000000e+00 : f32
    %485 = vector.broadcast %cst_179 : f32 to vector<2x32xf32>
    %486 = arith.addf %485, %484 : vector<2x32xf32>
    %487 = arith.divf %485, %486 : vector<2x32xf32>
    %488 = arith.mulf %482, %487 : vector<2x32xf32>
    %cst_180 = arith.constant dense<0.000000e+00> : vector<2x16xf32>
    %489 = tpu.matmul %488, %447, %cst_180 {dimension_numbers = #tpu.dot_dimension_numbers<[1], [1], [0], [0], [0, 0, 1, 0], [], []>} : vector<2x32xf32>, vector<16x32xf32>, vector<2x16xf32> -> vector<2x16xf32>
    %490 = vector.broadcast %450 : vector<1x16xf32> to vector<2x16xf32>
    %491 = arith.addf %489, %490 : vector<2x16xf32>
    %492 = arith.subf %491, %477 : vector<2x16xf32>
    %cst_181 = arith.constant 6.250000e-02 : f32
    %493 = vector.broadcast %cst_181 : f32 to vector<2x16xf32>
    %494 = arith.mulf %493, %492 : vector<2x16xf32>
    %cst_182 = arith.constant dense<0.000000e+00> : vector<16x32xf32>
    %495 = tpu.matmul %494, %488, %cst_182 {dimension_numbers = #tpu.dot_dimension_numbers<[0], [0], [1], [1], [0, 1, 1, 1], [], []>} : vector<2x16xf32>, vector<2x32xf32>, vector<16x32xf32> -> vector<16x32xf32>
    %cst_183 = arith.constant dense<0.000000e+00> : vector<16xf32>
    %496 = vector.multi_reduction <add>, %494, %cst_183 [0] : vector<2x16xf32> to vector<16xf32>
    %497 = vector.shape_cast %496 : vector<16xf32> to vector<1x16xf32>
    %cst_184 = arith.constant dense<0.000000e+00> : vector<2x32xf32>
    %498 = tpu.matmul %494, %447, %cst_184 {dimension_numbers = #tpu.dot_dimension_numbers<[1], [0], [0], [1], [0, 0, 1, 1], [], []>} : vector<2x16xf32>, vector<16x32xf32>, vector<2x32xf32> -> vector<2x32xf32>
    %cst_185 = arith.constant 1.000000e+00 : f32
    %499 = vector.broadcast %cst_185 : f32 to vector<2x32xf32>
    %500 = arith.subf %499, %487 : vector<2x32xf32>
    %501 = arith.mulf %482, %500 : vector<2x32xf32>
    %cst_186 = arith.constant 1.000000e+00 : f32
    %502 = vector.broadcast %cst_186 : f32 to vector<2x32xf32>
    %503 = arith.addf %502, %501 : vector<2x32xf32>
    %504 = arith.mulf %487, %503 : vector<2x32xf32>
    %505 = arith.mulf %498, %504 : vector<2x32xf32>
    %cst_187 = arith.constant dense<0.000000e+00> : vector<32x16xf32>
    %506 = tpu.matmul %505, %475, %cst_187 {dimension_numbers = #tpu.dot_dimension_numbers<[0], [0], [1], [1], [0, 1, 1, 1], [], []>} : vector<2x32xf32>, vector<2x16xf32>, vector<32x16xf32> -> vector<32x16xf32>
    %cst_188 = arith.constant dense<0.000000e+00> : vector<32xf32>
    %507 = vector.multi_reduction <add>, %505, %cst_188 [0] : vector<2x32xf32> to vector<32xf32>
    %508 = vector.shape_cast %507 : vector<32xf32> to vector<1x32xf32>
    %509 = vector.broadcast %471 : f32 to vector<32x16xf32>
    %510 = arith.mulf %509, %422 : vector<32x16xf32>
    %511 = vector.broadcast %473 : f32 to vector<32x16xf32>
    %512 = arith.mulf %511, %506 : vector<32x16xf32>
    %513 = arith.subf %510, %512 : vector<32x16xf32>
    %514 = vector.broadcast %471 : f32 to vector<1x32xf32>
    %515 = arith.mulf %514, %427 : vector<1x32xf32>
    %516 = vector.broadcast %473 : f32 to vector<1x32xf32>
    %517 = arith.mulf %516, %508 : vector<1x32xf32>
    %518 = arith.subf %515, %517 : vector<1x32xf32>
    %519 = vector.broadcast %471 : f32 to vector<16x32xf32>
    %520 = arith.mulf %519, %432 : vector<16x32xf32>
    %521 = vector.broadcast %473 : f32 to vector<16x32xf32>
    %522 = arith.mulf %521, %495 : vector<16x32xf32>
    %523 = arith.subf %520, %522 : vector<16x32xf32>
    %524 = vector.broadcast %471 : f32 to vector<1x16xf32>
    %525 = arith.mulf %524, %437 : vector<1x16xf32>
    %526 = vector.broadcast %473 : f32 to vector<1x16xf32>
    %527 = arith.mulf %526, %497 : vector<1x16xf32>
    %528 = arith.subf %525, %527 : vector<1x16xf32>
    %cst_189 = arith.constant 1.000000e+00 : f32
    %529 = arith.subf %cst_189, %469 : f32
    %530 = vector.broadcast %529 : f32 to vector<32x16xf32>
    %531 = arith.mulf %530, %441 : vector<32x16xf32>
    %532 = arith.addf %531, %513 : vector<32x16xf32>
    %533 = vector.broadcast %529 : f32 to vector<1x32xf32>
    %534 = arith.mulf %533, %444 : vector<1x32xf32>
    %535 = arith.addf %534, %518 : vector<1x32xf32>
    %536 = vector.broadcast %529 : f32 to vector<16x32xf32>
    %537 = arith.mulf %536, %447 : vector<16x32xf32>
    %538 = arith.addf %537, %523 : vector<16x32xf32>
    %539 = vector.broadcast %529 : f32 to vector<1x16xf32>
    %540 = arith.mulf %539, %450 : vector<1x16xf32>
    %541 = arith.addf %540, %528 : vector<1x16xf32>
    %cst_190 = arith.constant dense<0.000000e+00> : vector<2x32xf32>
    %542 = tpu.matmul %479, %532, %cst_190 {dimension_numbers = #tpu.dot_dimension_numbers<[1], [1], [0], [0], [0, 0, 1, 0], [], []>} : vector<2x16xf32>, vector<32x16xf32>, vector<2x32xf32> -> vector<2x32xf32>
    %543 = vector.broadcast %535 : vector<1x32xf32> to vector<2x32xf32>
    %544 = arith.addf %542, %543 : vector<2x32xf32>
    %545 = arith.negf %544 : vector<2x32xf32>
    %546 = math.exp %545 : vector<2x32xf32>
    %cst_191 = arith.constant 1.000000e+00 : f32
    %547 = vector.broadcast %cst_191 : f32 to vector<2x32xf32>
    %548 = arith.addf %547, %546 : vector<2x32xf32>
    %549 = arith.divf %547, %548 : vector<2x32xf32>
    %550 = arith.mulf %544, %549 : vector<2x32xf32>
    %cst_192 = arith.constant dense<0.000000e+00> : vector<2x16xf32>
    %551 = tpu.matmul %550, %538, %cst_192 {dimension_numbers = #tpu.dot_dimension_numbers<[1], [1], [0], [0], [0, 0, 1, 0], [], []>} : vector<2x32xf32>, vector<16x32xf32>, vector<2x16xf32> -> vector<2x16xf32>
    %552 = vector.broadcast %541 : vector<1x16xf32> to vector<2x16xf32>
    %553 = arith.addf %551, %552 : vector<2x16xf32>
    %c5_193 = arith.constant 5 : index
    %c0_194 = arith.constant 0 : index
    %c0_195 = arith.constant 0 : index
    %554 = vector.load %arg9[%c5_193, %c0_194, %c0_195] : memref<8x2x16xf32, #tpu.memory_space<vmem>>, vector<1x2x16xf32>
    %555 = vector.shape_cast %554 : vector<1x2x16xf32> to vector<2x16xf32>
    %556 = vector.shape_cast %553 : vector<2x16xf32> to vector<1x2x16xf32>
    tpu.vector_store %arg9[%c5_193, %c0_194, %c0_195], %556 {strides = array<i32>} : memref<8x2x16xf32, #tpu.memory_space<vmem>>, vector<1x2x16xf32>,
    %c8_i32_196 = arith.constant 8 : i32
    %557 = arith.muli %arg0, %c8_i32_196 : i32
    %c6_i32 = arith.constant 6 : i32
    %558 = arith.addi %557, %c6_i32 : i32
    %c0_197 = arith.constant 0 : index
    %559 = arith.index_cast %558 : i32 to index
    %560 = memref.load %arg1[%c0_197, %559] : memref<3x8xf32, #tpu.memory_space<smem>>
    %c1_198 = arith.constant 1 : index
    %561 = arith.index_cast %558 : i32 to index
    %562 = memref.load %arg1[%c1_198, %561] : memref<3x8xf32, #tpu.memory_space<smem>>
    %c2_199 = arith.constant 2 : index
    %563 = arith.index_cast %558 : i32 to index
    %564 = memref.load %arg1[%c2_199, %563] : memref<3x8xf32, #tpu.memory_space<smem>>
    %c6 = arith.constant 6 : index
    %c0_200 = arith.constant 0 : index
    %c0_201 = arith.constant 0 : index
    %565 = vector.load %arg2[%c6, %c0_200, %c0_201] : memref<8x2x16xf32, #tpu.memory_space<vmem>>, vector<1x2x16xf32>
    %566 = vector.shape_cast %565 : vector<1x2x16xf32> to vector<2x16xf32>
    %c6_202 = arith.constant 6 : index
    %c0_203 = arith.constant 0 : index
    %c0_204 = arith.constant 0 : index
    %567 = vector.load %arg3[%c6_202, %c0_203, %c0_204] : memref<8x2x16xf32, #tpu.memory_space<vmem>>, vector<1x2x16xf32>
    %568 = vector.shape_cast %567 : vector<1x2x16xf32> to vector<2x16xf32>
    %c6_205 = arith.constant 6 : index
    %c0_206 = arith.constant 0 : index
    %c0_207 = arith.constant 0 : index
    %569 = vector.load %arg4[%c6_205, %c0_206, %c0_207] : memref<8x2x16xf32, #tpu.memory_space<vmem>>, vector<1x2x16xf32>
    %570 = vector.shape_cast %569 : vector<1x2x16xf32> to vector<2x16xf32>
    %cst_208 = arith.constant dense<0.000000e+00> : vector<2x32xf32>
    %571 = tpu.matmul %566, %532, %cst_208 {dimension_numbers = #tpu.dot_dimension_numbers<[1], [1], [0], [0], [0, 0, 1, 0], [], []>} : vector<2x16xf32>, vector<32x16xf32>, vector<2x32xf32> -> vector<2x32xf32>
    %572 = vector.broadcast %535 : vector<1x32xf32> to vector<2x32xf32>
    %573 = arith.addf %571, %572 : vector<2x32xf32>
    %574 = arith.negf %573 : vector<2x32xf32>
    %575 = math.exp %574 : vector<2x32xf32>
    %cst_209 = arith.constant 1.000000e+00 : f32
    %576 = vector.broadcast %cst_209 : f32 to vector<2x32xf32>
    %577 = arith.addf %576, %575 : vector<2x32xf32>
    %578 = arith.divf %576, %577 : vector<2x32xf32>
    %579 = arith.mulf %573, %578 : vector<2x32xf32>
    %cst_210 = arith.constant dense<0.000000e+00> : vector<2x16xf32>
    %580 = tpu.matmul %579, %538, %cst_210 {dimension_numbers = #tpu.dot_dimension_numbers<[1], [1], [0], [0], [0, 0, 1, 0], [], []>} : vector<2x32xf32>, vector<16x32xf32>, vector<2x16xf32> -> vector<2x16xf32>
    %581 = vector.broadcast %541 : vector<1x16xf32> to vector<2x16xf32>
    %582 = arith.addf %580, %581 : vector<2x16xf32>
    %583 = arith.subf %582, %568 : vector<2x16xf32>
    %cst_211 = arith.constant 6.250000e-02 : f32
    %584 = vector.broadcast %cst_211 : f32 to vector<2x16xf32>
    %585 = arith.mulf %584, %583 : vector<2x16xf32>
    %cst_212 = arith.constant dense<0.000000e+00> : vector<16x32xf32>
    %586 = tpu.matmul %585, %579, %cst_212 {dimension_numbers = #tpu.dot_dimension_numbers<[0], [0], [1], [1], [0, 1, 1, 1], [], []>} : vector<2x16xf32>, vector<2x32xf32>, vector<16x32xf32> -> vector<16x32xf32>
    %cst_213 = arith.constant dense<0.000000e+00> : vector<16xf32>
    %587 = vector.multi_reduction <add>, %585, %cst_213 [0] : vector<2x16xf32> to vector<16xf32>
    %588 = vector.shape_cast %587 : vector<16xf32> to vector<1x16xf32>
    %cst_214 = arith.constant dense<0.000000e+00> : vector<2x32xf32>
    %589 = tpu.matmul %585, %538, %cst_214 {dimension_numbers = #tpu.dot_dimension_numbers<[1], [0], [0], [1], [0, 0, 1, 1], [], []>} : vector<2x16xf32>, vector<16x32xf32>, vector<2x32xf32> -> vector<2x32xf32>
    %cst_215 = arith.constant 1.000000e+00 : f32
    %590 = vector.broadcast %cst_215 : f32 to vector<2x32xf32>
    %591 = arith.subf %590, %578 : vector<2x32xf32>
    %592 = arith.mulf %573, %591 : vector<2x32xf32>
    %cst_216 = arith.constant 1.000000e+00 : f32
    %593 = vector.broadcast %cst_216 : f32 to vector<2x32xf32>
    %594 = arith.addf %593, %592 : vector<2x32xf32>
    %595 = arith.mulf %578, %594 : vector<2x32xf32>
    %596 = arith.mulf %589, %595 : vector<2x32xf32>
    %cst_217 = arith.constant dense<0.000000e+00> : vector<32x16xf32>
    %597 = tpu.matmul %596, %566, %cst_217 {dimension_numbers = #tpu.dot_dimension_numbers<[0], [0], [1], [1], [0, 1, 1, 1], [], []>} : vector<2x32xf32>, vector<2x16xf32>, vector<32x16xf32> -> vector<32x16xf32>
    %cst_218 = arith.constant dense<0.000000e+00> : vector<32xf32>
    %598 = vector.multi_reduction <add>, %596, %cst_218 [0] : vector<2x32xf32> to vector<32xf32>
    %599 = vector.shape_cast %598 : vector<32xf32> to vector<1x32xf32>
    %600 = vector.broadcast %562 : f32 to vector<32x16xf32>
    %601 = arith.mulf %600, %513 : vector<32x16xf32>
    %602 = vector.broadcast %564 : f32 to vector<32x16xf32>
    %603 = arith.mulf %602, %597 : vector<32x16xf32>
    %604 = arith.subf %601, %603 : vector<32x16xf32>
    %605 = vector.broadcast %562 : f32 to vector<1x32xf32>
    %606 = arith.mulf %605, %518 : vector<1x32xf32>
    %607 = vector.broadcast %564 : f32 to vector<1x32xf32>
    %608 = arith.mulf %607, %599 : vector<1x32xf32>
    %609 = arith.subf %606, %608 : vector<1x32xf32>
    %610 = vector.broadcast %562 : f32 to vector<16x32xf32>
    %611 = arith.mulf %610, %523 : vector<16x32xf32>
    %612 = vector.broadcast %564 : f32 to vector<16x32xf32>
    %613 = arith.mulf %612, %586 : vector<16x32xf32>
    %614 = arith.subf %611, %613 : vector<16x32xf32>
    %615 = vector.broadcast %562 : f32 to vector<1x16xf32>
    %616 = arith.mulf %615, %528 : vector<1x16xf32>
    %617 = vector.broadcast %564 : f32 to vector<1x16xf32>
    %618 = arith.mulf %617, %588 : vector<1x16xf32>
    %619 = arith.subf %616, %618 : vector<1x16xf32>
    %cst_219 = arith.constant 1.000000e+00 : f32
    %620 = arith.subf %cst_219, %560 : f32
    %621 = vector.broadcast %620 : f32 to vector<32x16xf32>
    %622 = arith.mulf %621, %532 : vector<32x16xf32>
    %623 = arith.addf %622, %604 : vector<32x16xf32>
    %624 = vector.broadcast %620 : f32 to vector<1x32xf32>
    %625 = arith.mulf %624, %535 : vector<1x32xf32>
    %626 = arith.addf %625, %609 : vector<1x32xf32>
    %627 = vector.broadcast %620 : f32 to vector<16x32xf32>
    %628 = arith.mulf %627, %538 : vector<16x32xf32>
    %629 = arith.addf %628, %614 : vector<16x32xf32>
    %630 = vector.broadcast %620 : f32 to vector<1x16xf32>
    %631 = arith.mulf %630, %541 : vector<1x16xf32>
    %632 = arith.addf %631, %619 : vector<1x16xf32>
    %cst_220 = arith.constant dense<0.000000e+00> : vector<2x32xf32>
    %633 = tpu.matmul %570, %623, %cst_220 {dimension_numbers = #tpu.dot_dimension_numbers<[1], [1], [0], [0], [0, 0, 1, 0], [], []>} : vector<2x16xf32>, vector<32x16xf32>, vector<2x32xf32> -> vector<2x32xf32>
    %634 = vector.broadcast %626 : vector<1x32xf32> to vector<2x32xf32>
    %635 = arith.addf %633, %634 : vector<2x32xf32>
    %636 = arith.negf %635 : vector<2x32xf32>
    %637 = math.exp %636 : vector<2x32xf32>
    %cst_221 = arith.constant 1.000000e+00 : f32
    %638 = vector.broadcast %cst_221 : f32 to vector<2x32xf32>
    %639 = arith.addf %638, %637 : vector<2x32xf32>
    %640 = arith.divf %638, %639 : vector<2x32xf32>
    %641 = arith.mulf %635, %640 : vector<2x32xf32>
    %cst_222 = arith.constant dense<0.000000e+00> : vector<2x16xf32>
    %642 = tpu.matmul %641, %629, %cst_222 {dimension_numbers = #tpu.dot_dimension_numbers<[1], [1], [0], [0], [0, 0, 1, 0], [], []>} : vector<2x32xf32>, vector<16x32xf32>, vector<2x16xf32> -> vector<2x16xf32>
    %643 = vector.broadcast %632 : vector<1x16xf32> to vector<2x16xf32>
    %644 = arith.addf %642, %643 : vector<2x16xf32>
    %c6_223 = arith.constant 6 : index
    %c0_224 = arith.constant 0 : index
    %c0_225 = arith.constant 0 : index
    %645 = vector.load %arg9[%c6_223, %c0_224, %c0_225] : memref<8x2x16xf32, #tpu.memory_space<vmem>>, vector<1x2x16xf32>
    %646 = vector.shape_cast %645 : vector<1x2x16xf32> to vector<2x16xf32>
    %647 = vector.shape_cast %644 : vector<2x16xf32> to vector<1x2x16xf32>
    tpu.vector_store %arg9[%c6_223, %c0_224, %c0_225], %647 {strides = array<i32>} : memref<8x2x16xf32, #tpu.memory_space<vmem>>, vector<1x2x16xf32>,
    %c8_i32_226 = arith.constant 8 : i32
    %648 = arith.muli %arg0, %c8_i32_226 : i32
    %c7_i32 = arith.constant 7 : i32
    %649 = arith.addi %648, %c7_i32 : i32
    %c0_227 = arith.constant 0 : index
    %650 = arith.index_cast %649 : i32 to index
    %651 = memref.load %arg1[%c0_227, %650] : memref<3x8xf32, #tpu.memory_space<smem>>
    %c1_228 = arith.constant 1 : index
    %652 = arith.index_cast %649 : i32 to index
    %653 = memref.load %arg1[%c1_228, %652] : memref<3x8xf32, #tpu.memory_space<smem>>
    %c2_229 = arith.constant 2 : index
    %654 = arith.index_cast %649 : i32 to index
    %655 = memref.load %arg1[%c2_229, %654] : memref<3x8xf32, #tpu.memory_space<smem>>
    %c7 = arith.constant 7 : index
    %c0_230 = arith.constant 0 : index
    %c0_231 = arith.constant 0 : index
    %656 = vector.load %arg2[%c7, %c0_230, %c0_231] : memref<8x2x16xf32, #tpu.memory_space<vmem>>, vector<1x2x16xf32>
    %657 = vector.shape_cast %656 : vector<1x2x16xf32> to vector<2x16xf32>
    %c7_232 = arith.constant 7 : index
    %c0_233 = arith.constant 0 : index
    %c0_234 = arith.constant 0 : index
    %658 = vector.load %arg3[%c7_232, %c0_233, %c0_234] : memref<8x2x16xf32, #tpu.memory_space<vmem>>, vector<1x2x16xf32>
    %659 = vector.shape_cast %658 : vector<1x2x16xf32> to vector<2x16xf32>
    %c7_235 = arith.constant 7 : index
    %c0_236 = arith.constant 0 : index
    %c0_237 = arith.constant 0 : index
    %660 = vector.load %arg4[%c7_235, %c0_236, %c0_237] : memref<8x2x16xf32, #tpu.memory_space<vmem>>, vector<1x2x16xf32>
    %661 = vector.shape_cast %660 : vector<1x2x16xf32> to vector<2x16xf32>
    %cst_238 = arith.constant dense<0.000000e+00> : vector<2x32xf32>
    %662 = tpu.matmul %657, %623, %cst_238 {dimension_numbers = #tpu.dot_dimension_numbers<[1], [1], [0], [0], [0, 0, 1, 0], [], []>} : vector<2x16xf32>, vector<32x16xf32>, vector<2x32xf32> -> vector<2x32xf32>
    %663 = vector.broadcast %626 : vector<1x32xf32> to vector<2x32xf32>
    %664 = arith.addf %662, %663 : vector<2x32xf32>
    %665 = arith.negf %664 : vector<2x32xf32>
    %666 = math.exp %665 : vector<2x32xf32>
    %cst_239 = arith.constant 1.000000e+00 : f32
    %667 = vector.broadcast %cst_239 : f32 to vector<2x32xf32>
    %668 = arith.addf %667, %666 : vector<2x32xf32>
    %669 = arith.divf %667, %668 : vector<2x32xf32>
    %670 = arith.mulf %664, %669 : vector<2x32xf32>
    %cst_240 = arith.constant dense<0.000000e+00> : vector<2x16xf32>
    %671 = tpu.matmul %670, %629, %cst_240 {dimension_numbers = #tpu.dot_dimension_numbers<[1], [1], [0], [0], [0, 0, 1, 0], [], []>} : vector<2x32xf32>, vector<16x32xf32>, vector<2x16xf32> -> vector<2x16xf32>
    %672 = vector.broadcast %632 : vector<1x16xf32> to vector<2x16xf32>
    %673 = arith.addf %671, %672 : vector<2x16xf32>
    %674 = arith.subf %673, %659 : vector<2x16xf32>
    %cst_241 = arith.constant 6.250000e-02 : f32
    %675 = vector.broadcast %cst_241 : f32 to vector<2x16xf32>
    %676 = arith.mulf %675, %674 : vector<2x16xf32>
    %cst_242 = arith.constant dense<0.000000e+00> : vector<16x32xf32>
    %677 = tpu.matmul %676, %670, %cst_242 {dimension_numbers = #tpu.dot_dimension_numbers<[0], [0], [1], [1], [0, 1, 1, 1], [], []>} : vector<2x16xf32>, vector<2x32xf32>, vector<16x32xf32> -> vector<16x32xf32>
    %cst_243 = arith.constant dense<0.000000e+00> : vector<16xf32>
    %678 = vector.multi_reduction <add>, %676, %cst_243 [0] : vector<2x16xf32> to vector<16xf32>
    %679 = vector.shape_cast %678 : vector<16xf32> to vector<1x16xf32>
    %cst_244 = arith.constant dense<0.000000e+00> : vector<2x32xf32>
    %680 = tpu.matmul %676, %629, %cst_244 {dimension_numbers = #tpu.dot_dimension_numbers<[1], [0], [0], [1], [0, 0, 1, 1], [], []>} : vector<2x16xf32>, vector<16x32xf32>, vector<2x32xf32> -> vector<2x32xf32>
    %cst_245 = arith.constant 1.000000e+00 : f32
    %681 = vector.broadcast %cst_245 : f32 to vector<2x32xf32>
    %682 = arith.subf %681, %669 : vector<2x32xf32>
    %683 = arith.mulf %664, %682 : vector<2x32xf32>
    %cst_246 = arith.constant 1.000000e+00 : f32
    %684 = vector.broadcast %cst_246 : f32 to vector<2x32xf32>
    %685 = arith.addf %684, %683 : vector<2x32xf32>
    %686 = arith.mulf %669, %685 : vector<2x32xf32>
    %687 = arith.mulf %680, %686 : vector<2x32xf32>
    %cst_247 = arith.constant dense<0.000000e+00> : vector<32x16xf32>
    %688 = tpu.matmul %687, %657, %cst_247 {dimension_numbers = #tpu.dot_dimension_numbers<[0], [0], [1], [1], [0, 1, 1, 1], [], []>} : vector<2x32xf32>, vector<2x16xf32>, vector<32x16xf32> -> vector<32x16xf32>
    %cst_248 = arith.constant dense<0.000000e+00> : vector<32xf32>
    %689 = vector.multi_reduction <add>, %687, %cst_248 [0] : vector<2x32xf32> to vector<32xf32>
    %690 = vector.shape_cast %689 : vector<32xf32> to vector<1x32xf32>
    %691 = vector.broadcast %653 : f32 to vector<32x16xf32>
    %692 = arith.mulf %691, %604 : vector<32x16xf32>
    %693 = vector.broadcast %655 : f32 to vector<32x16xf32>
    %694 = arith.mulf %693, %688 : vector<32x16xf32>
    %695 = arith.subf %692, %694 : vector<32x16xf32>
    %696 = vector.broadcast %653 : f32 to vector<1x32xf32>
    %697 = arith.mulf %696, %609 : vector<1x32xf32>
    %698 = vector.broadcast %655 : f32 to vector<1x32xf32>
    %699 = arith.mulf %698, %690 : vector<1x32xf32>
    %700 = arith.subf %697, %699 : vector<1x32xf32>
    %701 = vector.broadcast %653 : f32 to vector<16x32xf32>
    %702 = arith.mulf %701, %614 : vector<16x32xf32>
    %703 = vector.broadcast %655 : f32 to vector<16x32xf32>
    %704 = arith.mulf %703, %677 : vector<16x32xf32>
    %705 = arith.subf %702, %704 : vector<16x32xf32>
    %706 = vector.broadcast %653 : f32 to vector<1x16xf32>
    %707 = arith.mulf %706, %619 : vector<1x16xf32>
    %708 = vector.broadcast %655 : f32 to vector<1x16xf32>
    %709 = arith.mulf %708, %679 : vector<1x16xf32>
    %710 = arith.subf %707, %709 : vector<1x16xf32>
    %cst_249 = arith.constant 1.000000e+00 : f32
    %711 = arith.subf %cst_249, %651 : f32
    %712 = vector.broadcast %711 : f32 to vector<32x16xf32>
    %713 = arith.mulf %712, %623 : vector<32x16xf32>
    %714 = arith.addf %713, %695 : vector<32x16xf32>
    %715 = vector.broadcast %711 : f32 to vector<1x32xf32>
    %716 = arith.mulf %715, %626 : vector<1x32xf32>
    %717 = arith.addf %716, %700 : vector<1x32xf32>
    %718 = vector.broadcast %711 : f32 to vector<16x32xf32>
    %719 = arith.mulf %718, %629 : vector<16x32xf32>
    %720 = arith.addf %719, %705 : vector<16x32xf32>
    %721 = vector.broadcast %711 : f32 to vector<1x16xf32>
    %722 = arith.mulf %721, %632 : vector<1x16xf32>
    %723 = arith.addf %722, %710 : vector<1x16xf32>
    %cst_250 = arith.constant dense<0.000000e+00> : vector<2x32xf32>
    %724 = tpu.matmul %661, %714, %cst_250 {dimension_numbers = #tpu.dot_dimension_numbers<[1], [1], [0], [0], [0, 0, 1, 0], [], []>} : vector<2x16xf32>, vector<32x16xf32>, vector<2x32xf32> -> vector<2x32xf32>
    %725 = vector.broadcast %717 : vector<1x32xf32> to vector<2x32xf32>
    %726 = arith.addf %724, %725 : vector<2x32xf32>
    %727 = arith.negf %726 : vector<2x32xf32>
    %728 = math.exp %727 : vector<2x32xf32>
    %cst_251 = arith.constant 1.000000e+00 : f32
    %729 = vector.broadcast %cst_251 : f32 to vector<2x32xf32>
    %730 = arith.addf %729, %728 : vector<2x32xf32>
    %731 = arith.divf %729, %730 : vector<2x32xf32>
    %732 = arith.mulf %726, %731 : vector<2x32xf32>
    %cst_252 = arith.constant dense<0.000000e+00> : vector<2x16xf32>
    %733 = tpu.matmul %732, %720, %cst_252 {dimension_numbers = #tpu.dot_dimension_numbers<[1], [1], [0], [0], [0, 0, 1, 0], [], []>} : vector<2x32xf32>, vector<16x32xf32>, vector<2x16xf32> -> vector<2x16xf32>
    %734 = vector.broadcast %723 : vector<1x16xf32> to vector<2x16xf32>
    %735 = arith.addf %733, %734 : vector<2x16xf32>
    %c7_253 = arith.constant 7 : index
    %c0_254 = arith.constant 0 : index
    %c0_255 = arith.constant 0 : index
    %736 = vector.load %arg9[%c7_253, %c0_254, %c0_255] : memref<8x2x16xf32, #tpu.memory_space<vmem>>, vector<1x2x16xf32>
    %737 = vector.shape_cast %736 : vector<1x2x16xf32> to vector<2x16xf32>
    %738 = vector.shape_cast %735 : vector<2x16xf32> to vector<1x2x16xf32>
    tpu.vector_store %arg9[%c7_253, %c0_254, %c0_255], %738 {strides = array<i32>} : memref<8x2x16xf32, #tpu.memory_space<vmem>>, vector<1x2x16xf32>,
    %c0_256 = arith.constant 0 : index
    %c0_257 = arith.constant 0 : index
    %739 = vector.load %arg10[%c0_256, %c0_257] : memref<32x16xf32, #tpu.memory_space<vmem>>, vector<32x16xf32>
    tpu.vector_store %arg10[%c0_256, %c0_257], %714 {strides = array<i32>} : memref<32x16xf32, #tpu.memory_space<vmem>>, vector<32x16xf32>,
    %c0_258 = arith.constant 0 : index
    %c0_259 = arith.constant 0 : index
    %740 = vector.load %arg11[%c0_258, %c0_259] : memref<1x32xf32, #tpu.memory_space<vmem>>, vector<1x32xf32>
    tpu.vector_store %arg11[%c0_258, %c0_259], %717 {strides = array<i32>} : memref<1x32xf32, #tpu.memory_space<vmem>>, vector<1x32xf32>,
    %c0_260 = arith.constant 0 : index
    %c0_261 = arith.constant 0 : index
    %741 = vector.load %arg12[%c0_260, %c0_261] : memref<16x32xf32, #tpu.memory_space<vmem>>, vector<16x32xf32>
    tpu.vector_store %arg12[%c0_260, %c0_261], %720 {strides = array<i32>} : memref<16x32xf32, #tpu.memory_space<vmem>>, vector<16x32xf32>,
    %c0_262 = arith.constant 0 : index
    %c0_263 = arith.constant 0 : index
    %742 = vector.load %arg13[%c0_262, %c0_263] : memref<1x16xf32, #tpu.memory_space<vmem>>, vector<1x16xf32>
    tpu.vector_store %arg13[%c0_262, %c0_263], %723 {strides = array<i32>} : memref<1x16xf32, #tpu.memory_space<vmem>>, vector<1x16xf32>,
    %c0_264 = arith.constant 0 : index
    %c0_265 = arith.constant 0 : index
    %743 = vector.load %arg14[%c0_264, %c0_265] : memref<32x16xf32, #tpu.memory_space<vmem>>, vector<32x16xf32>
    tpu.vector_store %arg14[%c0_264, %c0_265], %695 {strides = array<i32>} : memref<32x16xf32, #tpu.memory_space<vmem>>, vector<32x16xf32>,
    %c0_266 = arith.constant 0 : index
    %c0_267 = arith.constant 0 : index
    %744 = vector.load %arg15[%c0_266, %c0_267] : memref<1x32xf32, #tpu.memory_space<vmem>>, vector<1x32xf32>
    tpu.vector_store %arg15[%c0_266, %c0_267], %700 {strides = array<i32>} : memref<1x32xf32, #tpu.memory_space<vmem>>, vector<1x32xf32>,
    %c0_268 = arith.constant 0 : index
    %c0_269 = arith.constant 0 : index
    %745 = vector.load %arg16[%c0_268, %c0_269] : memref<16x32xf32, #tpu.memory_space<vmem>>, vector<16x32xf32>
    tpu.vector_store %arg16[%c0_268, %c0_269], %705 {strides = array<i32>} : memref<16x32xf32, #tpu.memory_space<vmem>>, vector<16x32xf32>,
    %c0_270 = arith.constant 0 : index
    %c0_271 = arith.constant 0 : index
    %746 = vector.load %arg17[%c0_270, %c0_271] : memref<1x16xf32, #tpu.memory_space<vmem>>, vector<1x16xf32>
    tpu.vector_store %arg17[%c0_270, %c0_271], %710 {strides = array<i32>} : memref<1x16xf32, #tpu.memory_space<vmem>>, vector<1x16xf32>,
    return
  }
  func.func @transform_0(%arg0: i32) -> (i32, i32) {
    %c0_i32 = arith.constant 0 : i32
    %c0_i32_0 = arith.constant 0 : i32
    %c0_i32_1 = arith.constant 0 : i32
    return %c0_i32, %c0_i32_0 : i32, i32
  }
  func.func @transform_1(%arg0: i32) -> (i32, i32, i32) {
    %c0_i32 = arith.constant 0 : i32
    %c0_i32_0 = arith.constant 0 : i32
    %c0_i32_1 = arith.constant 0 : i32
    return %arg0, %c0_i32, %c0_i32_0 : i32, i32, i32
  }
  func.func @transform_2(%arg0: i32) -> (i32, i32, i32) {
    %c0_i32 = arith.constant 0 : i32
    %c0_i32_0 = arith.constant 0 : i32
    %c0_i32_1 = arith.constant 0 : i32
    return %arg0, %c0_i32, %c0_i32_0 : i32, i32, i32
  }
  func.func @transform_3(%arg0: i32) -> (i32, i32, i32) {
    %c0_i32 = arith.constant 0 : i32
    %c0_i32_0 = arith.constant 0 : i32
    %c0_i32_1 = arith.constant 0 : i32
    return %arg0, %c0_i32, %c0_i32_0 : i32, i32, i32
  }
  func.func @transform_8(%arg0: i32) -> (i32, i32, i32) {
    %c0_i32 = arith.constant 0 : i32
    %c0_i32_0 = arith.constant 0 : i32
    %c0_i32_1 = arith.constant 0 : i32
    return %arg0, %c0_i32, %c0_i32_0 : i32, i32, i32
  }
  func.func @transform_9(%arg0: i32) -> (i32, i32) {
    %c0_i32 = arith.constant 0 : i32
    %c0_i32_0 = arith.constant 0 : i32
    %c0_i32_1 = arith.constant 0 : i32
    return %c0_i32, %c0_i32_0 : i32, i32
  }
  func.func @transform_10(%arg0: i32) -> (i32, i32) {
    %c0_i32 = arith.constant 0 : i32
    %c0_i32_0 = arith.constant 0 : i32
    %c0_i32_1 = arith.constant 0 : i32
    return %c0_i32, %c0_i32_0 : i32, i32
  }
  func.func @transform_11(%arg0: i32) -> (i32, i32) {
    %c0_i32 = arith.constant 0 : i32
    %c0_i32_0 = arith.constant 0 : i32
    %c0_i32_1 = arith.constant 0 : i32
    return %c0_i32, %c0_i32_0 : i32, i32
  }
  func.func @transform_12(%arg0: i32) -> (i32, i32) {
    %c0_i32 = arith.constant 0 : i32
    %c0_i32_0 = arith.constant 0 : i32
    %c0_i32_1 = arith.constant 0 : i32
    return %c0_i32, %c0_i32_0 : i32, i32
  }
  func.func @transform_13(%arg0: i32) -> (i32, i32) {
    %c0_i32 = arith.constant 0 : i32
    %c0_i32_0 = arith.constant 0 : i32
    %c0_i32_1 = arith.constant 0 : i32
    return %c0_i32, %c0_i32_0 : i32, i32
  }
  func.func @transform_14(%arg0: i32) -> (i32, i32) {
    %c0_i32 = arith.constant 0 : i32
    %c0_i32_0 = arith.constant 0 : i32
    %c0_i32_1 = arith.constant 0 : i32
    return %c0_i32, %c0_i32_0 : i32, i32
  }
  func.func @transform_15(%arg0: i32) -> (i32, i32) {
    %c0_i32 = arith.constant 0 : i32
    %c0_i32_0 = arith.constant 0 : i32
    %c0_i32_1 = arith.constant 0 : i32
    return %c0_i32, %c0_i32_0 : i32, i32
  }
  func.func @transform_16(%arg0: i32) -> (i32, i32) {
    %c0_i32 = arith.constant 0 : i32
    %c0_i32_0 = arith.constant 0 : i32
    %c0_i32_1 = arith.constant 0 : i32
    return %c0_i32, %c0_i32_0 : i32, i32
  }
}

</mosaic_0001>

<bundles_post_ra>
// kernel: tpu_custom_call.1
= control target key start
LH: loop header
LB: loop body
LE: loop exit
PB: predicated region body
PF: predicated region fallthrough
CT: control target
= control target key end

     0   :  { %s9374_s0 = inlined_call_operand.hbm [shape: f32[3,8], index: 0, kind: input, shape index: {}]   ;;  %s9375_s1 = inlined_call_operand.vmem [shape: f32[8,2,16], index: 1, kind: input, shape index: {}]   ;;  %s9376_s2 = inlined_call_operand.vmem [shape: f32[8,2,16], index: 2, kind: input, shape index: {}]   ;;  %s9377_s3 = inlined_call_operand.vmem [shape: f32[8,2,16], index: 3, kind: input, shape index: {}]   ;;  %s9378_s4 = inlined_call_operand.vmem [shape: f32[32,16], index: 4, kind: input, shape index: {}]   ;;  %s9379_s5 = inlined_call_operand.vmem [shape: f32[1,32], index: 5, kind: input, shape index: {}]   ;;  %s9380_s6 = inlined_call_operand.vmem [shape: f32[16,32], index: 6, kind: input, shape index: {}]   ;;  %s9381_s7 = inlined_call_operand.vmem [shape: f32[1,16], index: 7, kind: input, shape index: {}]   ;;  %s9382_s8 = inlined_call_operand.hbm [shape: f32[8,2,16], index: 8, kind: output, shape index: {0}]   ;;  %s9383_s9 = inlined_call_operand.vmem [shape: f32[32,16], index: 9, kind: output, shape index: {1}]   ;;  %s9384_s10 = inlined_call_operand.hbm [shape: f32[1,32], index: 10, kind: output, shape index: {2}]   ;;  %s9385_s11 = inlined_call_operand.hbm [shape: f32[16,32], index: 11, kind: output, shape index: {3}]   ;;  %s9386_s12 = inlined_call_operand.hbm [shape: f32[1,16], index: 12, kind: output, shape index: {4}]   ;;  %s9387_s13 = inlined_call_operand.vmem [shape: f32[32,16], index: 13, kind: output, shape index: {5}]   ;;  %s9388_s14 = inlined_call_operand.hbm [shape: f32[1,32], index: 14, kind: output, shape index: {6}]   ;;  %s9389_s15 = inlined_call_operand.hbm [shape: f32[16,32], index: 15, kind: output, shape index: {7}]   ;;  %s9390_s16 = inlined_call_operand.hbm [shape: f32[1,16], index: 16, kind: output, shape index: {8}]  }
   0x1   :  { %9392 = sst [smem:[#allocation29_spill]] %s9374_s0 }
   0x2   :  { %22 = vsyncpa [#allocation5], 0 }
   0x3   :  { %23 = vsyncpa [#allocation4], 0 }
   0x4   :  { %24 = vsyncpa [#allocation8], 0 }
   0x5   :  { %25 = vsyncpa [#allocation11], 0 }
   0x6   :  { %26 = vsyncpa [#allocation14], 0  ;;  %s9393_s23 = sld [smem:[#allocation29_spill]] }
   0xc   :  { %s7653_s24 = scalar_lea.hbm %s9393_s23, 64 }
   0xd   :  { %p7654_p0 = scmp.ne.s32.totalorder %s9393_s23, %s7653_s24  ;;  %p7657_p1 = scmp.lt.u32.totalorder %s7653_s24, %s9393_s23 }
   0xf   :  { %p7659_p2 = pnand %p7657_p1, %p7654_p0 }
  0x11   :  { %7662 = shalt.err (!%p7659_p2)
}
  0x12   :  { %s7835_s29 = smov [#allocation3]  }
  0x13   :  { %34 = dma.hbm_to_smem %s9393_s23, 64, %s7835_s29, [#allocation5]  }
  0x14   :  { %7817 = dma.done.wait [#allocation5], 64  }
  0x15   :  { %7818 = vsyncadd [#allocation5], 4294967232 }
  0x16   :  { %44 = sfence }
  0x17   :  { %v81_v0 = vld [vmem:[%s9378_s4] sm:$0xff]  ;;  %v83_v1 = vld [vmem:[%s9378_s4 + $0x8] sm:$0xff]  ;;  %v85_v2 = vld [vmem:[%s9378_s4 + $0x10] sm:$0xff] }
  0x18   :  { %82 = vst [vmem:[%s9383_s9] sm:$0xff] %v81_v0  ;;  %84 = vst [vmem:[%s9383_s9 + $0x8] sm:$0xff] %v83_v1  ;;  %v87_v3 = vld [vmem:[%s9378_s4 + $0x18] sm:$0xff] }
  0x19   :  { %86 = vst [vmem:[%s9383_s9 + $0x10] sm:$0xff] %v85_v2  ;;  %88 = vst [vmem:[%s9383_s9 + $0x18] sm:$0xff] %v87_v3 }
  0x1a   :  { %96 = vsyncadd [#allocation2], 512  ;;  %v115_v4 = vld [vmem:[%s9379_s5] sm:$0x1] }
  0x1b   :  { %116 = vst [vmem:[#allocation7] sm:$0x1] %v115_v4 }
  0x1c   :  { %141 = vsyncadd [#allocation2 + $0x1], 16  ;;  %v175_v5 = vld [vmem:[%s9380_s6] sm:$0xff]  ;;  %v177_v6 = vld [vmem:[%s9380_s6 + $0x8] sm:$0xff] }
  0x1d   :  { %176 = vst [vmem:[#allocation9] sm:$0xff] %v175_v5  ;;  %178 = vst [vmem:[#allocation9 + $0x8] sm:$0xff] %v177_v6 }
  0x1e   :  { %186 = vsyncadd [#allocation2 + $0x2], 256  ;;  %v205_v7 = vld [vmem:[%s9381_s7] sm:$0x1] }
  0x1f   :  { %206 = vst [vmem:[#allocation10] sm:$0x1] %v205_v7 }
  0x20   :  { %231 = vsyncadd [#allocation2 + $0x3], 16 }
  0x21   :  { %7819 = dma.done.wait [#allocation2], 512 }
  0x22   :  { %7820 = vsyncadd [#allocation2], 4294966784 }
  0x23   :  { %7821 = dma.done.wait [#allocation2 + $0x1], 16 }
  0x24   :  { %7822 = vsyncadd [#allocation2 + $0x1], 4294967280 }
  0x25   :  { %7823 = dma.done.wait [#allocation2 + $0x2], 256 }
  0x26   :  { %7824 = vsyncadd [#allocation2 + $0x2], 4294967040 }
  0x27   :  { %7825 = dma.done.wait [#allocation2 + $0x3], 16 }
  0x28   :  { %7826 = vsyncadd [#allocation2 + $0x3], 4294967280  ;;  %vm243_vm0 = vcmask 130048   ;;  %v7836_v8 = vmov 0.0|0.0   ;;  %vm7837_vm1 = vmmov 0   ;;  %v7838_v9 = vmov 0.0  }
  0x29   :  { %7358 = vmatprep.subr.bf16.mxu0 %v7836_v8  ;;  %6918 = vmatprep.mubr.msk.f32.mxu0 %vm7837_vm1, %v7838_v9  ;;  %244 = vst.msk [vmem:[%s9387_s13] sm:$0xff] %vm243_vm0, %v7838_v9  ;;  %245 = vst.msk [vmem:[%s9387_s13 + $0x8] sm:$0xff] %vm243_vm0, %v7838_v9  ;;  %v8012_v10 = vld [vmem:[%s9383_s9] sm:$0xff]  ;;  %v8017_v11 = vld [vmem:[%s9383_s9 + $0x8] sm:$0xff]  ;;  %vm250_vm3 = vcmask 261120   ;;  %v289_v22 = vlaneseq  ;;  %vm514_vm5 = vcmask 1041408  }
  0x2a   :  { %246 = vst.msk [vmem:[%s9387_s13 + $0x10] sm:$0xff] %vm243_vm0, %v7838_v9  ;;  %247 = vst.msk [vmem:[%s9387_s13 + $0x18] sm:$0xff] %vm243_vm0, %v7838_v9  ;;  %7366 = vmatprep.subr.bf16.mxu1 %v7836_v8  ;;  %6925 = vmatprep.mubr.msk.f32.mxu1 %vm7837_vm1, %v7838_v9  ;;  %v7359_v13 = vpack.c.bf16 %v8017_v11, %v8012_v10  ;;  %v8033_v14 = vld [vmem:[%s9383_s9 + $0x10] sm:$0xff]  ;;  %v8038_v15 = vld [vmem:[%s9383_s9 + $0x18] sm:$0xff]  ;;  %vm253_vm6 = vcmask 122880   ;;  %vm507_vm7 = vcmask 15360  }
  0x2b   :  { %vm8021_vm2 = vmpackc.low %vm243_vm0, %vm243_vm0  ;;  %v7363_v16 = vpack.c.bf16 %v8038_v15, %v8033_v14  ;;  %v285_v17 = vld [vmem:[%s9375_s1] sm:$0x3]  ;;  %v8051_v18 = vld [vmem:[#allocation9] sm:$0xff]  ;;  %251 = vst.msk [vmem:[#allocation13] sm:$0xff] %vm250_vm3, %v7838_v9  ;;  %v290_v23 = vshrl.u32 %v289_v22, 7  ;;  %vm248_vm8 = vcmask 253952  }
  0x2c   :  { %7361 = vmatpush3.bf16.xpose.msk.msra.mxu0 %vm8021_vm2, %v7359_v13  ;;  %v8053_v19 = vld [vmem:[#allocation9 + $0x8] sm:$0xff]  ;;  %vm8059_vm4 = vmpackc.low %vm250_vm3, %vm250_vm3  ;;  %252 = vst.msk [vmem:[#allocation13 + $0x8] sm:$0xff] %vm250_vm3, %v7838_v9  ;;  %v8071_v25 = vld [vmem:[#allocation7] sm:$0x1]  ;;  %s272_s6 = sld [smem:[#allocation3]]  ;;  %vm809_vm9 = vcmask 254976  }
  0x2d   :  { %7362 = vmatprep.subr.bf16.mxu0 %v7836_v8  ;;  %v7367_v20 = vpack.c.bf16 %v8053_v19, %v8051_v18  ;;  %v8069_v24 = vsub.s32 0, %v290_v23  ;;  %254 = vst.msk [vmem:[#allocation15] sm:$0x1] %vm253_vm6, %v7838_v9  ;;  %v8081_v39 = vld [vmem:[#allocation10] sm:$0x1]  ;;  %s6430_s7 = sld [smem:[#allocation3 + $0x80]] }
  0x2e   :  { %v286_v41 = vld [vmem:[%s9376_s2] sm:$0x3]  ;;  %249 = vst.msk [vmem:[#allocation12] sm:$0x1] %vm248_vm8, %v7838_v9  ;;  %s6431_s23 = sld [smem:[#allocation3 + $0x100]]  ;;  %vm592_vm10 = vcmask 123904  }
  0x2f   :  { %7369 = vmatpush3.bf16.xpose.msk.msra.mxu1 %vm8059_vm4, %v7367_v20  ;;  %v292_v26 = vrot.slane %v8071_v25, %v8069_v24  ;;  %v391_v40 = vrot.slane %v8081_v39, %v8069_v24  ;;  %s6459_s5 = sld [smem:[#allocation3 + $0x1]]  ;;  %s6492_s17 = sld [smem:[#allocation3 + $0x2]] }
  0x30   :  { %s6493_s18 = sld [smem:[#allocation3 + $0x82]] }
  0x31   :  { %s6494_s19 = sld [smem:[#allocation3 + $0x102]] }
  0x32   :  { %s843_s26 = ssub.f32 1.0, %s272_s6  ;;  %v268_v50 = vld [vmem:[#allocation13] sm:$0xff]  ;;  %s6460_s6 = sld [smem:[#allocation3 + $0x81]] }
  0x33   :  { %v269_v49 = vld [vmem:[#allocation13 + $0x8] sm:$0xff]  ;;  %v8102_v51 = vstv %s6430_s7  ;;  %s6461_s7 = sld [smem:[#allocation3 + $0x101]] }
  0x34   :  { %7365 = vmatpush3.bf16.xpose.msk.msra.mxu0 %vm8021_vm2, %v7363_v16  ;;  %v835_v52 = vmul.f32 %v8102_v51, %v269_v49  ;;  %v8105_v54 = vstv %s6431_s23  ;;  %v8107_v55 = vstv %s843_s26  ;;  %v834_v56 = vmul.f32 %v8102_v51, %v268_v50 }
  0x35   :  { %7381 = vmatprep.subr.bf16.mxu0 %v7836_v8  ;;  %v856_v58 = vmul.f32 %v8107_v55, %v8053_v19  ;;  %v855_v61 = vmul.f32 %v8107_v55, %v8051_v18  ;;  %v263_v18 = vld [vmem:[%s9387_s13] sm:$0xff]  ;;  %s1584_s23 = ssub.f32 1.0, %s6459_s5 }
  0x36   :  { %v818_v22 = vmul.f32 %v8102_v51, %v263_v18  ;;  %s2326_s20 = ssub.f32 1.0, %s6492_s17 }
  0x3b   :  { %6919 = vmatmul.mubr.msk.f32.vlgmr.msra.gmra.mrb[0].mxu0 %vm243_vm0, %v285_v17 }
  0x3c   :  { %6963 = vmatprep.mubr.msk.f32.mxu0 %vm7837_vm1, %v7838_v9 }
 0x10e   :  { %v376_v27 = vpop.f32.mrb[0].mxu0 }
 0x10f   :  { %v377_v28 = vadd.f32 %v376_v27, %v292_v26  ;;  %v6920_v29 = vpop.f32.mrb[1].mxu0  ;;  %v846_v26 = vmul.f32 %v8107_v55, %v8017_v11  ;;  %v265_v11 = vld [vmem:[%s9387_s13 + $0x10] sm:$0xff] }
 0x110   :  { %v845_v29 = vmul.f32 %v8107_v55, %v8012_v10 }
 0x111   :  { %v6437_v30 = vmul.f32 -1.442695, %v377_v28 }
 0x113   :  { %7589 = vpow2.f32 %v6437_v30 }
 0x11d   :  { %v7590_v31 = vpop.eup %7589 }
 0x11e   :  { %v383_v32 = vadd.f32 1.0, %v7590_v31 }
 0x120   :  { %7591 = vrcp.f32 %v383_v32  ;;  %v266_v32 = vld [vmem:[%s9387_s13 + $0x18] sm:$0xff] }
 0x121   :  { %v821_v10 = vmul.f32 %v8102_v51, %v266_v32 }
 0x12a   :  { %v7592_v33 = vpop.eup %7591 }
 0x12b   :  { %v386_v34 = vmul.f32 %v7592_v33, %v377_v28  ;;  %v673_v35 = vsub.f32 1.0, %v7592_v33 }
 0x12d   :  { %6926 = vmatmul.mubr.msk.f32.vlgmr.msra.gmra.mrb[0].mxu1 %vm250_vm3, %v386_v34  ;;  %6928 = vmatprep.subr.msk.mxu1 %vm514_vm5, %v386_v34  ;;  %v674_v36 = vmul.f32 %v673_v35, %v377_v28 }
 0x12e   :  { %6929 = vmatpush3.msk.msra.mxu1 %vm514_vm5, %v386_v34 }
 0x12f   :  { %7370 = vmatprep.subr.bf16.mxu1 %v7836_v8  ;;  %v675_v37 = vadd.f32 1.0, %v674_v36 }
 0x131   :  { %v676_v38 = vmul.f32 %v7592_v33, %v675_v37  ;;  %v820_v37 = vmul.f32 %v8102_v51, %v265_v11 }
 0x200   :  { %v469_v42 = vpop.f32.mrb[0].mxu1 }
 0x201   :  { %v470_v43 = vadd.f32 %v469_v42, %v391_v40  ;;  %v6927_v44 = vpop.f32.mrb[1].mxu1  ;;  %v848_v40 = vmul.f32 %v8107_v55, %v8038_v15 }
 0x203   :  { %v473_v45 = vsub.f32 %v470_v43, %v286_v41  ;;  %v847_v43 = vmul.f32 %v8107_v55, %v8033_v14  ;;  %v287_v14 = vld [vmem:[%s9377_s3] sm:$0x3] }
 0x205   :  { %v8088_v46 = vmul.f32 0.0625, %v473_v45 }
 0x207   :  { %475 = vxpose.xlu0.b32.start.end [1/1] (short) (narrow) %v8088_v46, 16 }
 0x287   :  { %v491_v47 = vpop.trf.xlu0 }
 0x288   :  { %6930 = vmatprep.mubr.msk.f32.mxu1 %vm507_vm7, %v491_v47 }
 0x28b   :  { %v492_v48 = vpop.trf.xlu0 }
 0x28c   :  { %6931 = vmatmul.mubr.msk.f32.vlgmr.msra.gmra.mrb[2].mxu1 %vm507_vm7, %v492_v48 }
 0x28d   :  { %7372 = vmatpush3.bf16.msra.mxu1 %v7367_v20  ;;  %6937 = vmatprep.mubr.msk.f32.mxu1 %vm7837_vm1, %v7838_v9 }
 0x28e   :  { %6940 = vmatprep.subr.msk.mxu1 %vm514_vm5, %v285_v17 }
 0x290   :  { %6938 = vmatmul.mubr.msk.f32.vlgmr.msra.gmra.mrb[4].mxu1 %vm243_vm0, %v8088_v46 }
 0x291   :  { %6941 = vmatpush3.msk.msra.mxu1 %vm514_vm5, %v285_v17  ;;  %v264_v17 = vld [vmem:[%s9387_s13 + $0x8] sm:$0xff] }
 0x292   :  { %7373 = vmatprep.subr.bf16.mxu1 %v7836_v8  ;;  %v819_v19 = vmul.f32 %v8102_v51, %v264_v17 }
 0x35f   :  { %v6932_v53 = vpop.f32.mrb[2].mxu1 }
 0x360   :  { %v837_v57 = vmul.f32 %v6932_v53, %v8105_v54  ;;  %v583_v59 = vpop.f32.mrb[3].mxu1 }
 0x361   :  { %v836_v60 = vmul.f32 %v8105_v54, %v583_v59  ;;  %v267_v59 = vld [vmem:[#allocation12] sm:$0x1] }
 0x362   :  { %v8116_v62 = vsub.f32 %v835_v52, %v837_v57 }
 0x363   :  { %v8118_v63 = vsub.f32 %v834_v56, %v836_v60  ;;  %v669_v0 = vpop.f32.mrb[4].mxu1  ;;  %v831_v60 = vmul.f32 %v8102_v51, %v267_v59 }
 0x364   :  { %v8121_v1 = vadd.f32 %v856_v58, %v8116_v62  ;;  %v677_v2 = vmul.f32 %v676_v38, %v669_v0  ;;  %v6939_v3 = vpop.f32.mrb[5].mxu1 }
 0x365   :  { %v8124_v4 = vadd.f32 %v855_v61, %v8118_v63  ;;  %v853_v3 = vmul.f32 %v8107_v55, %v8071_v25  ;;  %v8231_v25 = vld [vmem:[%s9375_s1 + $0x2] sm:$0x3] }
 0x366   :  { %678 = vxpose.xlu0.b32.start.end [1/1] (short) (narrow) %v677_v2, 32  ;;  %v810_v49 = vsel %vm809_vm9, %v677_v2, 0.0 }
 0x367   :  { %v8128_v5 = vpack.c.bf16 %v8121_v1, %v8124_v4  ;;  %v811_v50 = vrot.slane %v810_v49, 4 }
 0x369   :  { %7384 = vmatpush3.bf16.xpose.msk.msra.mxu0 %vm8059_vm4, %v8128_v5  ;;  %v812_v52 = vadd.f32 %v811_v50, %v810_v49 }
 0x36a   :  { %7385 = vmatprep.subr.bf16.mxu0 %v7836_v8 }
 0x36b   :  { %v813_v53 = vrot.slane %v812_v52, 2 }
 0x36d   :  { %v814_v56 = vadd.f32 %v813_v53, %v812_v52 }
 0x36f   :  { %v815_v57 = vrot.slane %v814_v56, 1 }
 0x371   :  { %v816_v58 = vadd.f32 %v815_v57, %v814_v56  ;;  %v6463_v57 = vld [vmem:[%s9376_s2 + $0x2] sm:$0x3] }
 0x373   :  { %v832_v61 = vmul.f32 %v8105_v54, %v816_v58 }
 0x375   :  { %v8210_v0 = vsub.f32 %v831_v60, %v832_v61 }
 0x3e6   :  { %v694_v6 = vpop.trf.xlu0 }
 0x3e7   :  { %6942 = vmatprep.mubr.msk.f32.mxu1 %vm507_vm7, %v694_v6  ;;  %v8215_v6 = vadd.f32 %v853_v3, %v8210_v0 }
 0x3e9   :  { %v865_v2 = vrot.slane %v8215_v6, %v8069_v24 }
 0x3ea   :  { %v695_v7 = vpop.trf.xlu0 }
 0x3eb   :  { %6943 = vmatmul.mubr.msk.f32.vlgmr.msra.gmra.mrb[6].mxu1 %vm507_vm7, %v695_v7 }
 0x3ee   :  { %v696_v13 = vpop.trf.xlu0 }
 0x3ef   :  { %6945 = vmatprep.mubr.msk.f32.mxu1 %vm507_vm7, %v696_v13 }
 0x3f2   :  { %v697_v16 = vpop.trf.xlu0 }
 0x3f3   :  { %6946 = vmatmul.mubr.msk.f32.gmra.mrb[8].mxu1 %vm507_vm7, %v697_v16 }
 0x3f4   :  { %6956 = vmatprep.mubr.msk.f32.mxu1 %vm7837_vm1, %v7838_v9 }
 0x4be   :  { %v6944_v20 = vpop.f32.mrb[6].mxu1 }
 0x4bf   :  { %v824_v23 = vmul.f32 %v6944_v20, %v8105_v54  ;;  %v790_v27 = vpop.f32.mrb[7].mxu1 }
 0x4c0   :  { %v823_v28 = vmul.f32 %v8105_v54, %v790_v27 }
 0x4c1   :  { %v8154_v30 = vsub.f32 %v819_v19, %v824_v23  ;;  %v593_v23 = vsel %vm592_vm10, %v8088_v46, 0.0 }
 0x4c2   :  { %v8156_v31 = vsub.f32 %v818_v22, %v823_v28 }
 0x4c3   :  { %v8162_v33 = vadd.f32 %v846_v26, %v8154_v30  ;;  %v594_v26 = vrot.slane %v593_v23, 4 }
 0x4c4   :  { %v8168_v34 = vadd.f32 %v845_v29, %v8156_v31 }
 0x4c5   :  { %v595_v27 = vadd.f32 %v594_v26, %v593_v23  ;;  %v8263_v23 = vstv %s1584_s23  ;;  %s6527_s23 = sld [smem:[#allocation3 + $0x103]] }
 0x4c6   :  { %v7374_v35 = vpack.c.bf16 %v8162_v33, %v8168_v34  ;;  %v6947_v36 = vpop.f32.mrb[8].mxu1 }
 0x4c7   :  { %v826_v38 = vmul.f32 %v6947_v36, %v8105_v54  ;;  %v800_v41 = vpop.f32.mrb[9].mxu1  ;;  %v596_v28 = vrot.slane %v595_v27, 2 }
 0x4c8   :  { %v825_v42 = vmul.f32 %v8105_v54, %v800_v41  ;;  %7376 = vmatpush3.bf16.xpose.msk.msra.mxu1 %vm8021_vm2, %v7374_v35 }
 0x4c9   :  { %v8182_v44 = vsub.f32 %v821_v10, %v826_v38  ;;  %7377 = vmatprep.subr.bf16.mxu1 %v7836_v8  ;;  %v597_v29 = vadd.f32 %v596_v28, %v595_v27  ;;  %v270_v10 = vld [vmem:[#allocation15] sm:$0x1] }
 0x4ca   :  { %v8185_v45 = vsub.f32 %v820_v37, %v825_v42  ;;  %v859_v37 = vmul.f32 %v8107_v55, %v8081_v39 }
 0x4cb   :  { %v8188_v47 = vadd.f32 %v848_v40, %v8182_v44  ;;  %v598_v32 = vrot.slane %v597_v29, 1 }
 0x4cc   :  { %v8191_v15 = vadd.f32 %v847_v43, %v8185_v45 }
 0x4cd   :  { %v599_v11 = vadd.f32 %v598_v32, %v597_v29 }
 0x4ce   :  { %v7378_v48 = vpack.c.bf16 %v8188_v47, %v8191_v15 }
 0x4d0   :  { %7380 = vmatpush3.bf16.xpose.msk.msra.mxu1 %vm8021_vm2, %v7378_v48 }
 0x4d1   :  { %7393 = vmatprep.subr.bf16.mxu1 %v7836_v8 }
 0x4d7   :  { %6957 = vmatmul.mubr.msk.f32.vlgmr.msra.gmra.mrb[10].mxu1 %vm243_vm0, %v287_v14 }
 0x4d8   :  { %7396 = vmatpush3.bf16.xpose.msk.msra.mxu1 %vm8059_vm4, %v8128_v5  ;;  %6981 = vmatprep.mubr.msk.f32.mxu1 %vm7837_vm1, %v7838_v9 }
 0x5aa   :  { %v948_v7 = vpop.f32.mrb[10].mxu1 }
 0x5ab   :  { %v949_v13 = vadd.f32 %v948_v7, %v865_v2  ;;  %v6958_v16 = vpop.f32.mrb[11].mxu1 }
 0x5ad   :  { %v6455_v17 = vmul.f32 -1.442695, %v949_v13 }
 0x5af   :  { %7593 = vpow2.f32 %v6455_v17 }
 0x5b9   :  { %v7594_v18 = vpop.eup %7593 }
 0x5ba   :  { %v955_v19 = vadd.f32 1.0, %v7594_v18 }
 0x5bc   :  { %7595 = vrcp.f32 %v955_v19  ;;  %v8259_v19 = vstv %s6460_s6  ;;  %s6525_s6 = sld [smem:[#allocation3 + $0x3]] }
 0x5c2   :  { %s3068_s26 = ssub.f32 1.0, %s6525_s6 }
 0x5c6   :  { %v7596_v20 = vpop.eup %7595 }
 0x5c7   :  { %v958_v22 = vmul.f32 %v7596_v20, %v949_v13  ;;  %v8261_v20 = vstv %s6461_s7  ;;  %s6526_s7 = sld [smem:[#allocation3 + $0x83]] }
 0x5c9   :  { %6964 = vmatmul.mubr.msk.f32.vlgmr.msra.gmra.mrb[2].mxu0 %vm250_vm3, %v958_v22 }
 0x5ca   :  { %7388 = vmatpush3.bf16.xpose.msk.msra.mxu0 %vm8021_vm2, %v7374_v35  ;;  %6974 = vmatprep.mubr.msk.f32.mxu0 %vm7837_vm1, %v7838_v9  ;;  %v840_v35 = vmul.f32 %v8102_v51, %v270_v10 }
 0x5cb   :  { %7389 = vmatprep.subr.bf16.mxu0 %v7836_v8 }
 0x5d2   :  { %7392 = vmatpush3.bf16.xpose.msk.msra.mxu0 %vm8021_vm2, %v7378_v48 }
 0x5d3   :  { %7397 = vmatprep.subr.bf16.mxu0 %v7836_v8 }
 0x5d9   :  { %6975 = vmatmul.mubr.msk.f32.vlgmr.msra.gmra.mrb[4].mxu0 %vm243_vm0, %v8231_v25 }
 0x5da   :  { %7399 = vmatpush3.bf16.msra.mxu0 %v8128_v5  ;;  %6993 = vmatprep.mubr.msk.f32.mxu0 %vm7837_vm1, %v7838_v9  ;;  %v841_v5 = vmul.f32 %v8105_v54, %v599_v11 }
 0x5db   :  { %7400 = vmatprep.subr.bf16.mxu0 %v7836_v8 }
 0x5dc   :  { %v842_v36 = vsub.f32 %v840_v35, %v841_v5 }
 0x5de   :  { %v860_v38 = vadd.f32 %v859_v37, %v842_v36  ;;  %v1581_v26 = vmul.f32 %v8259_v19, %v842_v36 }
 0x5e0   :  { %v963_v40 = vrot.slane %v860_v38, %v8069_v24  ;;  %v1600_v29 = vmul.f32 %v8263_v23, %v860_v38 }
 0x69c   :  { %v1040_v41 = vpop.f32.mrb[2].mxu0 }
 0x69d   :  { %v1041_v46 = vadd.f32 %v1040_v41, %v963_v40  ;;  %v6965_v42 = vpop.f32.mrb[3].mxu0 }
 0x69f   :  { %1044 = vst.msk [vmem:[#allocation6] sm:$0x3] %vm592_vm10, %v1041_v46 }
 0x6ac   :  { %v1134_v43 = vpop.f32.mrb[4].mxu0 }
 0x6ad   :  { %v1135_v48 = vadd.f32 %v1134_v43, %v865_v2  ;;  %v6976_v14 = vpop.f32.mrb[5].mxu0 }
 0x6af   :  { %v6470_v49 = vmul.f32 -1.442695, %v1135_v48 }
 0x6b1   :  { %7597 = vpow2.f32 %v6470_v49  ;;  %v1594_v49 = vmul.f32 %v8263_v23, %v8215_v6 }
 0x6bb   :  { %v7598_v51 = vpop.eup %7597 }
 0x6bc   :  { %v1141_v50 = vadd.f32 1.0, %v7598_v51 }
 0x6be   :  { %7599 = vrcp.f32 %v1141_v50 }
 0x6c8   :  { %v7600_v54 = vpop.eup %7599 }
 0x6c9   :  { %v1144_v52 = vmul.f32 %v7600_v54, %v1135_v48  ;;  %v1415_v53 = vsub.f32 1.0, %v7600_v54 }
 0x6cb   :  { %6982 = vmatmul.mubr.msk.f32.vlgmr.msra.gmra.mrb[12].mxu1 %vm250_vm3, %v1144_v52  ;;  %6984 = vmatprep.subr.msk.mxu1 %vm514_vm5, %v1144_v52  ;;  %v1416_v39 = vmul.f32 %v1415_v53, %v1135_v48  ;;  %v1572_v48 = vmul.f32 %v8259_v19, %v8210_v0 }
 0x6cc   :  { %6985 = vmatpush3.msk.msra.mxu1 %vm514_vm5, %v1144_v52  ;;  %v1576_v52 = vmul.f32 %v8259_v19, %v8116_v62  ;;  %v1596_v62 = vmul.f32 %v8263_v23, %v8124_v4 }
 0x6cd   :  { %v1417_v55 = vadd.f32 1.0, %v1416_v39  ;;  %6996 = vmatprep.subr.msk.mxu1 %vm514_vm5, %v8231_v25  ;;  %v1575_v39 = vmul.f32 %v8259_v19, %v8118_v63 }
 0x6cf   :  { %v1418_v56 = vmul.f32 %v7600_v54, %v1417_v55 }
 0x79e   :  { %v1214_v58 = vpop.f32.mrb[12].mxu1 }
 0x79f   :  { %v1215_v59 = vadd.f32 %v1214_v58, %v963_v40  ;;  %v6983_v60 = vpop.f32.mrb[13].mxu1 }
 0x7a1   :  { %v1218_v61 = vsub.f32 %v1215_v59, %v6463_v57  ;;  %v1597_v57 = vmul.f32 %v8263_v23, %v8121_v1 }
 0x7a3   :  { %v1219_v3 = vmul.f32 0.0625, %v1218_v61 }
 0x7a5   :  { %v1335_v2 = vsel %vm592_vm10, %v1219_v3, 0.0  ;;  %1220 = vxpose.xlu1.b32.start.end [1/1] (short) (narrow) %v1219_v3, 16  ;;  %6994 = vmatmul.mubr.msk.f32.vlgmr.msra.gmra.mrb[6].mxu0 %vm243_vm0, %v1219_v3  ;;  %v1560_v3 = vmul.f32 %v8259_v19, %v8154_v30 }
 0x7a6   :  { %v1336_v7 = vrot.slane %v1335_v2, 4  ;;  %7012 = vmatprep.mubr.msk.f32.mxu0 %vm7837_vm1, %v7838_v9 }
 0x7a8   :  { %v1337_v13 = vadd.f32 %v1336_v7, %v1335_v2 }
 0x7aa   :  { %v1338_v16 = vrot.slane %v1337_v13, 2 }
 0x7ac   :  { %v1339_v17 = vadd.f32 %v1338_v16, %v1337_v13  ;;  %v1559_v13 = vmul.f32 %v8259_v19, %v8156_v31 }
 0x7ae   :  { %v1340_v18 = vrot.slane %v1339_v17, 1 }
 0x7b0   :  { %v1341_v22 = vadd.f32 %v1340_v18, %v1339_v17  ;;  %v1587_v18 = vmul.f32 %v8263_v23, %v8162_v33 }
 0x7b2   :  { %v1582_v27 = vmul.f32 %v8261_v20, %v1341_v22 }
 0x7b4   :  { %v8267_v28 = vsub.f32 %v1581_v26, %v1582_v27  ;;  %v1586_v26 = vmul.f32 %v8263_v23, %v8168_v34 }
 0x7b6   :  { %v8271_v32 = vadd.f32 %v1600_v29, %v8267_v28 }
 0x825   :  { %v1236_v11 = vpop.trf.xlu1 }
 0x826   :  { %6986 = vmatprep.mubr.msk.f32.mxu1 %vm507_vm7, %v1236_v11  ;;  %v1562_v11 = vmul.f32 %v8259_v19, %v8182_v44  ;;  %v1588_v44 = vmul.f32 %v8263_v23, %v8191_v15 }
 0x829   :  { %v1237_v10 = vpop.trf.xlu1 }
 0x82a   :  { %6987 = vmatmul.mubr.msk.f32.vlgmr.msra.gmra.mrb[14].mxu1 %vm507_vm7, %v1237_v10 }
 0x82b   :  { %6997 = vmatpush3.msk.msra.mxu1 %vm514_vm5, %v8231_v25 }
 0x82c   :  { %7408 = vmatprep.subr.bf16.mxu1 %v7836_v8 }
 0x878   :  { %v1411_v35 = vpop.f32.mrb[6].mxu0 }
 0x879   :  { %v1419_v5 = vmul.f32 %v1418_v56, %v1411_v35  ;;  %v6995_v36 = vpop.f32.mrb[7].mxu0  ;;  %v1561_v35 = vmul.f32 %v8259_v19, %v8185_v45 }
 0x87a   :  { %v1589_v36 = vmul.f32 %v8263_v23, %v8188_v47  ;;  %v6464_v47 = vld [vmem:[%s9377_s3 + $0x2] sm:$0x3] }
 0x87b   :  { %v1551_v37 = vsel %vm809_vm9, %v1419_v5, 0.0  ;;  %1420 = vxpose.xlu1.b32.start.end [1/1] (short) (narrow) %v1419_v5, 32 }
 0x87c   :  { %v1552_v38 = vrot.slane %v1551_v37, 4 }
 0x87e   :  { %v1553_v40 = vadd.f32 %v1552_v38, %v1551_v37 }
 0x880   :  { %v1554_v41 = vrot.slane %v1553_v40, 2 }
 0x882   :  { %v1555_v46 = vadd.f32 %v1554_v41, %v1553_v40 }
 0x884   :  { %v1556_v42 = vrot.slane %v1555_v46, 1 }
 0x886   :  { %v1557_v43 = vadd.f32 %v1556_v42, %v1555_v46 }
 0x888   :  { %v1573_v14 = vmul.f32 %v8261_v20, %v1557_v43 }
 0x88a   :  { %v8282_v25 = vsub.f32 %v1572_v48, %v1573_v14  ;;  %v6495_v14 = vld [vmem:[%s9375_s1 + $0x4] sm:$0x3] }
 0x88c   :  { %v8287_v51 = vadd.f32 %v1594_v49, %v8282_v25  ;;  %v1704_v49 = vrot.slane %v8271_v32, %v8069_v24 }
 0x88e   :  { %v1606_v15 = vrot.slane %v8287_v51, %v8069_v24 }
 0x8fb   :  { %v1436_v50 = vpop.trf.xlu1 }
 0x8fc   :  { %6998 = vmatprep.mubr.msk.f32.mxu1 %vm507_vm7, %v1436_v50 }
 0x8fd   :  { %v6988_v54 = vpop.f32.mrb[14].mxu1 }
 0x8fe   :  { %v1578_v53 = vmul.f32 %v6988_v54, %v8261_v20  ;;  %v1326_v0 = vpop.f32.mrb[15].mxu1 }
 0x8ff   :  { %v1577_v55 = vmul.f32 %v8261_v20, %v1326_v0  ;;  %v1437_v56 = vpop.trf.xlu1 }
 0x900   :  { %v8296_v6 = vsub.f32 %v1576_v52, %v1578_v53  ;;  %6999 = vmatmul.mubr.msk.f32.vlgmr.msra.gmra.mrb[16].mxu1 %vm507_vm7, %v1437_v56 }
 0x901   :  { %v8301_v58 = vsub.f32 %v1575_v39, %v1577_v55 }
 0x902   :  { %v8306_v59 = vadd.f32 %v1597_v57, %v8296_v6 }
 0x903   :  { %v8309_v63 = vadd.f32 %v1596_v62, %v8301_v58  ;;  %v1438_v60 = vpop.trf.xlu1 }
 0x904   :  { %7001 = vmatprep.mubr.msk.f32.mxu1 %vm507_vm7, %v1438_v60 }
 0x905   :  { %v7409_v61 = vpack.c.bf16 %v8306_v59, %v8309_v63 }
 0x907   :  { %v1439_v1 = vpop.trf.xlu1  ;;  %7411 = vmatpush3.bf16.xpose.msk.msra.mxu1 %vm8059_vm4, %v7409_v61 }
 0x908   :  { %7002 = vmatmul.mubr.msk.f32.gmra.mrb[18].mxu1 %vm507_vm7, %v1439_v1  ;;  %7412 = vmatprep.subr.bf16.mxu1 %v7836_v8 }
 0x909   :  { %7019 = vmatprep.mubr.msk.f32.mxu1 %vm7837_vm1, %v7838_v9 }
 0x9d3   :  { %v7000_v4 = vpop.f32.mrb[16].mxu1 }
 0x9d4   :  { %v1565_v2 = vmul.f32 %v7000_v4, %v8261_v20  ;;  %v1532_v7 = vpop.f32.mrb[17].mxu1 }
 0x9d5   :  { %v1564_v16 = vmul.f32 %v8261_v20, %v1532_v7 }
 0x9d6   :  { %v8326_v17 = vsub.f32 %v1560_v3, %v1565_v2  ;;  %v6496_v2 = vld [vmem:[%s9376_s2 + $0x4] sm:$0x3] }
 0x9d7   :  { %v8330_v22 = vsub.f32 %v1559_v13, %v1564_v16 }
 0x9d8   :  { %v8335_v30 = vadd.f32 %v1587_v18, %v8326_v17 }
 0x9d9   :  { %v8338_v27 = vadd.f32 %v1586_v26, %v8330_v22 }
 0x9db   :  { %v7401_v31 = vpack.c.bf16 %v8335_v30, %v8338_v27  ;;  %v7003_v29 = vpop.f32.mrb[18].mxu1 }
 0x9dc   :  { %v1567_v33 = vmul.f32 %v7003_v29, %v8261_v20  ;;  %v1542_v10 = vpop.f32.mrb[19].mxu1 }
 0x9dd   :  { %v1566_v34 = vmul.f32 %v8261_v20, %v1542_v10  ;;  %7403 = vmatpush3.bf16.xpose.msk.msra.mxu0 %vm8021_vm2, %v7401_v31 }
 0x9de   :  { %v8350_v5 = vsub.f32 %v1562_v11, %v1567_v33  ;;  %7404 = vmatprep.subr.bf16.mxu0 %v7836_v8 }
 0x9df   :  { %v8355_v37 = vsub.f32 %v1561_v35, %v1566_v34  ;;  %v8410_v34 = vstv %s6493_s18  ;;  %s6558_s18 = sld [smem:[#allocation3 + $0x4]] }
 0x9e0   :  { %v8360_v38 = vadd.f32 %v1589_v36, %v8350_v5  ;;  %v8412_v36 = vstv %s6494_s19  ;;  %s6559_s19 = sld [smem:[#allocation3 + $0x84]] }
 0x9e1   :  { %v8363_v45 = vadd.f32 %v1588_v44, %v8355_v37 }
 0x9e3   :  { %v7405_v19 = vpack.c.bf16 %v8360_v38, %v8363_v45 }
 0x9e5   :  { %7407 = vmatpush3.bf16.xpose.msk.msra.mxu0 %vm8021_vm2, %v7405_v19  ;;  %s3810_s21 = ssub.f32 1.0, %s6558_s18 }
 0x9e6   :  { %7420 = vmatprep.subr.bf16.mxu0 %v7836_v8 }
 0x9ec   :  { %7013 = vmatmul.mubr.msk.f32.vlgmr.msra.gmra.mrb[8].mxu0 %vm243_vm0, %v6464_v47  ;;  %v2323_v47 = vmul.f32 %v8410_v34, %v8267_v28 }
 0x9ed   :  { %7423 = vmatpush3.bf16.xpose.msk.msra.mxu0 %vm8059_vm4, %v7409_v61  ;;  %7037 = vmatprep.mubr.msk.f32.mxu0 %vm7837_vm1, %v7838_v9 }
 0xabf   :  { %v1689_v20 = vpop.f32.mrb[8].mxu0 }
 0xac0   :  { %v1690_v23 = vadd.f32 %v1689_v20, %v1606_v15  ;;  %v7014_v40 = vpop.f32.mrb[9].mxu0 }
 0xac2   :  { %v6488_v41 = vmul.f32 -1.442695, %v1690_v23 }
 0xac4   :  { %7601 = vpow2.f32 %v6488_v41 }
 0xace   :  { %v7602_v46 = vpop.eup %7601 }
 0xacf   :  { %v1696_v42 = vadd.f32 1.0, %v7602_v46 }
 0xad1   :  { %7603 = vrcp.f32 %v1696_v42 }
 0xadb   :  { %v7604_v43 = vpop.eup %7603 }
 0xadc   :  { %v1699_v48 = vmul.f32 %v7604_v43, %v1690_v23 }
 0xade   :  { %7020 = vmatmul.mubr.msk.f32.vlgmr.msra.gmra.mrb[20].mxu1 %vm250_vm3, %v1699_v48 }
 0xadf   :  { %7415 = vmatpush3.bf16.xpose.msk.msra.mxu1 %vm8021_vm2, %v7401_v31  ;;  %7030 = vmatprep.mubr.msk.f32.mxu1 %vm7837_vm1, %v7838_v9 }
 0xae0   :  { %7416 = vmatprep.subr.bf16.mxu1 %v7836_v8 }
 0xae7   :  { %7419 = vmatpush3.bf16.xpose.msk.msra.mxu1 %vm8021_vm2, %v7405_v19  ;;  %v8414_v19 = vstv %s2326_s20  ;;  %s6560_s20 = sld [smem:[#allocation3 + $0x104]] }
 0xae8   :  { %7424 = vmatprep.subr.bf16.mxu1 %v7836_v8  ;;  %v2342_v23 = vmul.f32 %v8414_v19, %v8271_v32 }
 0xaee   :  { %7031 = vmatmul.mubr.msk.f32.vlgmr.msra.gmra.mrb[22].mxu1 %vm243_vm0, %v6495_v14 }
 0xaef   :  { %7426 = vmatpush3.bf16.msra.mxu1 %v7409_v61  ;;  %7049 = vmatprep.mubr.msk.f32.mxu1 %vm7837_vm1, %v7838_v9 }
 0xaf0   :  { %7427 = vmatprep.subr.bf16.mxu1 %v7836_v8 }
 0xbb1   :  { %v1781_v50 = vpop.f32.mrb[20].mxu1 }
 0xbb2   :  { %v1782_v54 = vadd.f32 %v1781_v50, %v1704_v49  ;;  %v7021_v52 = vpop.f32.mrb[21].mxu1 }
 0xbb4   :  { %1786 = vst.msk [vmem:[#allocation6 + $0x2] sm:$0x3] %vm592_vm10, %v1782_v54 }
 0xbc1   :  { %v1876_v53 = vpop.f32.mrb[22].mxu1 }
 0xbc2   :  { %v1877_v0 = vadd.f32 %v1876_v53, %v1606_v15  ;;  %v7032_v39 = vpop.f32.mrb[23].mxu1 }
 0xbc4   :  { %v6503_v55 = vmul.f32 -1.442695, %v1877_v0 }
 0xbc6   :  { %7605 = vpow2.f32 %v6503_v55  ;;  %v2336_v55 = vmul.f32 %v8414_v19, %v8287_v51 }
 0xbd0   :  { %v7606_v56 = vpop.eup %7605 }
 0xbd1   :  { %v1883_v57 = vadd.f32 1.0, %v7606_v56 }
 0xbd3   :  { %7607 = vrcp.f32 %v1883_v57 }
 0xbdd   :  { %v7608_v62 = vpop.eup %7607 }
 0xbde   :  { %v1886_v60 = vmul.f32 %v7608_v62, %v1877_v0  ;;  %v2157_v61 = vsub.f32 1.0, %v7608_v62 }
 0xbe0   :  { %7038 = vmatmul.mubr.msk.f32.vlgmr.msra.gmra.mrb[10].mxu0 %vm250_vm3, %v1886_v60  ;;  %7040 = vmatprep.subr.msk.mxu0 %vm514_vm5, %v1886_v60  ;;  %v2158_v1 = vmul.f32 %v2157_v61, %v1877_v0  ;;  %v2314_v0 = vmul.f32 %v8410_v34, %v8282_v25 }
 0xbe1   :  { %7041 = vmatpush3.msk.msra.mxu0 %vm514_vm5, %v1886_v60  ;;  %v2318_v60 = vmul.f32 %v8410_v34, %v8296_v6  ;;  %v2338_v6 = vmul.f32 %v8414_v19, %v8309_v63 }
 0xbe2   :  { %v2159_v4 = vadd.f32 1.0, %v2158_v1  ;;  %7052 = vmatprep.subr.msk.mxu0 %vm514_vm5, %v6495_v14  ;;  %v2317_v1 = vmul.f32 %v8410_v34, %v8301_v58 }
 0xbe4   :  { %v2160_v3 = vmul.f32 %v7608_v62, %v2159_v4 }
 0xcb3   :  { %v1956_v7 = vpop.f32.mrb[10].mxu0 }
 0xcb4   :  { %v1957_v13 = vadd.f32 %v1956_v7, %v1704_v49  ;;  %v7039_v16 = vpop.f32.mrb[11].mxu0 }
 0xcb6   :  { %v1960_v18 = vsub.f32 %v1957_v13, %v6496_v2  ;;  %v2339_v2 = vmul.f32 %v8414_v19, %v8306_v59 }
 0xcb8   :  { %v1961_v26 = vmul.f32 0.0625, %v1960_v18 }
 0xcba   :  { %v2077_v31 = vsel %vm592_vm10, %v1961_v26, 0.0  ;;  %1962 = vxpose.xlu0.b32.start.end [1/1] (short) (narrow) %v1961_v26, 16  ;;  %7050 = vmatmul.mubr.msk.f32.vlgmr.msra.gmra.mrb[24].mxu1 %vm243_vm0, %v1961_v26  ;;  %v2302_v26 = vmul.f32 %v8410_v34, %v8326_v17 }
 0xcbb   :  { %v2078_v29 = vrot.slane %v2077_v31, 4  ;;  %7068 = vmatprep.mubr.msk.f32.mxu1 %vm7837_vm1, %v7838_v9 }
 0xcbd   :  { %v2079_v11 = vadd.f32 %v2078_v29, %v2077_v31 }
 0xcbf   :  { %v2080_v33 = vrot.slane %v2079_v11, 2 }
 0xcc1   :  { %v2081_v10 = vadd.f32 %v2080_v33, %v2079_v11  ;;  %v2301_v11 = vmul.f32 %v8410_v34, %v8330_v22 }
 0xcc3   :  { %v2082_v35 = vrot.slane %v2081_v10, 1 }
 0xcc5   :  { %v2083_v44 = vadd.f32 %v2082_v35, %v2081_v10  ;;  %v2329_v35 = vmul.f32 %v8414_v19, %v8335_v30 }
 0xcc7   :  { %v2324_v15 = vmul.f32 %v8412_v36, %v2083_v44 }
 0xcc9   :  { %v8419_v20 = vsub.f32 %v2323_v47, %v2324_v15  ;;  %v2328_v47 = vmul.f32 %v8414_v19, %v8338_v27 }
 0xccb   :  { %v8424_v40 = vadd.f32 %v2342_v23, %v8419_v20 }
 0xd3a   :  { %v1978_v41 = vpop.trf.xlu0 }
 0xd3b   :  { %7042 = vmatprep.mubr.msk.f32.mxu0 %vm507_vm7, %v1978_v41  ;;  %v2304_v41 = vmul.f32 %v8410_v34, %v8350_v5  ;;  %v2330_v5 = vmul.f32 %v8414_v19, %v8363_v45 }
 0xd3e   :  { %v1979_v46 = vpop.trf.xlu0 }
 0xd3f   :  { %7043 = vmatmul.mubr.msk.f32.vlgmr.msra.gmra.mrb[12].mxu0 %vm507_vm7, %v1979_v46 }
 0xd40   :  { %7053 = vmatpush3.msk.msra.mxu0 %vm514_vm5, %v6495_v14 }
 0xd41   :  { %7435 = vmatprep.subr.bf16.mxu0 %v7836_v8 }
 0xd8d   :  { %v2153_v28 = vpop.f32.mrb[24].mxu1 }
 0xd8e   :  { %v2161_v42 = vmul.f32 %v2160_v3, %v2153_v28  ;;  %v7051_v43 = vpop.f32.mrb[25].mxu1  ;;  %v2303_v28 = vmul.f32 %v8410_v34, %v8355_v37 }
 0xd8f   :  { %v2331_v43 = vmul.f32 %v8414_v19, %v8360_v38  ;;  %v6497_v38 = vld [vmem:[%s9377_s3 + $0x4] sm:$0x3] }
 0xd90   :  { %v2293_v48 = vsel %vm809_vm9, %v2161_v42, 0.0  ;;  %2162 = vxpose.xlu1.b32.start.end [1/1] (short) (narrow) %v2161_v42, 32 }
 0xd91   :  { %v2294_v32 = vrot.slane %v2293_v48, 4 }
 0xd93   :  { %v2295_v49 = vadd.f32 %v2294_v32, %v2293_v48 }
 0xd95   :  { %v2296_v50 = vrot.slane %v2295_v49, 2 }
 0xd97   :  { %v2297_v54 = vadd.f32 %v2296_v50, %v2295_v49 }
 0xd99   :  { %v2298_v52 = vrot.slane %v2297_v54, 1 }
 0xd9b   :  { %v2299_v53 = vadd.f32 %v2298_v52, %v2297_v54 }
 0xd9d   :  { %v2315_v39 = vmul.f32 %v8412_v36, %v2299_v53 }
 0xd9f   :  { %v8434_v14 = vsub.f32 %v2314_v0, %v2315_v39  ;;  %v6528_v39 = vld [vmem:[%s9375_s1 + $0x6] sm:$0x3] }
 0xda1   :  { %v8439_v56 = vadd.f32 %v2336_v55, %v8434_v14  ;;  %v2446_v55 = vrot.slane %v8424_v40, %v8069_v24 }
 0xda3   :  { %v2348_v45 = vrot.slane %v8439_v56, %v8069_v24 }
 0xe10   :  { %v2178_v57 = vpop.trf.xlu1 }
 0xe11   :  { %7054 = vmatprep.mubr.msk.f32.mxu0 %vm507_vm7, %v2178_v57 }
 0xe12   :  { %v7044_v62 = vpop.f32.mrb[12].mxu0 }
 0xe13   :  { %v2320_v61 = vmul.f32 %v7044_v62, %v8412_v36  ;;  %v2068_v25 = vpop.f32.mrb[13].mxu0 }
 0xe14   :  { %v2319_v4 = vmul.f32 %v8412_v36, %v2068_v25  ;;  %v2179_v3 = vpop.trf.xlu1 }
 0xe15   :  { %v8448_v51 = vsub.f32 %v2318_v60, %v2320_v61  ;;  %7055 = vmatmul.mubr.msk.f32.vlgmr.msra.gmra.mrb[14].mxu0 %vm507_vm7, %v2179_v3 }
 0xe16   :  { %v8453_v7 = vsub.f32 %v2317_v1, %v2319_v4 }
 0xe17   :  { %v8458_v13 = vadd.f32 %v2339_v2, %v8448_v51 }
 0xe18   :  { %v8461_v58 = vadd.f32 %v2338_v6, %v8453_v7  ;;  %v2180_v16 = vpop.trf.xlu1 }
 0xe19   :  { %7057 = vmatprep.mubr.msk.f32.mxu0 %vm507_vm7, %v2180_v16 }
 0xe1a   :  { %v7436_v18 = vpack.c.bf16 %v8458_v13, %v8461_v58 }
 0xe1c   :  { %v2181_v59 = vpop.trf.xlu1  ;;  %7438 = vmatpush3.bf16.xpose.msk.msra.mxu0 %vm8059_vm4, %v7436_v18 }
 0xe1d   :  { %7058 = vmatmul.mubr.msk.f32.gmra.mrb[16].mxu0 %vm507_vm7, %v2181_v59  ;;  %7439 = vmatprep.subr.bf16.mxu0 %v7836_v8 }
 0xe1e   :  { %7075 = vmatprep.mubr.msk.f32.mxu0 %vm7837_vm1, %v7838_v9 }
 0xee8   :  { %v7056_v63 = vpop.f32.mrb[14].mxu0 }
 0xee9   :  { %v2307_v31 = vmul.f32 %v7056_v63, %v8412_v36  ;;  %v2274_v29 = vpop.f32.mrb[15].mxu0 }
 0xeea   :  { %v2306_v33 = vmul.f32 %v8412_v36, %v2274_v29 }
 0xeeb   :  { %v8478_v10 = vsub.f32 %v2302_v26, %v2307_v31  ;;  %v6529_v31 = vld [vmem:[%s9376_s2 + $0x6] sm:$0x3] }
 0xeec   :  { %v8482_v44 = vsub.f32 %v2301_v11, %v2306_v33 }
 0xeed   :  { %v8487_v17 = vadd.f32 %v2329_v35, %v8478_v10 }
 0xeee   :  { %v8490_v15 = vadd.f32 %v2328_v47, %v8482_v44 }
 0xef0   :  { %v7428_v22 = vpack.c.bf16 %v8487_v17, %v8490_v15  ;;  %v7059_v23 = vpop.f32.mrb[16].mxu0 }
 0xef1   :  { %v2309_v30 = vmul.f32 %v7059_v23, %v8412_v36  ;;  %v2284_v46 = vpop.f32.mrb[17].mxu0 }
 0xef2   :  { %v2308_v27 = vmul.f32 %v8412_v36, %v2284_v46  ;;  %7430 = vmatpush3.bf16.xpose.msk.msra.mxu1 %vm8021_vm2, %v7428_v22 }
 0xef3   :  { %v8502_v42 = vsub.f32 %v2304_v41, %v2309_v30  ;;  %7431 = vmatprep.subr.bf16.mxu1 %v7836_v8 }
 0xef4   :  { %v8507_v48 = vsub.f32 %v2303_v28, %v2308_v27  ;;  %v8562_v27 = vstv %s6526_s7  ;;  %s6591_s7 = sld [smem:[#allocation3 + $0x5]] }
 0xef5   :  { %v8512_v32 = vadd.f32 %v2331_v43, %v8502_v42  ;;  %v8564_v43 = vstv %s6527_s23  ;;  %s6592_s23 = sld [smem:[#allocation3 + $0x85]] }
 0xef6   :  { %v8515_v37 = vadd.f32 %v2330_v5, %v8507_v48 }
 0xef8   :  { %v7432_v34 = vpack.c.bf16 %v8512_v32, %v8515_v37 }
 0xefa   :  { %7434 = vmatpush3.bf16.xpose.msk.msra.mxu1 %vm8021_vm2, %v7432_v34  ;;  %s4552_s27 = ssub.f32 1.0, %s6591_s7  ;;  %s6657_s7 = sld [smem:[#allocation3 + $0x7]] }
 0xefb   :  { %7447 = vmatprep.subr.bf16.mxu1 %v7836_v8 }
 0xf01   :  { %7069 = vmatmul.mubr.msk.f32.vlgmr.msra.gmra.mrb[26].mxu1 %vm243_vm0, %v6497_v38  ;;  %v3065_v38 = vmul.f32 %v8562_v27, %v8419_v20 }
 0xf02   :  { %7450 = vmatpush3.bf16.xpose.msk.msra.mxu1 %vm8059_vm4, %v7436_v18  ;;  %7093 = vmatprep.mubr.msk.f32.mxu1 %vm7837_vm1, %v7838_v9 }
 0xfd4   :  { %v2431_v36 = vpop.f32.mrb[26].mxu1 }
 0xfd5   :  { %v2432_v19 = vadd.f32 %v2431_v36, %v2348_v45  ;;  %v7070_v49 = vpop.f32.mrb[27].mxu1 }
 0xfd7   :  { %v6521_v50 = vmul.f32 -1.442695, %v2432_v19 }
 0xfd9   :  { %7609 = vpow2.f32 %v6521_v50 }
 0xfe3   :  { %v7610_v54 = vpop.eup %7609 }
 0xfe4   :  { %v2438_v52 = vadd.f32 1.0, %v7610_v54 }
 0xfe6   :  { %7611 = vrcp.f32 %v2438_v52 }
 0xff0   :  { %v7612_v53 = vpop.eup %7611 }
 0xff1   :  { %v2441_v0 = vmul.f32 %v7612_v53, %v2432_v19 }
 0xff3   :  { %7076 = vmatmul.mubr.msk.f32.vlgmr.msra.gmra.mrb[18].mxu0 %vm250_vm3, %v2441_v0 }
 0xff4   :  { %7442 = vmatpush3.bf16.xpose.msk.msra.mxu0 %vm8021_vm2, %v7428_v22  ;;  %7086 = vmatprep.mubr.msk.f32.mxu0 %vm7837_vm1, %v7838_v9 }
 0xff5   :  { %7443 = vmatprep.subr.bf16.mxu0 %v7836_v8 }
 0xffc   :  { %7446 = vmatpush3.bf16.xpose.msk.msra.mxu0 %vm8021_vm2, %v7432_v34  ;;  %v8566_v34 = vstv %s3068_s26  ;;  %s6593_s26 = sld [smem:[#allocation3 + $0x105]] }
 0xffd   :  { %7451 = vmatprep.subr.bf16.mxu0 %v7836_v8  ;;  %v3084_v19 = vmul.f32 %v8566_v34, %v8424_v40 }
0x1003   :  { %7087 = vmatmul.mubr.msk.f32.vlgmr.msra.gmra.mrb[20].mxu0 %vm243_vm0, %v6528_v39 }
0x1004   :  { %7453 = vmatpush3.bf16.msra.mxu0 %v7436_v18  ;;  %7105 = vmatprep.mubr.msk.f32.mxu0 %vm7837_vm1, %v7838_v9 }
0x1005   :  { %7454 = vmatprep.subr.bf16.mxu0 %v7836_v8 }
0x10c6   :  { %v2523_v57 = vpop.f32.mrb[18].mxu0 }
0x10c7   :  { %v2524_v62 = vadd.f32 %v2523_v57, %v2446_v55  ;;  %v7077_v60 = vpop.f32.mrb[19].mxu0 }
0x10c9   :  { %2528 = vst.msk [vmem:[#allocation6 + $0x4] sm:$0x3] %vm592_vm10, %v2524_v62 }
0x10d6   :  { %v2618_v61 = vpop.f32.mrb[20].mxu0 }
0x10d7   :  { %v2619_v25 = vadd.f32 %v2618_v61, %v2348_v45  ;;  %v7088_v1 = vpop.f32.mrb[21].mxu0 }
0x10d9   :  { %v6536_v4 = vmul.f32 -1.442695, %v2619_v25 }
0x10db   :  { %7613 = vpow2.f32 %v6536_v4  ;;  %v3078_v4 = vmul.f32 %v8566_v34, %v8439_v56 }
0x10e5   :  { %v7614_v3 = vpop.eup %7613 }
0x10e6   :  { %v2625_v2 = vadd.f32 1.0, %v7614_v3 }
0x10e8   :  { %7615 = vrcp.f32 %v2625_v2 }
0x10f2   :  { %v7616_v6 = vpop.eup %7615 }
0x10f3   :  { %v2628_v16 = vmul.f32 %v7616_v6, %v2619_v25  ;;  %v2899_v18 = vsub.f32 1.0, %v7616_v6 }
0x10f5   :  { %7094 = vmatmul.mubr.msk.f32.vlgmr.msra.gmra.mrb[28].mxu1 %vm250_vm3, %v2628_v16  ;;  %7096 = vmatprep.subr.msk.mxu1 %vm514_vm5, %v2628_v16  ;;  %v2900_v59 = vmul.f32 %v2899_v18, %v2619_v25  ;;  %v3056_v25 = vmul.f32 %v8562_v27, %v8434_v14 }
0x10f6   :  { %7097 = vmatpush3.msk.msra.mxu1 %vm514_vm5, %v2628_v16  ;;  %v3060_v16 = vmul.f32 %v8562_v27, %v8448_v51  ;;  %v3080_v51 = vmul.f32 %v8566_v34, %v8461_v58 }
0x10f7   :  { %v2901_v63 = vadd.f32 1.0, %v2900_v59  ;;  %7108 = vmatprep.subr.msk.mxu1 %vm514_vm5, %v6528_v39  ;;  %v3059_v59 = vmul.f32 %v8562_v27, %v8453_v7 }
0x10f9   :  { %v2902_v26 = vmul.f32 %v7616_v6, %v2901_v63 }
0x11c8   :  { %v2698_v29 = vpop.f32.mrb[28].mxu1 }
0x11c9   :  { %v2699_v11 = vadd.f32 %v2698_v29, %v2446_v55  ;;  %v7095_v33 = vpop.f32.mrb[29].mxu1 }
0x11cb   :  { %v2702_v35 = vsub.f32 %v2699_v11, %v6529_v31  ;;  %v3081_v31 = vmul.f32 %v8566_v34, %v8458_v13 }
0x11cd   :  { %v2703_v47 = vmul.f32 0.0625, %v2702_v35 }
0x11cf   :  { %v2819_v22 = vsel %vm592_vm10, %v2703_v47, 0.0  ;;  %2704 = vxpose.xlu0.b32.start.end [1/1] (short) (narrow) %v2703_v47, 16  ;;  %7106 = vmatmul.mubr.msk.f32.vlgmr.msra.gmra.mrb[22].mxu0 %vm243_vm0, %v2703_v47  ;;  %v3044_v47 = vmul.f32 %v8562_v27, %v8478_v10 }
0x11d0   :  { %v2820_v23 = vrot.slane %v2819_v22, 4  ;;  %7124 = vmatprep.mubr.msk.f32.mxu0 %vm7837_vm1, %v7838_v9 }
0x11d2   :  { %v2821_v41 = vadd.f32 %v2820_v23, %v2819_v22 }
0x11d4   :  { %v2822_v30 = vrot.slane %v2821_v41, 2 }
0x11d6   :  { %v2823_v46 = vadd.f32 %v2822_v30, %v2821_v41  ;;  %v3043_v41 = vmul.f32 %v8562_v27, %v8482_v44 }
0x11d8   :  { %v2824_v28 = vrot.slane %v2823_v46, 1 }
0x11da   :  { %v2825_v5 = vadd.f32 %v2824_v28, %v2823_v46  ;;  %v3071_v28 = vmul.f32 %v8566_v34, %v8487_v17 }
0x11dc   :  { %v3066_v45 = vmul.f32 %v8564_v43, %v2825_v5 }
0x11de   :  { %v8571_v36 = vsub.f32 %v3065_v38, %v3066_v45  ;;  %v3070_v38 = vmul.f32 %v8566_v34, %v8490_v15 }
0x11e0   :  { %v8576_v49 = vadd.f32 %v3084_v19, %v8571_v36 }
0x124f   :  { %v2720_v50 = vpop.trf.xlu0 }
0x1250   :  { %7098 = vmatprep.mubr.msk.f32.mxu1 %vm507_vm7, %v2720_v50  ;;  %v3046_v50 = vmul.f32 %v8562_v27, %v8502_v42  ;;  %v3072_v42 = vmul.f32 %v8566_v34, %v8515_v37 }
0x1253   :  { %v2721_v54 = vpop.trf.xlu0 }
0x1254   :  { %7099 = vmatmul.mubr.msk.f32.vlgmr.msra.gmra.mrb[30].mxu1 %vm507_vm7, %v2721_v54 }
0x1255   :  { %7109 = vmatpush3.msk.msra.mxu1 %vm514_vm5, %v6528_v39 }
0x1256   :  { %7462 = vmatprep.subr.bf16.mxu1 %v7836_v8 }
0x12a2   :  { %v2895_v20 = vpop.f32.mrb[22].mxu0 }
0x12a3   :  { %v2903_v52 = vmul.f32 %v2902_v26, %v2895_v20  ;;  %v7107_v53 = vpop.f32.mrb[23].mxu0  ;;  %v3045_v20 = vmul.f32 %v8562_v27, %v8507_v48 }
0x12a4   :  { %v3073_v53 = vmul.f32 %v8566_v34, %v8512_v32  ;;  %v6530_v32 = vld [vmem:[%s9377_s3 + $0x6] sm:$0x3] }
0x12a5   :  { %v3035_v0 = vsel %vm809_vm9, %v2903_v52, 0.0  ;;  %2904 = vxpose.xlu1.b32.start.end [1/1] (short) (narrow) %v2903_v52, 32 }
0x12a6   :  { %v3036_v40 = vrot.slane %v3035_v0, 4 }
0x12a8   :  { %v3037_v55 = vadd.f32 %v3036_v40, %v3035_v0 }
0x12aa   :  { %v3038_v57 = vrot.slane %v3037_v55, 2 }
0x12ac   :  { %v3039_v62 = vadd.f32 %v3038_v57, %v3037_v55 }
0x12ae   :  { %v3040_v60 = vrot.slane %v3039_v62, 1 }
0x12b0   :  { %v3041_v61 = vadd.f32 %v3040_v60, %v3039_v62 }
0x12b2   :  { %v3057_v1 = vmul.f32 %v8564_v43, %v3041_v61 }
0x12b4   :  { %v8586_v39 = vsub.f32 %v3056_v25, %v3057_v1  ;;  %v6561_v1 = vld [vmem:[%s9375_s1 + $0x8] sm:$0x3] }
0x12b6   :  { %v8591_v3 = vadd.f32 %v3078_v4, %v8586_v39  ;;  %v3188_v4 = vrot.slane %v8576_v49, %v8069_v24 }
0x12b8   :  { %v3090_v37 = vrot.slane %v8591_v3, %v8069_v24 }
0x1325   :  { %v2920_v2 = vpop.trf.xlu1 }
0x1326   :  { %7110 = vmatprep.mubr.msk.f32.mxu1 %vm507_vm7, %v2920_v2 }
0x1327   :  { %v7100_v6 = vpop.f32.mrb[30].mxu1 }
0x1328   :  { %v3062_v18 = vmul.f32 %v7100_v6, %v8564_v43  ;;  %v2810_v14 = vpop.f32.mrb[31].mxu1 }
0x1329   :  { %v3061_v63 = vmul.f32 %v8564_v43, %v2810_v14  ;;  %v2921_v26 = vpop.trf.xlu1 }
0x132a   :  { %v8600_v56 = vsub.f32 %v3060_v16, %v3062_v18  ;;  %7111 = vmatmul.mubr.msk.f32.vlgmr.msra.gmra.mrb[32].mxu1 %vm507_vm7, %v2921_v26 }
0x132b   :  { %v8605_v29 = vsub.f32 %v3059_v59, %v3061_v63 }
0x132c   :  { %v8610_v11 = vadd.f32 %v3081_v31, %v8600_v56 }
0x132d   :  { %v8613_v7 = vadd.f32 %v3080_v51, %v8605_v29  ;;  %v2922_v33 = vpop.trf.xlu1 }
0x132e   :  { %7113 = vmatprep.mubr.msk.f32.mxu1 %vm507_vm7, %v2922_v33 }
0x132f   :  { %v7463_v35 = vpack.c.bf16 %v8610_v11, %v8613_v7 }
0x1331   :  { %v2923_v13 = vpop.trf.xlu1  ;;  %7465 = vmatpush3.bf16.xpose.msk.msra.mxu1 %vm8059_vm4, %v7463_v35 }
0x1332   :  { %7114 = vmatmul.mubr.msk.f32.gmra.mrb[34].mxu1 %vm507_vm7, %v2923_v13  ;;  %7466 = vmatprep.subr.bf16.mxu1 %v7836_v8 }
0x1333   :  { %7131 = vmatprep.mubr.msk.f32.mxu1 %vm7837_vm1, %v7838_v9 }
0x13fd   :  { %v7112_v58 = vpop.f32.mrb[32].mxu1 }
0x13fe   :  { %v3049_v22 = vmul.f32 %v7112_v58, %v8564_v43  ;;  %v3016_v23 = vpop.f32.mrb[33].mxu1 }
0x13ff   :  { %v3048_v30 = vmul.f32 %v8564_v43, %v3016_v23 }
0x1400   :  { %v8630_v46 = vsub.f32 %v3044_v47, %v3049_v22  ;;  %v6562_v22 = vld [vmem:[%s9376_s2 + $0x8] sm:$0x3] }
0x1401   :  { %v8634_v5 = vsub.f32 %v3043_v41, %v3048_v30 }
0x1402   :  { %v8639_v10 = vadd.f32 %v3071_v28, %v8630_v46 }
0x1403   :  { %v8642_v45 = vadd.f32 %v3070_v38, %v8634_v5 }
0x1405   :  { %v7455_v44 = vpack.c.bf16 %v8639_v10, %v8642_v45  ;;  %v7115_v19 = vpop.f32.mrb[34].mxu1 }
0x1406   :  { %v3051_v17 = vmul.f32 %v7115_v19, %v8564_v43  ;;  %v3026_v54 = vpop.f32.mrb[35].mxu1 }
0x1407   :  { %v3050_v15 = vmul.f32 %v8564_v43, %v3026_v54  ;;  %7457 = vmatpush3.bf16.xpose.msk.msra.mxu0 %vm8021_vm2, %v7455_v44 }
0x1408   :  { %v8654_v52 = vsub.f32 %v3046_v50, %v3051_v17  ;;  %7458 = vmatprep.subr.bf16.mxu0 %v7836_v8 }
0x1409   :  { %v8659_v0 = vsub.f32 %v3045_v20, %v3050_v15  ;;  %v8714_v15 = vstv %s6559_s19  ;;  %s6624_s19 = sld [smem:[#allocation3 + $0x6]] }
0x140a   :  { %v8664_v40 = vadd.f32 %v3073_v53, %v8654_v52  ;;  %v8716_v53 = vstv %s6560_s20  ;;  %s6625_s20 = sld [smem:[#allocation3 + $0x86]] }
0x140b   :  { %v8667_v48 = vadd.f32 %v3072_v42, %v8659_v0 }
0x140d   :  { %v7459_v27 = vpack.c.bf16 %v8664_v40, %v8667_v48 }
0x140f   :  { %7461 = vmatpush3.bf16.xpose.msk.msra.mxu0 %vm8021_vm2, %v7459_v27  ;;  %s5294_s22 = ssub.f32 1.0, %s6624_s19 }
0x1410   :  { %7474 = vmatprep.subr.bf16.mxu0 %v7836_v8 }
0x1416   :  { %7125 = vmatmul.mubr.msk.f32.vlgmr.msra.gmra.mrb[24].mxu0 %vm243_vm0, %v6530_v32  ;;  %v3807_v32 = vmul.f32 %v8714_v15, %v8571_v36 }
0x1417   :  { %7477 = vmatpush3.bf16.xpose.msk.msra.mxu0 %vm8059_vm4, %v7463_v35  ;;  %7149 = vmatprep.mubr.msk.f32.mxu0 %vm7837_vm1, %v7838_v9 }
0x14e9   :  { %v3173_v43 = vpop.f32.mrb[24].mxu0 }
0x14ea   :  { %v3174_v34 = vadd.f32 %v3173_v43, %v3090_v37  ;;  %v7126_v55 = vpop.f32.mrb[25].mxu0 }
0x14ec   :  { %v6554_v57 = vmul.f32 -1.442695, %v3174_v34 }
0x14ee   :  { %7617 = vpow2.f32 %v6554_v57 }
0x14f8   :  { %v7618_v62 = vpop.eup %7617 }
0x14f9   :  { %v3180_v60 = vadd.f32 1.0, %v7618_v62 }
0x14fb   :  { %7619 = vrcp.f32 %v3180_v60 }
0x1505   :  { %v7620_v61 = vpop.eup %7619 }
0x1506   :  { %v3183_v25 = vmul.f32 %v7620_v61, %v3174_v34 }
0x1508   :  { %7132 = vmatmul.mubr.msk.f32.vlgmr.msra.gmra.mrb[36].mxu1 %vm250_vm3, %v3183_v25 }
0x1509   :  { %7469 = vmatpush3.bf16.xpose.msk.msra.mxu1 %vm8021_vm2, %v7455_v44  ;;  %7142 = vmatprep.mubr.msk.f32.mxu1 %vm7837_vm1, %v7838_v9 }
0x150a   :  { %7470 = vmatprep.subr.bf16.mxu1 %v7836_v8 }
0x1511   :  { %7473 = vmatpush3.bf16.xpose.msk.msra.mxu1 %vm8021_vm2, %v7459_v27  ;;  %v8718_v27 = vstv %s3810_s21  ;;  %s6626_s21 = sld [smem:[#allocation3 + $0x106]] }
0x1512   :  { %7478 = vmatprep.subr.bf16.mxu1 %v7836_v8  ;;  %v3826_v34 = vmul.f32 %v8718_v27, %v8576_v49 }
0x1518   :  { %7143 = vmatmul.mubr.msk.f32.vlgmr.msra.gmra.mrb[38].mxu1 %vm243_vm0, %v6561_v1 }
0x1519   :  { %7480 = vmatpush3.bf16.msra.mxu1 %v7463_v35  ;;  %7161 = vmatprep.mubr.msk.f32.mxu1 %vm7837_vm1, %v7838_v9 }
0x151a   :  { %7481 = vmatprep.subr.bf16.mxu1 %v7836_v8 }
0x15db   :  { %v3265_v2 = vpop.f32.mrb[36].mxu1 }
0x15dc   :  { %v3266_v6 = vadd.f32 %v3265_v2, %v3188_v4  ;;  %v7133_v16 = vpop.f32.mrb[37].mxu1 }
0x15de   :  { %3270 = vst.msk [vmem:[#allocation6 + $0x6] sm:$0x3] %vm592_vm10, %v3266_v6 }
0x15eb   :  { %v3360_v18 = vpop.f32.mrb[38].mxu1 }
0x15ec   :  { %v3361_v14 = vadd.f32 %v3360_v18, %v3090_v37  ;;  %v7144_v59 = vpop.f32.mrb[39].mxu1 }
0x15ee   :  { %v6569_v63 = vmul.f32 -1.442695, %v3361_v14 }
0x15f0   :  { %7621 = vpow2.f32 %v6569_v63  ;;  %v3820_v63 = vmul.f32 %v8718_v27, %v8591_v3 }
0x15fa   :  { %v7622_v26 = vpop.eup %7621 }
0x15fb   :  { %v3367_v31 = vadd.f32 1.0, %v7622_v26 }
0x15fd   :  { %7623 = vrcp.f32 %v3367_v31 }
0x1607   :  { %v7624_v51 = vpop.eup %7623 }
0x1608   :  { %v3370_v33 = vmul.f32 %v7624_v51, %v3361_v14  ;;  %v3641_v35 = vsub.f32 1.0, %v7624_v51 }
0x160a   :  { %7150 = vmatmul.mubr.msk.f32.vlgmr.msra.gmra.mrb[26].mxu0 %vm250_vm3, %v3370_v33  ;;  %7152 = vmatprep.subr.msk.mxu0 %vm514_vm5, %v3370_v33  ;;  %v3642_v13 = vmul.f32 %v3641_v35, %v3361_v14  ;;  %v3798_v14 = vmul.f32 %v8714_v15, %v8586_v39 }
0x160b   :  { %7153 = vmatpush3.msk.msra.mxu0 %vm514_vm5, %v3370_v33  ;;  %v3802_v33 = vmul.f32 %v8714_v15, %v8600_v56  ;;  %v3822_v56 = vmul.f32 %v8718_v27, %v8613_v7 }
0x160c   :  { %v3643_v58 = vadd.f32 1.0, %v3642_v13  ;;  %7164 = vmatprep.subr.msk.mxu0 %vm514_vm5, %v6561_v1  ;;  %v3801_v13 = vmul.f32 %v8714_v15, %v8605_v29 }
0x160e   :  { %v3644_v47 = vmul.f32 %v7624_v51, %v3643_v58 }
0x16dd   :  { %v3440_v23 = vpop.f32.mrb[26].mxu0 }
0x16de   :  { %v3441_v41 = vadd.f32 %v3440_v23, %v3188_v4  ;;  %v7151_v30 = vpop.f32.mrb[27].mxu0 }
0x16e0   :  { %v3444_v28 = vsub.f32 %v3441_v41, %v6562_v22  ;;  %v3823_v22 = vmul.f32 %v8718_v27, %v8610_v11 }
0x16e2   :  { %v3445_v38 = vmul.f32 0.0625, %v3444_v28 }
0x16e4   :  { %v3561_v44 = vsel %vm592_vm10, %v3445_v38, 0.0  ;;  %3446 = vxpose.xlu0.b32.start.end [1/1] (short) (narrow) %v3445_v38, 16  ;;  %7162 = vmatmul.mubr.msk.f32.vlgmr.msra.gmra.mrb[40].mxu1 %vm243_vm0, %v3445_v38  ;;  %v3786_v38 = vmul.f32 %v8714_v15, %v8630_v46 }
0x16e5   :  { %v3562_v19 = vrot.slane %v3561_v44, 4  ;;  %7180 = vmatprep.mubr.msk.f32.mxu1 %vm7837_vm1, %v7838_v9 }
0x16e7   :  { %v3563_v50 = vadd.f32 %v3562_v19, %v3561_v44 }
0x16e9   :  { %v3564_v17 = vrot.slane %v3563_v50, 2 }
0x16eb   :  { %v3565_v54 = vadd.f32 %v3564_v17, %v3563_v50  ;;  %v3785_v50 = vmul.f32 %v8714_v15, %v8634_v5 }
0x16ed   :  { %v3566_v20 = vrot.slane %v3565_v54, 1 }
0x16ef   :  { %v3567_v42 = vadd.f32 %v3566_v20, %v3565_v54  ;;  %v3813_v20 = vmul.f32 %v8718_v27, %v8639_v10 }
0x16f1   :  { %v3808_v37 = vmul.f32 %v8716_v53, %v3567_v42 }
0x16f3   :  { %v8723_v43 = vsub.f32 %v3807_v32, %v3808_v37  ;;  %v3812_v32 = vmul.f32 %v8718_v27, %v8642_v45 }
0x16f5   :  { %v8728_v55 = vadd.f32 %v3826_v34, %v8723_v43 }
0x1764   :  { %v3462_v57 = vpop.trf.xlu0 }
0x1765   :  { %7154 = vmatprep.mubr.msk.f32.mxu0 %vm507_vm7, %v3462_v57  ;;  %v3788_v57 = vmul.f32 %v8714_v15, %v8654_v52  ;;  %v3814_v52 = vmul.f32 %v8718_v27, %v8667_v48 }
0x1768   :  { %v3463_v62 = vpop.trf.xlu0 }
0x1769   :  { %7155 = vmatmul.mubr.msk.f32.vlgmr.msra.gmra.mrb[28].mxu0 %vm507_vm7, %v3463_v62 }
0x176a   :  { %7165 = vmatpush3.msk.msra.mxu0 %vm514_vm5, %v6561_v1 }
0x176b   :  { %7489 = vmatprep.subr.bf16.mxu0 %v7836_v8 }
0x17b7   :  { %v3637_v36 = vpop.f32.mrb[40].mxu1 }
0x17b8   :  { %v3645_v60 = vmul.f32 %v3644_v47, %v3637_v36  ;;  %v7163_v61 = vpop.f32.mrb[41].mxu1  ;;  %v3787_v36 = vmul.f32 %v8714_v15, %v8659_v0 }
0x17b9   :  { %v3815_v61 = vmul.f32 %v8718_v27, %v8664_v40  ;;  %v6563_v40 = vld [vmem:[%s9377_s3 + $0x8] sm:$0x3] }
0x17ba   :  { %v3777_v25 = vsel %vm809_vm9, %v3645_v60, 0.0  ;;  %3646 = vxpose.xlu0.b32.start.end [1/1] (short) (narrow) %v3645_v60, 32 }
0x17bb   :  { %v3778_v49 = vrot.slane %v3777_v25, 4 }
0x17bd   :  { %v3779_v4 = vadd.f32 %v3778_v49, %v3777_v25 }
0x17bf   :  { %v3780_v2 = vrot.slane %v3779_v4, 2 }
0x17c1   :  { %v3781_v6 = vadd.f32 %v3780_v2, %v3779_v4 }
0x17c3   :  { %v3782_v16 = vrot.slane %v3781_v6, 1 }
0x17c5   :  { %v3783_v18 = vadd.f32 %v3782_v16, %v3781_v6 }
0x17c7   :  { %v3799_v59 = vmul.f32 %v8716_v53, %v3783_v18 }
0x17c9   :  { %v8738_v1 = vsub.f32 %v3798_v14, %v3799_v59  ;;  %v6594_v59 = vld [vmem:[%s9375_s1 + $0xa] sm:$0x3] }
0x17cb   :  { %v8743_v26 = vadd.f32 %v3820_v63, %v8738_v1  ;;  %v3930_v63 = vrot.slane %v8728_v55, %v8069_v24 }
0x17cd   :  { %v3832_v48 = vrot.slane %v8743_v26, %v8069_v24 }
0x183a   :  { %v3662_v31 = vpop.trf.xlu0 }
0x183b   :  { %7166 = vmatprep.mubr.msk.f32.mxu0 %vm507_vm7, %v3662_v31 }
0x183c   :  { %v7156_v51 = vpop.f32.mrb[28].mxu0 }
0x183d   :  { %v3804_v35 = vmul.f32 %v7156_v51, %v8716_v53  ;;  %v3552_v39 = vpop.f32.mrb[29].mxu0 }
0x183e   :  { %v3803_v58 = vmul.f32 %v8716_v53, %v3552_v39  ;;  %v3663_v47 = vpop.trf.xlu0 }
0x183f   :  { %v8752_v3 = vsub.f32 %v3802_v33, %v3804_v35  ;;  %7167 = vmatmul.mubr.msk.f32.vlgmr.msra.gmra.mrb[30].mxu0 %vm507_vm7, %v3663_v47 }
0x1840   :  { %v8757_v23 = vsub.f32 %v3801_v13, %v3803_v58 }
0x1841   :  { %v8762_v41 = vadd.f32 %v3823_v22, %v8752_v3 }
0x1842   :  { %v8765_v29 = vadd.f32 %v3822_v56, %v8757_v23  ;;  %v3664_v30 = vpop.trf.xlu0 }
0x1843   :  { %7169 = vmatprep.mubr.msk.f32.mxu0 %vm507_vm7, %v3664_v30 }
0x1844   :  { %v7490_v28 = vpack.c.bf16 %v8762_v41, %v8765_v29 }
0x1846   :  { %v3665_v11 = vpop.trf.xlu0  ;;  %7492 = vmatpush3.bf16.xpose.msk.msra.mxu0 %vm8059_vm4, %v7490_v28 }
0x1847   :  { %7170 = vmatmul.mubr.msk.f32.gmra.mrb[32].mxu0 %vm507_vm7, %v3665_v11  ;;  %7493 = vmatprep.subr.bf16.mxu0 %v7836_v8 }
0x1848   :  { %7187 = vmatprep.mubr.msk.f32.mxu0 %vm7837_vm1, %v7838_v9 }
0x1912   :  { %v7168_v7 = vpop.f32.mrb[30].mxu0 }
0x1913   :  { %v3791_v44 = vmul.f32 %v7168_v7, %v8716_v53  ;;  %v3758_v19 = vpop.f32.mrb[31].mxu0 }
0x1914   :  { %v3790_v17 = vmul.f32 %v8716_v53, %v3758_v19 }
0x1915   :  { %v8782_v54 = vsub.f32 %v3786_v38, %v3791_v44  ;;  %v6595_v44 = vld [vmem:[%s9376_s2 + $0xa] sm:$0x3] }
0x1916   :  { %v8786_v42 = vsub.f32 %v3785_v50, %v3790_v17 }
0x1917   :  { %v8791_v46 = vadd.f32 %v3813_v20, %v8782_v54 }
0x1918   :  { %v8794_v37 = vadd.f32 %v3812_v32, %v8786_v42 }
0x191a   :  { %v7482_v5 = vpack.c.bf16 %v8791_v46, %v8794_v37  ;;  %v7171_v34 = vpop.f32.mrb[32].mxu0 }
0x191b   :  { %v3793_v10 = vmul.f32 %v7171_v34, %v8716_v53  ;;  %v3768_v62 = vpop.f32.mrb[33].mxu0 }
0x191c   :  { %v3792_v45 = vmul.f32 %v8716_v53, %v3768_v62  ;;  %7484 = vmatpush3.bf16.xpose.msk.msra.mxu1 %vm8021_vm2, %v7482_v5 }
0x191d   :  { %v8806_v60 = vsub.f32 %v3788_v57, %v3793_v10  ;;  %7485 = vmatprep.subr.bf16.mxu1 %v7836_v8 }
0x191e   :  { %v8811_v25 = vsub.f32 %v3787_v36, %v3792_v45  ;;  %v8866_v45 = vstv %s6592_s23  ;;  %s6658_s23 = sld [smem:[#allocation3 + $0x87]] }
0x191f   :  { %v8816_v49 = vadd.f32 %v3815_v61, %v8806_v60  ;;  %v8868_v61 = vstv %s6593_s26  ;;  %s6659_s26 = sld [smem:[#allocation3 + $0x107]] }
0x1920   :  { %v8819_v0 = vadd.f32 %v3814_v52, %v8811_v25 }
0x1922   :  { %v7486_v15 = vpack.c.bf16 %v8816_v49, %v8819_v0 }
0x1924   :  { %7488 = vmatpush3.bf16.xpose.msk.msra.mxu1 %vm8021_vm2, %v7486_v15 }
0x1925   :  { %7501 = vmatprep.subr.bf16.mxu1 %v7836_v8 }
0x192b   :  { %7181 = vmatmul.mubr.msk.f32.vlgmr.msra.gmra.mrb[42].mxu1 %vm243_vm0, %v6563_v40  ;;  %v4549_v40 = vmul.f32 %v8866_v45, %v8723_v43 }
0x192c   :  { %7504 = vmatpush3.bf16.xpose.msk.msra.mxu1 %vm8059_vm4, %v7490_v28  ;;  %7205 = vmatprep.mubr.msk.f32.mxu1 %vm7837_vm1, %v7838_v9 }
0x19fe   :  { %v3915_v53 = vpop.f32.mrb[42].mxu1 }
0x19ff   :  { %v3916_v27 = vadd.f32 %v3915_v53, %v3832_v48  ;;  %v7182_v4 = vpop.f32.mrb[43].mxu1 }
0x1a01   :  { %v6587_v2 = vmul.f32 -1.442695, %v3916_v27 }
0x1a03   :  { %7625 = vpow2.f32 %v6587_v2 }
0x1a0d   :  { %v7626_v6 = vpop.eup %7625 }
0x1a0e   :  { %v3922_v16 = vadd.f32 1.0, %v7626_v6 }
0x1a10   :  { %7627 = vrcp.f32 %v3922_v16 }
0x1a1a   :  { %v7628_v18 = vpop.eup %7627 }
0x1a1b   :  { %v3925_v14 = vmul.f32 %v7628_v18, %v3916_v27 }
0x1a1d   :  { %7188 = vmatmul.mubr.msk.f32.vlgmr.msra.gmra.mrb[34].mxu0 %vm250_vm3, %v3925_v14 }
0x1a1e   :  { %7496 = vmatpush3.bf16.xpose.msk.msra.mxu0 %vm8021_vm2, %v7482_v5  ;;  %7198 = vmatprep.mubr.msk.f32.mxu0 %vm7837_vm1, %v7838_v9 }
0x1a1f   :  { %7497 = vmatprep.subr.bf16.mxu0 %v7836_v8 }
0x1a26   :  { %7500 = vmatpush3.bf16.xpose.msk.msra.mxu0 %vm8021_vm2, %v7486_v15  ;;  %v8870_v15 = vstv %s4552_s27 }
0x1a27   :  { %7505 = vmatprep.subr.bf16.mxu0 %v7836_v8  ;;  %v4568_v27 = vmul.f32 %v8870_v15, %v8728_v55 }
0x1a2d   :  { %7199 = vmatmul.mubr.msk.f32.vlgmr.msra.gmra.mrb[36].mxu0 %vm243_vm0, %v6594_v59 }
0x1a2e   :  { %7507 = vmatpush3.bf16.msra.mxu0 %v7490_v28  ;;  %7217 = vmatprep.mubr.msk.f32.mxu0 %vm7837_vm1, %v7838_v9 }
0x1a2f   :  { %7508 = vmatprep.subr.bf16.mxu0 %v7836_v8 }
0x1af0   :  { %v4007_v31 = vpop.f32.mrb[34].mxu0 }
0x1af1   :  { %v4008_v51 = vadd.f32 %v4007_v31, %v3930_v63  ;;  %v7189_v33 = vpop.f32.mrb[35].mxu0 }
0x1af3   :  { %4012 = vst.msk [vmem:[#allocation6 + $0x8] sm:$0x3] %vm592_vm10, %v4008_v51 }
0x1b00   :  { %v4102_v35 = vpop.f32.mrb[36].mxu0 }
0x1b01   :  { %v4103_v39 = vadd.f32 %v4102_v35, %v3832_v48  ;;  %v7200_v13 = vpop.f32.mrb[37].mxu0 }
0x1b03   :  { %v6602_v58 = vmul.f32 -1.442695, %v4103_v39 }
0x1b05   :  { %7629 = vpow2.f32 %v6602_v58  ;;  %v4562_v58 = vmul.f32 %v8870_v15, %v8743_v26 }
0x1b0f   :  { %v7630_v47 = vpop.eup %7629 }
0x1b10   :  { %v4109_v22 = vadd.f32 1.0, %v7630_v47 }
0x1b12   :  { %7631 = vrcp.f32 %v4109_v22 }
0x1b1c   :  { %v7632_v56 = vpop.eup %7631 }
0x1b1d   :  { %v4112_v30 = vmul.f32 %v7632_v56, %v4103_v39  ;;  %v4383_v28 = vsub.f32 1.0, %v7632_v56 }
0x1b1f   :  { %7206 = vmatmul.mubr.msk.f32.vlgmr.msra.gmra.mrb[44].mxu1 %vm250_vm3, %v4112_v30  ;;  %7208 = vmatprep.subr.msk.mxu1 %vm514_vm5, %v4112_v30  ;;  %v4384_v11 = vmul.f32 %v4383_v28, %v4103_v39  ;;  %v4540_v39 = vmul.f32 %v8866_v45, %v8738_v1 }
0x1b20   :  { %7209 = vmatpush3.msk.msra.mxu1 %vm514_vm5, %v4112_v30  ;;  %v4544_v30 = vmul.f32 %v8866_v45, %v8752_v3  ;;  %v4564_v3 = vmul.f32 %v8870_v15, %v8765_v29 }
0x1b21   :  { %v4385_v7 = vadd.f32 1.0, %v4384_v11  ;;  %7220 = vmatprep.subr.msk.mxu1 %vm514_vm5, %v6594_v59  ;;  %v4543_v11 = vmul.f32 %v8866_v45, %v8757_v23 }
0x1b23   :  { %v4386_v38 = vmul.f32 %v7632_v56, %v4385_v7 }
0x1bf2   :  { %v4182_v19 = vpop.f32.mrb[44].mxu1 }
0x1bf3   :  { %v4183_v50 = vadd.f32 %v4182_v19, %v3930_v63  ;;  %v7207_v17 = vpop.f32.mrb[45].mxu1 }
0x1bf5   :  { %v4186_v20 = vsub.f32 %v4183_v50, %v6595_v44  ;;  %v4565_v44 = vmul.f32 %v8870_v15, %v8762_v41 }
0x1bf7   :  { %v4187_v32 = vmul.f32 0.0625, %v4186_v20 }
0x1bf9   :  { %v4303_v5 = vsel %vm592_vm10, %v4187_v32, 0.0  ;;  %4188 = vxpose.xlu1.b32.start.end [1/1] (short) (narrow) %v4187_v32, 16  ;;  %7218 = vmatmul.mubr.msk.f32.vlgmr.msra.gmra.mrb[38].mxu0 %vm243_vm0, %v4187_v32  ;;  %v4528_v32 = vmul.f32 %v8866_v45, %v8782_v54 }
0x1bfa   :  { %v4304_v34 = vrot.slane %v4303_v5, 4  ;;  %7236 = vmatprep.mubr.msk.f32.mxu0 %vm7837_vm1, %v7838_v9 }
0x1bfc   :  { %v4305_v57 = vadd.f32 %v4304_v34, %v4303_v5 }
0x1bfe   :  { %v4306_v10 = vrot.slane %v4305_v57, 2 }
0x1c00   :  { %v4307_v62 = vadd.f32 %v4306_v10, %v4305_v57  ;;  %v4527_v57 = vmul.f32 %v8866_v45, %v8786_v42 }
0x1c02   :  { %v4308_v36 = vrot.slane %v4307_v62, 1 }
0x1c04   :  { %v4309_v52 = vadd.f32 %v4308_v36, %v4307_v62  ;;  %v4555_v36 = vmul.f32 %v8870_v15, %v8791_v46 }
0x1c06   :  { %v4550_v48 = vmul.f32 %v8868_v61, %v4309_v52 }
0x1c08   :  { %v8875_v53 = vsub.f32 %v4549_v40, %v4550_v48  ;;  %v4554_v40 = vmul.f32 %v8870_v15, %v8794_v37 }
0x1c0a   :  { %v8880_v4 = vadd.f32 %v4568_v27, %v8875_v53 }
0x1c79   :  { %v4204_v2 = vpop.trf.xlu1 }
0x1c7a   :  { %7210 = vmatprep.mubr.msk.f32.mxu1 %vm507_vm7, %v4204_v2  ;;  %v4530_v2 = vmul.f32 %v8866_v45, %v8806_v60  ;;  %v4556_v60 = vmul.f32 %v8870_v15, %v8819_v0 }
0x1c7d   :  { %v4205_v6 = vpop.trf.xlu1 }
0x1c7e   :  { %7211 = vmatmul.mubr.msk.f32.vlgmr.msra.gmra.mrb[46].mxu1 %vm507_vm7, %v4205_v6 }
0x1c7f   :  { %7221 = vmatpush3.msk.msra.mxu1 %vm514_vm5, %v6594_v59 }
0x1c80   :  { %7516 = vmatprep.subr.bf16.mxu1 %v7836_v8 }
0x1ccc   :  { %v4379_v43 = vpop.f32.mrb[38].mxu0 }
0x1ccd   :  { %v4387_v16 = vmul.f32 %v4386_v38, %v4379_v43  ;;  %v7219_v18 = vpop.f32.mrb[39].mxu0  ;;  %v4529_v43 = vmul.f32 %v8866_v45, %v8811_v25 }
0x1cce   :  { %v4557_v18 = vmul.f32 %v8870_v15, %v8816_v49  ;;  %v6596_v49 = vld [vmem:[%s9377_s3 + $0xa] sm:$0x3] }
0x1ccf   :  { %v4519_v14 = vsel %vm809_vm9, %v4387_v16, 0.0  ;;  %4388 = vxpose.xlu0.b32.start.end [1/1] (short) (narrow) %v4387_v16, 32 }
0x1cd0   :  { %v4520_v55 = vrot.slane %v4519_v14, 4 }
0x1cd2   :  { %v4521_v63 = vadd.f32 %v4520_v55, %v4519_v14 }
0x1cd4   :  { %v4522_v31 = vrot.slane %v4521_v63, 2 }
0x1cd6   :  { %v4523_v51 = vadd.f32 %v4522_v31, %v4521_v63 }
0x1cd8   :  { %v4524_v33 = vrot.slane %v4523_v51, 1 }
0x1cda   :  { %v4525_v35 = vadd.f32 %v4524_v33, %v4523_v51 }
0x1cdc   :  { %v4541_v13 = vmul.f32 %v8868_v61, %v4525_v35 }
0x1cde   :  { %v8890_v59 = vsub.f32 %v4540_v39, %v4541_v13  ;;  %v6627_v13 = vld [vmem:[%s9375_s1 + $0xc] sm:$0x3] }
0x1ce0   :  { %v8895_v47 = vadd.f32 %v4562_v58, %v8890_v59  ;;  %v4672_v58 = vrot.slane %v8880_v4, %v8069_v24 }
0x1ce2   :  { %v4574_v0 = vrot.slane %v8895_v47, %v8069_v24 }
0x1d4f   :  { %v4404_v22 = vpop.trf.xlu0 }
0x1d50   :  { %7222 = vmatprep.mubr.msk.f32.mxu1 %vm507_vm7, %v4404_v22 }
0x1d51   :  { %v7212_v56 = vpop.f32.mrb[46].mxu1 }
0x1d52   :  { %v4546_v28 = vmul.f32 %v7212_v56, %v8868_v61  ;;  %v4294_v1 = vpop.f32.mrb[47].mxu1 }
0x1d53   :  { %v4545_v7 = vmul.f32 %v8868_v61, %v4294_v1  ;;  %v4405_v38 = vpop.trf.xlu0 }
0x1d54   :  { %v8904_v26 = vsub.f32 %v4544_v30, %v4546_v28  ;;  %7223 = vmatmul.mubr.msk.f32.vlgmr.msra.gmra.mrb[48].mxu1 %vm507_vm7, %v4405_v38 }
0x1d55   :  { %v8909_v19 = vsub.f32 %v4543_v11, %v4545_v7 }
0x1d56   :  { %v8914_v50 = vadd.f32 %v4565_v44, %v8904_v26 }
0x1d57   :  { %v8917_v23 = vadd.f32 %v4564_v3, %v8909_v19  ;;  %v4406_v17 = vpop.trf.xlu0 }
0x1d58   :  { %7225 = vmatprep.mubr.msk.f32.mxu1 %vm507_vm7, %v4406_v17 }
0x1d59   :  { %v7517_v20 = vpack.c.bf16 %v8914_v50, %v8917_v23 }
0x1d5b   :  { %v4407_v41 = vpop.trf.xlu0  ;;  %7519 = vmatpush3.bf16.xpose.msk.msra.mxu1 %vm8059_vm4, %v7517_v20 }
0x1d5c   :  { %7226 = vmatmul.mubr.msk.f32.gmra.mrb[50].mxu1 %vm507_vm7, %v4407_v41  ;;  %7520 = vmatprep.subr.bf16.mxu1 %v7836_v8 }
0x1d5d   :  { %7243 = vmatprep.mubr.msk.f32.mxu1 %vm7837_vm1, %v7838_v9 }
0x1e27   :  { %v7224_v29 = vpop.f32.mrb[48].mxu1 }
0x1e28   :  { %v4533_v5 = vmul.f32 %v7224_v29, %v8868_v61  ;;  %v4500_v34 = vpop.f32.mrb[49].mxu1 }
0x1e29   :  { %v4532_v10 = vmul.f32 %v8868_v61, %v4500_v34 }
0x1e2a   :  { %v8934_v62 = vsub.f32 %v4528_v32, %v4533_v5  ;;  %v6628_v5 = vld [vmem:[%s9376_s2 + $0xc] sm:$0x3] }
0x1e2b   :  { %v8938_v52 = vsub.f32 %v4527_v57, %v4532_v10 }
0x1e2c   :  { %v8943_v54 = vadd.f32 %v4555_v36, %v8934_v62 }
0x1e2d   :  { %v8946_v48 = vadd.f32 %v4554_v40, %v8938_v52 }
0x1e2f   :  { %v7509_v42 = vpack.c.bf16 %v8943_v54, %v8946_v48  ;;  %v7227_v27 = vpop.f32.mrb[50].mxu1 }
0x1e30   :  { %v4535_v46 = vmul.f32 %v7227_v27, %v8868_v61  ;;  %v4510_v6 = vpop.f32.mrb[51].mxu1 }
0x1e31   :  { %v4534_v37 = vmul.f32 %v8868_v61, %v4510_v6  ;;  %7511 = vmatpush3.bf16.xpose.msk.msra.mxu0 %vm8021_vm2, %v7509_v42 }
0x1e32   :  { %v8958_v16 = vsub.f32 %v4530_v2, %v4535_v46  ;;  %7512 = vmatprep.subr.bf16.mxu0 %v7836_v8 }
0x1e33   :  { %v8963_v14 = vsub.f32 %v4529_v43, %v4534_v37  ;;  %v9018_v37 = vstv %s6625_s20 }
0x1e34   :  { %v8968_v55 = vadd.f32 %v4557_v18, %v8958_v16  ;;  %v9020_v18 = vstv %s6626_s21 }
0x1e35   :  { %v8971_v25 = vadd.f32 %v4556_v60, %v8963_v14 }
0x1e37   :  { %v7513_v45 = vpack.c.bf16 %v8968_v55, %v8971_v25 }
0x1e39   :  { %7515 = vmatpush3.bf16.xpose.msk.msra.mxu0 %vm8021_vm2, %v7513_v45 }
0x1e3a   :  { %7528 = vmatprep.subr.bf16.mxu0 %v7836_v8 }
0x1e40   :  { %7237 = vmatmul.mubr.msk.f32.vlgmr.msra.gmra.mrb[40].mxu0 %vm243_vm0, %v6596_v49  ;;  %v5291_v49 = vmul.f32 %v9018_v37, %v8875_v53 }
0x1e41   :  { %7531 = vmatpush3.bf16.xpose.msk.msra.mxu0 %vm8059_vm4, %v7517_v20  ;;  %7261 = vmatprep.mubr.msk.f32.mxu0 %vm7837_vm1, %v7838_v9 }
0x1f13   :  { %v4657_v61 = vpop.f32.mrb[40].mxu0 }
0x1f14   :  { %v4658_v15 = vadd.f32 %v4657_v61, %v4574_v0  ;;  %v7238_v63 = vpop.f32.mrb[41].mxu0 }
0x1f16   :  { %v6620_v31 = vmul.f32 -1.442695, %v4658_v15 }
0x1f18   :  { %7633 = vpow2.f32 %v6620_v31 }
0x1f22   :  { %v7634_v51 = vpop.eup %7633 }
0x1f23   :  { %v4664_v33 = vadd.f32 1.0, %v7634_v51 }
0x1f25   :  { %7635 = vrcp.f32 %v4664_v33 }
0x1f2f   :  { %v7636_v35 = vpop.eup %7635 }
0x1f30   :  { %v4667_v39 = vmul.f32 %v7636_v35, %v4658_v15 }
0x1f32   :  { %7244 = vmatmul.mubr.msk.f32.vlgmr.msra.gmra.mrb[52].mxu1 %vm250_vm3, %v4667_v39 }
0x1f33   :  { %7523 = vmatpush3.bf16.xpose.msk.msra.mxu1 %vm8021_vm2, %v7509_v42  ;;  %7254 = vmatprep.mubr.msk.f32.mxu1 %vm7837_vm1, %v7838_v9 }
0x1f34   :  { %7524 = vmatprep.subr.bf16.mxu1 %v7836_v8 }
0x1f3b   :  { %7527 = vmatpush3.bf16.xpose.msk.msra.mxu1 %vm8021_vm2, %v7513_v45  ;;  %v9022_v45 = vstv %s5294_s22 }
0x1f3c   :  { %7532 = vmatprep.subr.bf16.mxu1 %v7836_v8  ;;  %v5310_v15 = vmul.f32 %v9022_v45, %v8880_v4 }
0x1f42   :  { %7255 = vmatmul.mubr.msk.f32.vlgmr.msra.gmra.mrb[54].mxu1 %vm243_vm0, %v6627_v13 }
0x1f43   :  { %7534 = vmatpush3.bf16.msra.mxu1 %v7517_v20  ;;  %7273 = vmatprep.mubr.msk.f32.mxu1 %vm7837_vm1, %v7838_v9 }
0x1f44   :  { %7535 = vmatprep.subr.bf16.mxu1 %v7836_v8 }
0x2005   :  { %v4749_v22 = vpop.f32.mrb[52].mxu1 }
0x2006   :  { %v4750_v56 = vadd.f32 %v4749_v22, %v4672_v58  ;;  %v7245_v30 = vpop.f32.mrb[53].mxu1 }
0x2008   :  { %4754 = vst.msk [vmem:[#allocation6 + $0xa] sm:$0x3] %vm592_vm10, %v4750_v56 }
0x2015   :  { %v4844_v28 = vpop.f32.mrb[54].mxu1 }
0x2016   :  { %v4845_v1 = vadd.f32 %v4844_v28, %v4574_v0  ;;  %v7256_v11 = vpop.f32.mrb[55].mxu1 }
0x2018   :  { %v6635_v7 = vmul.f32 -1.442695, %v4845_v1 }
0x201a   :  { %7637 = vpow2.f32 %v6635_v7  ;;  %v5304_v7 = vmul.f32 %v9022_v45, %v8895_v47 }
0x2024   :  { %v7638_v38 = vpop.eup %7637 }
0x2025   :  { %v4851_v44 = vadd.f32 1.0, %v7638_v38 }
0x2027   :  { %7639 = vrcp.f32 %v4851_v44 }
0x2031   :  { %v7640_v3 = vpop.eup %7639 }
0x2032   :  { %v4854_v17 = vmul.f32 %v7640_v3, %v4845_v1  ;;  %v5125_v20 = vsub.f32 1.0, %v7640_v3 }
0x2034   :  { %7262 = vmatmul.mubr.msk.f32.vlgmr.msra.gmra.mrb[42].mxu0 %vm250_vm3, %v4854_v17  ;;  %7264 = vmatprep.subr.msk.mxu0 %vm514_vm5, %v4854_v17  ;;  %v5126_v41 = vmul.f32 %v5125_v20, %v4845_v1  ;;  %v5282_v1 = vmul.f32 %v9018_v37, %v8890_v59 }
0x2035   :  { %7265 = vmatpush3.msk.msra.mxu0 %vm514_vm5, %v4854_v17  ;;  %v5286_v17 = vmul.f32 %v9018_v37, %v8904_v26  ;;  %v5306_v26 = vmul.f32 %v9022_v45, %v8917_v23 }
0x2036   :  { %v5127_v29 = vadd.f32 1.0, %v5126_v41  ;;  %7276 = vmatprep.subr.msk.mxu0 %vm514_vm5, %v6627_v13  ;;  %v5285_v41 = vmul.f32 %v9018_v37, %v8909_v19 }
0x2038   :  { %v5128_v32 = vmul.f32 %v7640_v3, %v5127_v29 }
0x2107   :  { %v4924_v34 = vpop.f32.mrb[42].mxu0 }
0x2108   :  { %v4925_v57 = vadd.f32 %v4924_v34, %v4672_v58  ;;  %v7263_v10 = vpop.f32.mrb[43].mxu0 }
0x210a   :  { %v4928_v36 = vsub.f32 %v4925_v57, %v6628_v5  ;;  %v5307_v5 = vmul.f32 %v9022_v45, %v8914_v50 }
0x210c   :  { %v4929_v40 = vmul.f32 0.0625, %v4928_v36 }
0x210e   :  { %v5045_v42 = vsel %vm592_vm10, %v4929_v40, 0.0  ;;  %4930 = vxpose.xlu1.b32.start.end [1/1] (short) (narrow) %v4929_v40, 16  ;;  %7274 = vmatmul.mubr.msk.f32.vlgmr.msra.gmra.mrb[56].mxu1 %vm243_vm0, %v4929_v40  ;;  %v5270_v40 = vmul.f32 %v9018_v37, %v8934_v62 }
0x210f   :  { %v5046_v27 = vrot.slane %v5045_v42, 4  ;;  %7292 = vmatprep.mubr.msk.f32.mxu1 %vm7837_vm1, %v7838_v9 }
0x2111   :  { %v5047_v2 = vadd.f32 %v5046_v27, %v5045_v42 }
0x2113   :  { %v5048_v46 = vrot.slane %v5047_v2, 2 }
0x2115   :  { %v5049_v6 = vadd.f32 %v5048_v46, %v5047_v2  ;;  %v5269_v2 = vmul.f32 %v9018_v37, %v8938_v52 }
0x2117   :  { %v5050_v43 = vrot.slane %v5049_v6, 1 }
0x2119   :  { %v5051_v60 = vadd.f32 %v5050_v43, %v5049_v6  ;;  %v5297_v43 = vmul.f32 %v9022_v45, %v8943_v54 }
0x211b   :  { %v5292_v0 = vmul.f32 %v9020_v18, %v5051_v60 }
0x211d   :  { %v9027_v61 = vsub.f32 %v5291_v49, %v5292_v0  ;;  %v5296_v49 = vmul.f32 %v9022_v45, %v8946_v48 }
0x211f   :  { %v9032_v63 = vadd.f32 %v5310_v15, %v9027_v61 }
0x218e   :  { %v4946_v31 = vpop.trf.xlu1 }
0x218f   :  { %7266 = vmatprep.mubr.msk.f32.mxu0 %vm507_vm7, %v4946_v31  ;;  %v5272_v31 = vmul.f32 %v9018_v37, %v8958_v16  ;;  %v5298_v16 = vmul.f32 %v9022_v45, %v8971_v25 }
0x2192   :  { %v4947_v51 = vpop.trf.xlu1 }
0x2193   :  { %7267 = vmatmul.mubr.msk.f32.vlgmr.msra.gmra.mrb[44].mxu0 %vm507_vm7, %v4947_v51 }
0x2194   :  { %7277 = vmatpush3.msk.msra.mxu0 %vm514_vm5, %v6627_v13 }
0x2195   :  { %7543 = vmatprep.subr.bf16.mxu0 %v7836_v8 }
0x21e1   :  { %v5121_v53 = vpop.f32.mrb[56].mxu1 }
0x21e2   :  { %v5129_v33 = vmul.f32 %v5128_v32, %v5121_v53  ;;  %v7275_v35 = vpop.f32.mrb[57].mxu1  ;;  %v5271_v53 = vmul.f32 %v9018_v37, %v8963_v14 }
0x21e3   :  { %v5299_v35 = vmul.f32 %v9022_v45, %v8968_v55  ;;  %v6629_v55 = vld [vmem:[%s9377_s3 + $0xc] sm:$0x3] }
0x21e4   :  { %v5261_v39 = vsel %vm809_vm9, %v5129_v33, 0.0  ;;  %5130 = vxpose.xlu0.b32.start.end [1/1] (short) (narrow) %v5129_v33, 32 }
0x21e5   :  { %v5262_v4 = vrot.slane %v5261_v39, 4 }
0x21e7   :  { %v5263_v58 = vadd.f32 %v5262_v4, %v5261_v39 }
0x21e9   :  { %v5264_v22 = vrot.slane %v5263_v58, 2 }
0x21eb   :  { %v5265_v56 = vadd.f32 %v5264_v22, %v5263_v58 }
0x21ed   :  { %v5266_v30 = vrot.slane %v5265_v56, 1 }
0x21ef   :  { %v5267_v28 = vadd.f32 %v5266_v30, %v5265_v56 }
0x21f1   :  { %v5283_v11 = vmul.f32 %v9020_v18, %v5267_v28 }
0x21f3   :  { %v9042_v13 = vsub.f32 %v5282_v1, %v5283_v11  ;;  %v6660_v11 = vld [vmem:[%s9375_s1 + $0xe] sm:$0x3] }
0x21f5   :  { %v9047_v38 = vadd.f32 %v5304_v7, %v9042_v13  ;;  %v5414_v7 = vrot.slane %v9032_v63, %v8069_v24 }
0x21f7   :  { %v5316_v25 = vrot.slane %v9047_v38, %v8069_v24 }
0x2264   :  { %v5146_v44 = vpop.trf.xlu0 }
0x2265   :  { %7278 = vmatprep.mubr.msk.f32.mxu0 %vm507_vm7, %v5146_v44 }
0x2266   :  { %v7268_v3 = vpop.f32.mrb[44].mxu0 }
0x2267   :  { %v5288_v20 = vmul.f32 %v7268_v3, %v9020_v18  ;;  %v5036_v59 = vpop.f32.mrb[45].mxu0 }
0x2268   :  { %v5287_v29 = vmul.f32 %v9020_v18, %v5036_v59  ;;  %v5147_v32 = vpop.trf.xlu0 }
0x2269   :  { %v9056_v47 = vsub.f32 %v5286_v17, %v5288_v20  ;;  %7279 = vmatmul.mubr.msk.f32.vlgmr.msra.gmra.mrb[46].mxu0 %vm507_vm7, %v5147_v32 }
0x226a   :  { %v9061_v34 = vsub.f32 %v5285_v41, %v5287_v29 }
0x226b   :  { %v9066_v57 = vadd.f32 %v5307_v5, %v9056_v47 }
0x226c   :  { %v9069_v19 = vadd.f32 %v5306_v26, %v9061_v34  ;;  %v5148_v10 = vpop.trf.xlu0 }
0x226d   :  { %7281 = vmatprep.mubr.msk.f32.mxu0 %vm507_vm7, %v5148_v10 }
0x226e   :  { %v7544_v36 = vpack.c.bf16 %v9066_v57, %v9069_v19 }
0x2270   :  { %v5149_v50 = vpop.trf.xlu0  ;;  %7546 = vmatpush3.bf16.xpose.msk.msra.mxu0 %vm8059_vm4, %v7544_v36 }
0x2271   :  { %7282 = vmatmul.mubr.msk.f32.gmra.mrb[48].mxu0 %vm507_vm7, %v5149_v50  ;;  %7547 = vmatprep.subr.bf16.mxu0 %v7836_v8 }
0x2272   :  { %7299 = vmatprep.mubr.msk.f32.mxu0 %vm7837_vm1, %v7838_v9 }
0x233c   :  { %v7280_v23 = vpop.f32.mrb[46].mxu0 }
0x233d   :  { %v5275_v42 = vmul.f32 %v7280_v23, %v9020_v18  ;;  %v5242_v27 = vpop.f32.mrb[47].mxu0 }
0x233e   :  { %v5274_v46 = vmul.f32 %v9020_v18, %v5242_v27 }
0x233f   :  { %v9086_v6 = vsub.f32 %v5270_v40, %v5275_v42  ;;  %v6661_v42 = vld [vmem:[%s9376_s2 + $0xe] sm:$0x3]  ;;  %s6036_s2 = ssub.f32 1.0, %s6657_s7 }
0x2340   :  { %v9090_v60 = vsub.f32 %v5269_v2, %v5274_v46 }
0x2341   :  { %v9095_v62 = vadd.f32 %v5297_v43, %v9086_v6 }
0x2342   :  { %v9098_v0 = vadd.f32 %v5296_v49, %v9090_v60 }
0x2344   :  { %v7536_v52 = vpack.c.bf16 %v9095_v62, %v9098_v0  ;;  %v7283_v15 = vpop.f32.mrb[48].mxu0 }
0x2345   :  { %v5277_v54 = vmul.f32 %v7283_v15, %v9020_v18  ;;  %v5252_v51 = vpop.f32.mrb[49].mxu0 }
0x2346   :  { %v5276_v48 = vmul.f32 %v9020_v18, %v5252_v51  ;;  %7538 = vmatpush3.bf16.xpose.msk.msra.mxu1 %vm8021_vm2, %v7536_v52 }
0x2347   :  { %v9110_v33 = vsub.f32 %v5272_v31, %v5277_v54  ;;  %7539 = vmatprep.subr.bf16.mxu1 %v7836_v8 }
0x2348   :  { %v9115_v39 = vsub.f32 %v5271_v53, %v5276_v48  ;;  %v9170_v48 = vstv %s6658_s23 }
0x2349   :  { %v9120_v4 = vadd.f32 %v5299_v35, %v9110_v33  ;;  %v9172_v35 = vstv %s6659_s26 }
0x234a   :  { %v9123_v14 = vadd.f32 %v5298_v16, %v9115_v39 }
0x234c   :  { %v7540_v37 = vpack.c.bf16 %v9120_v4, %v9123_v14 }
0x234e   :  { %7542 = vmatpush3.bf16.xpose.msk.msra.mxu1 %vm8021_vm2, %v7540_v37 }
0x234f   :  { %7555 = vmatprep.subr.bf16.mxu1 %v7836_v8 }
0x2355   :  { %7293 = vmatmul.mubr.msk.f32.vlgmr.msra.gmra.mrb[58].mxu1 %vm243_vm0, %v6629_v55  ;;  %v6033_v55 = vmul.f32 %v9170_v48, %v9027_v61 }
0x2356   :  { %7558 = vmatpush3.bf16.xpose.msk.msra.mxu1 %vm8059_vm4, %v7544_v36  ;;  %7317 = vmatprep.mubr.msk.f32.mxu1 %vm7837_vm1, %v7838_v9 }
0x2428   :  { %v5399_v18 = vpop.f32.mrb[58].mxu1 }
0x2429   :  { %v5400_v45 = vadd.f32 %v5399_v18, %v5316_v25  ;;  %v7294_v58 = vpop.f32.mrb[59].mxu1 }
0x242b   :  { %v6653_v22 = vmul.f32 -1.442695, %v5400_v45 }
0x242d   :  { %7641 = vpow2.f32 %v6653_v22 }
0x2437   :  { %v7642_v56 = vpop.eup %7641 }
0x2438   :  { %v5406_v30 = vadd.f32 1.0, %v7642_v56 }
0x243a   :  { %7643 = vrcp.f32 %v5406_v30 }
0x2444   :  { %v7644_v28 = vpop.eup %7643 }
0x2445   :  { %v5409_v1 = vmul.f32 %v7644_v28, %v5400_v45 }
0x2447   :  { %7300 = vmatmul.mubr.msk.f32.vlgmr.msra.gmra.mrb[50].mxu0 %vm250_vm3, %v5409_v1 }
0x2448   :  { %7550 = vmatpush3.bf16.xpose.msk.msra.mxu0 %vm8021_vm2, %v7536_v52  ;;  %7310 = vmatprep.mubr.msk.f32.mxu0 %vm7837_vm1, %v7838_v9 }
0x2449   :  { %7551 = vmatprep.subr.bf16.mxu0 %v7836_v8 }
0x2450   :  { %7554 = vmatpush3.bf16.xpose.msk.msra.mxu0 %vm8021_vm2, %v7540_v37  ;;  %v9174_v37 = vstv %s6036_s2 }
0x2451   :  { %7559 = vmatprep.subr.bf16.mxu0 %v7836_v8  ;;  %v6052_v45 = vmul.f32 %v9174_v37, %v9032_v63  ;;  %v6039_v21 = vmul.f32 %v9174_v37, %v9095_v62 }
0x2457   :  { %7311 = vmatmul.mubr.msk.f32.vlgmr.msra.gmra.mrb[52].mxu0 %vm243_vm0, %v6660_v11 }
0x2458   :  { %7561 = vmatpush3.bf16.msra.mxu0 %v7544_v36  ;;  %7329 = vmatprep.mubr.msk.f32.mxu0 %vm7837_vm1, %v7838_v9 }
0x2459   :  { %7562 = vmatprep.subr.bf16.mxu0 %v7836_v8 }
0x251a   :  { %v5491_v44 = vpop.f32.mrb[50].mxu0 }
0x251b   :  { %v5492_v3 = vadd.f32 %v5491_v44, %v5414_v7  ;;  %v7301_v17 = vpop.f32.mrb[51].mxu0 }
0x251d   :  { %5496 = vst.msk [vmem:[#allocation6 + $0xc] sm:$0x3] %vm592_vm10, %v5492_v3 }
0x252a   :  { %v5586_v20 = vpop.f32.mrb[52].mxu0 }
0x252b   :  { %v5587_v59 = vadd.f32 %v5586_v20, %v5316_v25  ;;  %v7312_v41 = vpop.f32.mrb[53].mxu0 }
0x252d   :  { %v6668_v29 = vmul.f32 -1.442695, %v5587_v59 }
0x252f   :  { %7645 = vpow2.f32 %v6668_v29  ;;  %v6046_v29 = vmul.f32 %v9174_v37, %v9047_v38  ;;  %v6027_v38 = vmul.f32 %v9170_v48, %v9061_v34 }
0x2539   :  { %v7646_v32 = vpop.eup %7645 }
0x253a   :  { %v5593_v5 = vadd.f32 1.0, %v7646_v32 }
0x253c   :  { %7647 = vrcp.f32 %v5593_v5 }
0x2546   :  { %v7648_v26 = vpop.eup %7647 }
0x2547   :  { %v5596_v10 = vmul.f32 %v7648_v26, %v5587_v59  ;;  %v5867_v36 = vsub.f32 1.0, %v7648_v26 }
0x2549   :  { %7318 = vmatmul.mubr.msk.f32.vlgmr.msra.gmra.mrb[60].mxu1 %vm250_vm3, %v5596_v10  ;;  %7320 = vmatprep.subr.msk.mxu1 %vm514_vm5, %v5596_v10  ;;  %v5868_v50 = vmul.f32 %v5867_v36, %v5587_v59  ;;  %v6024_v59 = vmul.f32 %v9170_v48, %v9042_v13  ;;  %v6028_v13 = vmul.f32 %v9170_v48, %v9056_v47 }
0x254a   :  { %7321 = vmatpush3.msk.msra.mxu1 %vm514_vm5, %v5596_v10 }
0x254b   :  { %v5869_v23 = vadd.f32 1.0, %v5868_v50  ;;  %7332 = vmatprep.subr.msk.mxu1 %vm514_vm5, %v6660_v11 }
0x254d   :  { %v5870_v40 = vmul.f32 %v7648_v26, %v5869_v23 }
0x261c   :  { %v5666_v27 = vpop.f32.mrb[60].mxu1 }
0x261d   :  { %v5667_v2 = vadd.f32 %v5666_v27, %v5414_v7  ;;  %v7319_v46 = vpop.f32.mrb[61].mxu1 }
0x261f   :  { %v5670_v43 = vsub.f32 %v5667_v2, %v6661_v42  ;;  %v6049_v42 = vmul.f32 %v9174_v37, %v9066_v57  ;;  %v6048_v2 = vmul.f32 %v9174_v37, %v9069_v19 }
0x2621   :  { %v5671_v49 = vmul.f32 0.0625, %v5670_v43 }
0x2623   :  { %v5787_v52 = vsel %vm592_vm10, %v5671_v49, 0.0  ;;  %5672 = vxpose.xlu1.b32.start.end [1/1] (short) (narrow) %v5671_v49, 16  ;;  %7330 = vmatmul.mubr.msk.f32.vlgmr.msra.gmra.mrb[54].mxu0 %vm243_vm0, %v5671_v49  ;;  %v6012_v49 = vmul.f32 %v9170_v48, %v9086_v6 }
0x2624   :  { %v5788_v15 = vrot.slane %v5787_v52, 4  ;;  %7348 = vmatprep.mubr.msk.f32.mxu0 %vm7837_vm1, %v7838_v9 }
0x2626   :  { %v5789_v31 = vadd.f32 %v5788_v15, %v5787_v52 }
0x2628   :  { %v5790_v54 = vrot.slane %v5789_v31, 2 }
0x262a   :  { %v5791_v51 = vadd.f32 %v5790_v54, %v5789_v31  ;;  %v6011_v31 = vmul.f32 %v9170_v48, %v9090_v60 }
0x262c   :  { %v5792_v53 = vrot.slane %v5791_v51, 1 }
0x262e   :  { %v5793_v16 = vadd.f32 %v5792_v53, %v5791_v51 }
0x2630   :  { %v6034_v25 = vmul.f32 %v9172_v35, %v5793_v16 }
0x2632   :  { %v6035_v18 = vsub.f32 %v6033_v55, %v6034_v25 }
0x2634   :  { %v9181_v58 = vadd.f32 %v6052_v45, %v6035_v18  ;;  %6256 = vst.msk [vmem:[#allocation15] sm:$0x1] %vm253_vm6, %v6035_v18  ;;  %v6013_v18 = vmul.f32 %v9170_v48, %v9115_v39 }
0x2636   :  { %6248 = vst.msk [vmem:[#allocation10] sm:$0x1] %vm253_vm6, %v9181_v58 }
0x26a3   :  { %v5688_v22 = vpop.trf.xlu1 }
0x26a4   :  { %7322 = vmatprep.mubr.msk.f32.mxu1 %vm507_vm7, %v5688_v22 }
0x26a7   :  { %v5689_v56 = vpop.trf.xlu1 }
0x26a8   :  { %7323 = vmatmul.mubr.msk.f32.vlgmr.msra.gmra.mrb[62].mxu1 %vm507_vm7, %v5689_v56  ;;  %v6041_v56 = vmul.f32 %v9174_v37, %v9120_v4  ;;  %v6662_v4 = vld [vmem:[%s9377_s3 + $0xe] sm:$0x3]  ;;  %s7840_s3 = smov [#allocation10]  }
0x26a9   :  { %7333 = vmatpush3.msk.msra.mxu1 %vm514_vm5, %v6660_v11  ;;  %s6299_s23 = sshll.u32 %s7840_s3, 4  ;;  %s6300_s23 = int_to_ptr.vmem [resolvable:$true] %s6299_s23 }
0x26aa   :  { %7570 = vmatprep.subr.bf16.mxu1 %v7836_v8 }
0x26f6   :  { %v5863_v61 = vpop.f32.mrb[54].mxu0 }
0x26f7   :  { %v5871_v30 = vmul.f32 %v5870_v40, %v5863_v61  ;;  %v7331_v63 = vpop.f32.mrb[55].mxu0 }
0x26f9   :  { %v6003_v28 = vsel %vm809_vm9, %v5871_v30, 0.0  ;;  %5872 = vxpose.xlu1.b32.start.end [1/1] (short) (narrow) %v5871_v30, 32 }
0x26fa   :  { %v6004_v1 = vrot.slane %v6003_v28, 4 }
0x26fc   :  { %v6005_v7 = vadd.f32 %v6004_v1, %v6003_v28 }
0x26fe   :  { %v6006_v44 = vrot.slane %v6005_v7, 2 }
0x2700   :  { %v6007_v3 = vadd.f32 %v6006_v44, %v6005_v7 }
0x2702   :  { %v6008_v17 = vrot.slane %v6007_v3, 1 }
0x2704   :  { %v6009_v20 = vadd.f32 %v6008_v17, %v6007_v3 }
0x2706   :  { %v6025_v41 = vmul.f32 %v9172_v35, %v6009_v20 }
0x2708   :  { %v6026_v11 = vsub.f32 %v6024_v59, %v6025_v41 }
0x270a   :  { %v9196_v32 = vadd.f32 %v6046_v29, %v6026_v11  ;;  %6253 = vst.msk [vmem:[#allocation12] sm:$0x1] %vm248_vm8, %v6026_v11 }
0x270c   :  { %6244 = vst.msk [vmem:[#allocation7] sm:$0x1] %vm248_vm8, %v9196_v32 }
0x2779   :  { %v5888_v5 = vpop.trf.xlu1 }
0x277a   :  { %7334 = vmatprep.mubr.msk.f32.mxu1 %vm507_vm7, %v5888_v5 }
0x277b   :  { %v7324_v26 = vpop.f32.mrb[62].mxu1 }
0x277c   :  { %v6030_v10 = vmul.f32 %v7324_v26, %v9172_v35  ;;  %v5778_v36 = vpop.f32.mrb[63].mxu1 }
0x277d   :  { %v6029_v50 = vmul.f32 %v9172_v35, %v5778_v36  ;;  %v5889_v23 = vpop.trf.xlu1 }
0x277e   :  { %v6032_v40 = vsub.f32 %v6028_v13, %v6030_v10  ;;  %7335 = vmatmul.mubr.msk.f32.vlgmr.msra.gmra.mrb[64].mxu1 %vm507_vm7, %v5889_v23 }
0x277f   :  { %v6031_v27 = vsub.f32 %v6027_v38, %v6029_v50 }
0x2780   :  { %v6051_v47 = vadd.f32 %v6049_v42, %v6032_v40  ;;  %6255 = vst.msk [vmem:[#allocation13 + $0x8] sm:$0xff] %vm250_vm3, %v6032_v40 }
0x2781   :  { %v6050_v46 = vadd.f32 %v6048_v2, %v6031_v27  ;;  %6254 = vst.msk [vmem:[#allocation13] sm:$0xff] %vm250_vm3, %v6031_v27  ;;  %v5890_v34 = vpop.trf.xlu1 }
0x2782   :  { %6246 = vst.msk [vmem:[#allocation9 + $0x8] sm:$0xff] %vm250_vm3, %v6051_v47  ;;  %7337 = vmatprep.mubr.msk.f32.mxu1 %vm507_vm7, %v5890_v34 }
0x2783   :  { %v7571_v43 = vpack.c.bf16 %v6051_v47, %v6050_v46  ;;  %6245 = vst.msk [vmem:[#allocation9] sm:$0xff] %vm250_vm3, %v6050_v46 }
0x2785   :  { %v5891_v57 = vpop.trf.xlu1  ;;  %7573 = vmatpush3.bf16.xpose.msk.msra.mxu1 %vm8059_vm4, %v7571_v43 }
0x2786   :  { %7338 = vmatmul.mubr.msk.f32.gmra.mrb[66].mxu1 %vm507_vm7, %v5891_v57 }
0x2787   :  { %7355 = vmatprep.mubr.msk.f32.mxu1 %vm7837_vm1, %v7838_v9  ;;  %v6038_v9 = vmul.f32 %v9174_v37, %v9098_v0  ;;  %v6014_v0 = vmul.f32 %v9170_v48, %v9110_v33  ;;  %v6040_v33 = vmul.f32 %v9174_v37, %v9123_v14  ;;  %v6058_v14 = vrot.slane %v9196_v32, %v8069_v24 }
0x2851   :  { %v7336_v19 = vpop.f32.mrb[64].mxu1 }
0x2852   :  { %v6017_v52 = vmul.f32 %v7336_v19, %v9172_v35  ;;  %v5984_v15 = vpop.f32.mrb[65].mxu1 }
0x2853   :  { %v6016_v54 = vmul.f32 %v9172_v35, %v5984_v15 }
0x2854   :  { %v6021_v51 = vsub.f32 %v6012_v49, %v6017_v52 }
0x2855   :  { %v6020_v53 = vsub.f32 %v6011_v31, %v6016_v54 }
0x2856   :  { %v6043_v16 = vadd.f32 %v6039_v21, %v6021_v51  ;;  %6250 = vst.msk [vmem:[%s9387_s13 + $0x8] sm:$0xff] %vm243_vm0, %v6021_v51 }
0x2857   :  { %v6042_v6 = vadd.f32 %v6038_v9, %v6020_v53  ;;  %6249 = vst.msk [vmem:[%s9387_s13] sm:$0xff] %vm243_vm0, %v6020_v53 }
0x2858   :  { %6240 = vst.msk [vmem:[%s9383_s9 + $0x8] sm:$0xff] %vm243_vm0, %v6043_v16 }
0x2859   :  { %v7563_v60 = vpack.c.bf16 %v6043_v16, %v6042_v6  ;;  %6239 = vst.msk [vmem:[%s9383_s9] sm:$0xff] %vm243_vm0, %v6042_v6  ;;  %v7339_v62 = vpop.f32.mrb[66].mxu1 }
0x285a   :  { %v6019_v55 = vmul.f32 %v7339_v62, %v9172_v35  ;;  %v5994_v25 = vpop.f32.mrb[67].mxu1 }
0x285b   :  { %v6018_v45 = vmul.f32 %v9172_v35, %v5994_v25  ;;  %7565 = vmatpush3.bf16.xpose.msk.msra.mxu0 %vm8021_vm2, %v7563_v60 }
0x285c   :  { %v6023_v22 = vsub.f32 %v6014_v0, %v6019_v55  ;;  %7566 = vmatprep.subr.bf16.mxu0 %v7836_v8 }
0x285d   :  { %v6022_v61 = vsub.f32 %v6013_v18, %v6018_v45 }
0x285e   :  { %v6045_v30 = vadd.f32 %v6041_v56, %v6023_v22  ;;  %6252 = vst.msk [vmem:[%s9387_s13 + $0x18] sm:$0xff] %vm243_vm0, %v6023_v22 }
0x285f   :  { %v6044_v39 = vadd.f32 %v6040_v33, %v6022_v61  ;;  %6251 = vst.msk [vmem:[%s9387_s13 + $0x10] sm:$0xff] %vm243_vm0, %v6022_v61 }
0x2860   :  { %6242 = vst.msk [vmem:[%s9383_s9 + $0x18] sm:$0xff] %vm243_vm0, %v6045_v30 }
0x2861   :  { %v7567_v8 = vpack.c.bf16 %v6045_v30, %v6044_v39  ;;  %6241 = vst.msk [vmem:[%s9383_s9 + $0x10] sm:$0xff] %vm243_vm0, %v6044_v39  ;;  %s7839_s9 = smov [#allocation7]  }
0x2862   :  { %s6277_s13 = sshll.u32 %s7839_s9, 4  ;;  %s6278_s13 = int_to_ptr.vmem [resolvable:$true] %s6277_s13 }
0x2863   :  { %7569 = vmatpush3.bf16.xpose.msk.msra.mxu0 %vm8021_vm2, %v7567_v8  ;;  %s7663_s26 = scalar_lea.vmem %s6278_s13, 16  ;;  %s7667_s2 = scalar_lea.vmem %s6278_s13, 32 }
0x2864   :  { %p7664_p3 = scmp.ne.s32.totalorder %s6278_s13, %s7663_s26  ;;  %p7668_p4 = scmp.lt.s32.totalorder %s6278_s13, %s6278_s13 }
0x2865   :  { %p7669_p5 = scmp.lt.s32.totalorder %s7667_s2, %s7663_s26 }
0x2867   :  { %p7670_p6 = por %p7669_p5, %p7668_p4 }
0x2869   :  { %p7671_p7 = pnand %p7670_p6, %p7664_p3 }
0x286a   :  { %7349 = vmatmul.mubr.msk.f32.vlgmr.msra.gmra.mrb[56].mxu0 %vm243_vm0, %v6662_v4 }
0x293d   :  { %v6141_v48 = vpop.f32.mrb[56].mxu0 }
0x293e   :  { %v6142_v35 = vadd.f32 %v6141_v48, %v6058_v14  ;;  %v7350_v37 = vpop.f32.mrb[57].mxu0 }
0x2940   :  { %v6686_v63 = vmul.f32 -1.442695, %v6142_v35 }
0x2942   :  { %7649 = vpow2.f32 %v6686_v63 }
0x294c   :  { %v7650_v28 = vpop.eup %7649 }
0x294d   :  { %v6148_v1 = vadd.f32 1.0, %v7650_v28 }
0x294f   :  { %7651 = vrcp.f32 %v6148_v1 }
0x2959   :  { %v7652_v7 = vpop.eup %7651 }
0x295a   :  { %v6151_v12 = vmul.f32 %v7652_v7, %v6142_v35 }
0x295c   :  { %7356 = vmatmul.mubr.msk.f32.vlgmr.msra.gmra.mrb[68].mxu1 %vm250_vm3, %v6151_v12 }
0x295d   :  { %7674 = shalt.err (!%p7671_p7)
}
0x295e   :  { %s7675_s29 = scalar_lea.hbm %s9384_s10, 16 }
0x295f   :  { %p7676_p8 = scmp.ne.s32.totalorder %s9384_s10, %s7675_s29  ;;  %p7679_p9 = scmp.lt.u32.totalorder %s7675_s29, %s9384_s10 }
0x2961   :  { %p7681_p10 = pnand %p7679_p9, %p7676_p8 }
0x2963   :  { %7684 = shalt.err (!%p7681_p10)
}
0x2964   :  { %6280 = dma.vmem_to_hbm [thread:$0]  %s6278_s13, 16, %s9384_s10, [#allocation8]  }
0x2965   :  { %s7685_s21 = scalar_lea.vmem %s6300_s23, 16  ;;  %s7689_s22 = scalar_lea.vmem %s6300_s23, 32 }
0x2966   :  { %p7686_p11 = scmp.ne.s32.totalorder %s6300_s23, %s7685_s21  ;;  %p7690_p12 = scmp.lt.s32.totalorder %s6300_s23, %s6300_s23 }
0x2967   :  { %p7691_p13 = scmp.lt.s32.totalorder %s7689_s22, %s7685_s21 }
0x2969   :  { %p7692_p0 = por %p7691_p13, %p7690_p12 }
0x296b   :  { %p7693_p1 = pnand %p7692_p0, %p7686_p11 }
0x296d   :  { %7696 = shalt.err (!%p7693_p1)
}
0x296e   :  { %s7697_s25 = scalar_lea.hbm %s9386_s12, 16 }
0x296f   :  { %p7698_p2 = scmp.ne.s32.totalorder %s9386_s12, %s7697_s25  ;;  %p7701_p3 = scmp.lt.u32.totalorder %s7697_s25, %s9386_s12 }
0x2971   :  { %p7703_p4 = pnand %p7701_p3, %p7698_p2 }
0x2973   :  { %7706 = shalt.err (!%p7703_p4)
}
0x2974   :  { %6302 = dma.vmem_to_hbm [thread:$0]  %s6300_s23, 16, %s9386_s12, [#allocation11]  }
0x2975   :  { %s7841_s13 = smov [#allocation13]  }
0x2976   :  { %s6320_s3 = sshll.u32 %s7841_s13, 4  ;;  %s6321_s3 = int_to_ptr.vmem [resolvable:$true] %s6320_s3 }
0x2977   :  { %s7707_s26 = scalar_lea.vmem %s6321_s3, 256  ;;  %p7712_p6 = scmp.lt.s32.totalorder %s6321_s3, %s6321_s3 }
0x2978   :  { %p7708_p5 = scmp.ne.s32.totalorder %s6321_s3, %s7707_s26  ;;  %p7713_p7 = scmp.lt.s32.totalorder %s7707_s26, %s7707_s26 }
0x297a   :  { %p7714_p8 = por %p7713_p7, %p7712_p6 }
0x297c   :  { %p7715_p9 = pnand %p7714_p8, %p7708_p5 }
0x297e   :  { %7718 = shalt.err (!%p7715_p9)
}
0x297f   :  { %s7719_s28 = scalar_lea.hbm %s9389_s15, 256 }
0x2980   :  { %p7720_p10 = scmp.ne.s32.totalorder %s9389_s15, %s7719_s28  ;;  %p7723_p11 = scmp.lt.u32.totalorder %s7719_s28, %s9389_s15 }
0x2982   :  { %p7725_p12 = pnand %p7723_p11, %p7720_p10 }
0x2984   :  { %7728 = shalt.err (!%p7725_p12)
}
0x2985   :  { %s7842_s23 = smov 128   ;;  %s7843_s17 = smov 8  }
0x2986   :  { %6326 = dma.vmem_to_hbm [thread:$0]  %s6321_s3, 256, %s9389_s15, [#allocation14], %s7842_s23, %s7842_s23, %s7843_s17  }
0x2987   :  { %s7844_s20 = smov [#allocation9]   ;;  %s7845_s22 = smov [#allocation12]  }
0x2988   :  { %s6286_s21 = sshll.u32 %s7844_s20, 4  ;;  %s6311_s24 = sshll.u32 %s7845_s22, 4  ;;  %s6287_s21 = int_to_ptr.vmem [resolvable:$true] %s6286_s21  ;;  %s6312_s24 = int_to_ptr.vmem [resolvable:$true] %s6311_s24 }
0x2989   :  { %s7729_s4 = scalar_lea.vmem %s6287_s21, 256  ;;  %p7734_p0 = scmp.lt.s32.totalorder %s6287_s21, %s6287_s21 }
0x298a   :  { %p7730_p13 = scmp.ne.s32.totalorder %s6287_s21, %s7729_s4  ;;  %p7735_p1 = scmp.lt.s32.totalorder %s7729_s4, %s7729_s4 }
0x298c   :  { %p7736_p2 = por %p7735_p1, %p7734_p0 }
0x298e   :  { %p7737_p3 = pnand %p7736_p2, %p7730_p13 }
0x2990   :  { %7740 = shalt.err (!%p7737_p3)
}
0x2991   :  { %s7741_s1 = scalar_lea.hbm %s9385_s11, 256 }
0x2992   :  { %p7742_p4 = scmp.ne.s32.totalorder %s9385_s11, %s7741_s1  ;;  %p7745_p5 = scmp.lt.u32.totalorder %s7741_s1, %s9385_s11 }
0x2994   :  { %p7747_p6 = pnand %p7745_p5, %p7742_p4 }
0x2996   :  { %7750 = shalt.err (!%p7747_p6)
}
0x2997   :  { %6292 = dma.vmem_to_hbm [thread:$0]  %s6287_s21, 256, %s9385_s11, [#allocation8], %s7842_s23, %s7842_s23, %s7843_s17  }
0x2998   :  { %s7751_s3 = scalar_lea.vmem %s6312_s24, 16  ;;  %s7755_s26 = scalar_lea.vmem %s6312_s24, 32 }
0x2999   :  { %p7752_p7 = scmp.ne.s32.totalorder %s6312_s24, %s7751_s3  ;;  %p7756_p8 = scmp.lt.s32.totalorder %s6312_s24, %s6312_s24 }
0x299a   :  { %p7757_p9 = scmp.lt.s32.totalorder %s7755_s26, %s7751_s3 }
0x299c   :  { %p7758_p10 = por %p7757_p9, %p7756_p8 }
0x299e   :  { %p7759_p11 = pnand %p7758_p10, %p7752_p7 }
0x29a0   :  { %7762 = shalt.err (!%p7759_p11)
}
0x29a1   :  { %s7763_s28 = scalar_lea.hbm %s9388_s14, 16 }
0x29a2   :  { %p7764_p12 = scmp.ne.s32.totalorder %s9388_s14, %s7763_s28  ;;  %p7767_p13 = scmp.lt.u32.totalorder %s7763_s28, %s9388_s14 }
0x29a4   :  { %p7769_p0 = pnand %p7767_p13, %p7764_p12 }
0x29a6   :  { %7772 = shalt.err (!%p7769_p0)
}
0x29a7   :  { %6314 = dma.vmem_to_hbm [thread:$0]  %s6312_s24, 16, %s9388_s14, [#allocation11]  }
0x29a8   :  { %s7846_s17 = smov [#allocation15]  }
0x29a9   :  { %s6333_s18 = sshll.u32 %s7846_s17, 4  ;;  %s6334_s18 = int_to_ptr.vmem [resolvable:$true] %s6333_s18 }
0x29aa   :  { %s7773_s19 = scalar_lea.vmem %s6334_s18, 16  ;;  %s7777_s20 = scalar_lea.vmem %s6334_s18, 32 }
0x29ab   :  { %p7774_p1 = scmp.ne.s32.totalorder %s6334_s18, %s7773_s19  ;;  %p7778_p2 = scmp.lt.s32.totalorder %s6334_s18, %s6334_s18 }
0x29ac   :  { %p7779_p3 = scmp.lt.s32.totalorder %s7777_s20, %s7773_s19 }
0x29ae   :  { %p7780_p4 = por %p7779_p3, %p7778_p2 }
0x29b0   :  { %p7781_p5 = pnand %p7780_p4, %p7774_p1 }
0x29b2   :  { %7784 = shalt.err (!%p7781_p5)
}
0x29b3   :  { %s7785_s4 = scalar_lea.hbm %s9390_s16, 16 }
0x29b4   :  { %p7786_p6 = scmp.ne.s32.totalorder %s9390_s16, %s7785_s4  ;;  %p7789_p7 = scmp.lt.u32.totalorder %s7785_s4, %s9390_s16 }
0x29b6   :  { %p7791_p8 = pnand %p7789_p7, %p7786_p6 }
0x29b8   :  { %7794 = shalt.err (!%p7791_p8)
}
0x29b9   :  { %6336 = dma.vmem_to_hbm [thread:$0]  %s6334_s18, 16, %s9390_s16, [#allocation14]   ;;  %v6156_v44 = vrot.slane %v9181_v58, %v8069_v24 }
0x29ba   :  { %s7847_s7 = smov [#allocation6]  }
0x29bb   :  { %s6262_s15 = sshll.u32 %s7847_s7, 4  ;;  %s6263_s15 = int_to_ptr.vmem [resolvable:$true] %s6262_s15 }
0x29bc   :  { %s7795_s10 = scalar_lea.vmem %s6263_s15, 256  ;;  %p7800_p10 = scmp.lt.s32.totalorder %s6263_s15, %s6263_s15 }
0x29bd   :  { %p7796_p9 = scmp.ne.s32.totalorder %s6263_s15, %s7795_s10  ;;  %p7801_p11 = scmp.lt.s32.totalorder %s7795_s10, %s7795_s10 }
0x29bf   :  { %p7802_p12 = por %p7801_p11, %p7800_p10 }
0x29c1   :  { %p7803_p13 = pnand %p7802_p12, %p7796_p9 }
0x2a2f   :  { %v6233_v3 = vpop.f32.mrb[68].mxu1 }
0x2a30   :  { %v6234_v17 = vadd.f32 %v6233_v3, %v6156_v44  ;;  %v7357_v20 = vpop.f32.mrb[69].mxu1 }
0x2a32   :  { %6238 = vst.msk [vmem:[#allocation6 + $0xe] sm:$0x3] %vm592_vm10, %v6234_v17 }
0x2a33   :  { %7806 = shalt.err (!%p7803_p13)
}
0x2a34   :  { %s7807_s13 = scalar_lea.hbm %s9382_s8, 256 }
0x2a35   :  { %p7808_p0 = scmp.ne.s32.totalorder %s9382_s8, %s7807_s13  ;;  %p7811_p1 = scmp.lt.u32.totalorder %s7807_s13, %s9382_s8 }
0x2a37   :  { %p7813_p2 = pnand %p7811_p1, %p7808_p0 }
0x2a39   :  { %7816 = shalt.err (!%p7813_p2)
}
0x2a3a   :  { %s7848_s28 = smov 32   ;;  %s7849_s29 = smov 2  }
0x2a3b   :  { %6268 = dma.vmem_to_hbm [thread:$0]  %s6263_s15, 256, %s9382_s8, [#allocation4], %s7848_s28, %s7848_s28, %s7849_s29  }
0x2a3c   :  { %7827 = dma.done.wait [#allocation4], 256  }
0x2a3d   :  { %7828 = vsyncadd [#allocation4], 4294967040 }
0x2a3e   :  { %7829 = dma.done.wait [#allocation8], 272  }
0x2a3f   :  { %7830 = vsyncadd [#allocation8], 4294967024 }
0x2a40   :  { %7831 = dma.done.wait [#allocation11], 32  }
0x2a41   :  { %7832 = vsyncadd [#allocation11], 4294967264 }
0x2a42   :  { %7833 = dma.done.wait [#allocation14], 272  }
0x2a43   :  { %7834 = vsyncadd [#allocation14], 4294967024 }
0x2a44   :  { %6362 = vsyncpa [#allocation4], 1 }
0x2a45   :  { %6363 = vsyncpa [#allocation8], 1 }
0x2a46   :  { %6364 = vsyncpa [#allocation11], 1 }
0x2a47   :  { %6365 = vsyncpa [#allocation14], 1 }
0x2a48   :  { %6366 = vsyncpa [#allocation5], 1 }
0x2a49   :  { %6367 = vsyncmov [#allocation2] }
0x2a4c   :  { %s6368_s12 = vpop.sfrf %6367 }
0x2a4d   :  { %p6690_p3 = scmp.ne.s32.totalorder %s6368_s12, 0 }
0x2a4f   :  { %6372 = shalt.err (%p6690_p3)  }
0x2a50   :  { %6374 = vsyncmov [#allocation2 + $0x1] }
0x2a53   :  { %s6375_s11 = vpop.sfrf %6374 }
0x2a54   :  { %p6691_p4 = scmp.ne.s32.totalorder %s6375_s11, 0 }
0x2a56   :  { %6379 = shalt.err (%p6691_p4)  }
0x2a57   :  { %6381 = vsyncmov [#allocation2 + $0x2] }
0x2a5a   :  { %s6382_s8 = vpop.sfrf %6381 }
0x2a5b   :  { %p6692_p5 = scmp.ne.s32.totalorder %s6382_s8, 0 }
0x2a5d   :  { %6386 = shalt.err (%p6692_p5)  }
0x2a5e   :  { %6388 = vsyncmov [#allocation2 + $0x3] }
0x2a61   :  { %s6389_s23 = vpop.sfrf %6388 }
0x2a62   :  { %p6693_p6 = scmp.ne.s32.totalorder %s6389_s23, 0 }
0x2a64   :  { %6393 = shalt.err (%p6693_p6)  }

</bundles_post_ra>
